<compile_context>
chip_gen: v5e
topology: v5e:2x2
jax: 0.10.0
libtpu: 0.0.40
codegen_flags: <defaults>
</compile_context>

<pallas_src>
import functools

import jax
import jax.numpy as jnp
from jax.experimental import pallas as pl
from jax.experimental.pallas import tpu as pltpu


# ----------------------------------------------------------------------------
# Fused CoTAttention kernel: one grid step == one batch element
# ----------------------------------------------------------------------------
def _cot_attention_kernel(xpad_ref, wk_ref, bk_ref, wv_ref, bv_ref,
                          wa1_ref, ba1_ref, wa2_ref, ba2_ref,
                          o_ref, taps_ref, *, H, W, C):
    # xpad_ref : (1, H+2, W+2, C) f32   zero-padded NHWC input
    # wk_ref   : (9*C, C)  bf16   key 3x3 conv (groups -> block-diag), BN folded
    # bk_ref   : (1, C)    f32
    # wv_ref   : (C, C)    bf16   value 1x1 conv, BN folded
    # bv_ref   : (1, C)    f32
    # wa1_ref  : (2*C, M)  bf16   attention conv1 (input = [k1, x]), BN folded
    # ba1_ref  : (1, M)    f32
    # wa2_ref  : (M, C)    bf16   attention conv2, 9-tap mean folded in
    # ba2_ref  : (1, C)    f32
    # o_ref    : (1, P, C) f32
    # taps_ref : (P, 9*C)  bf16 VMEM scratch (im2col built on-chip, never in HBM)
    P = H * W

    # Build the nine shifted 3x3 taps from static slices of the padded VMEM
    # tile and fold them into the contraction dimension of one matmul.
    for t in range(9):
        dy, dx = divmod(t, 3)
        tap = xpad_ref[0, dy:dy + H, dx:dx + W, :]          # (H, W, C) f32
        taps_ref[:, t * C:(t + 1) * C] = tap.reshape(P, C).astype(jnp.bfloat16)

    x_b = taps_ref[:, 4 * C:5 * C]                          # centre tap == x

    # key_embed: grouped 3x3 conv (block-diagonal weight) + BN + ReLU
    k1 = jnp.dot(taps_ref[...], wk_ref[...],
                 preferred_element_type=jnp.float32) + bk_ref[...]
    k1 = jnp.maximum(k1, 0.0)                               # (P, C) f32

    # value_embed: 1x1 conv + BN
    v = jnp.dot(x_b, wv_ref[...],
                preferred_element_type=jnp.float32) + bv_ref[...]      # (P, C)

    # attention_embed conv1 over concat([k1, x]): distributed over the parts
    wa1 = wa1_ref[...]
    att1 = (jnp.dot(k1.astype(jnp.bfloat16), wa1[:C, :],
                    preferred_element_type=jnp.float32)
            + jnp.dot(x_b, wa1[C:, :], preferred_element_type=jnp.float32)
            + ba1_ref[...])
    att1 = jnp.maximum(att1, 0.0)                           # (P, 2*C//4) f32

    # attention_embed conv2 (mean over the 9 kernel positions pre-folded)
    att = jnp.dot(att1.astype(jnp.bfloat16), wa2_ref[...],
                  preferred_element_type=jnp.float32) + ba2_ref[...]   # (P, C)

    # softmax over the spatial axis (per channel), gate v, add k1
    m = jnp.max(att, axis=0, keepdims=True)                 # (1, C)
    e = jnp.exp(att - m)                                    # (P, C)
    s = jnp.sum(e, axis=0, keepdims=True)                   # (1, C)
    k2 = e * (1.0 / s) * v                                  # (P, C)

    o_ref[0] = (k1 + k2).astype(o_ref.dtype)


# ----------------------------------------------------------------------------
# Wrapper: NCHW in / NCHW out (matches the PyTorch module interface)
# ----------------------------------------------------------------------------
def cot_attention_forward(params, x_nchw):
    N, C, H, W = x_nchw.shape
    assert W % 8 == 0, "W must be a multiple of 8 (TPU sublane) for this kernel"
    P = H * W
    mid = params["wa1"].shape[1]

    x = jnp.transpose(x_nchw, (0, 2, 3, 1))                 # NHWC: channels -> lanes
    xpad = jnp.pad(x, ((0, 0), (1, 1), (1, 1), (0, 0)))     # (N, H+2, W+2, C)

    kernel = functools.partial(_cot_attention_kernel, H=H, W=W, C=C)
    out = pl.pallas_call(
        kernel,
        out_shape=jax.ShapeDtypeStruct((N, P, C), jnp.float32),
        grid=(N,),
        in_specs=[
            pl.BlockSpec((1, H + 2, W + 2, C), lambda n: (n, 0, 0, 0)),
            pl.BlockSpec((9 * C, C), lambda n: (0, 0)),
            pl.BlockSpec((1, C), lambda n: (0, 0)),
            pl.BlockSpec((C, C), lambda n: (0, 0)),
            pl.BlockSpec((1, C), lambda n: (0, 0)),
            pl.BlockSpec((2 * C, mid), lambda n: (0, 0)),
            pl.BlockSpec((1, mid), lambda n: (0, 0)),
            pl.BlockSpec((mid, C), lambda n: (0, 0)),
            pl.BlockSpec((1, C), lambda n: (0, 0)),
        ],
        out_specs=pl.BlockSpec((1, P, C), lambda n: (n, 0, 0)),
        scratch_shapes=[pltpu.VMEM((P, 9 * C), jnp.bfloat16)],
        compiler_params=pltpu.CompilerParams(
            dimension_semantics=("parallel",),
            vmem_limit_bytes=32 * 1024 * 1024,
        ),
    )(xpad, params["wk"], params["bk"], params["wv"], params["bv"],
      params["wa1"], params["ba1"], params["wa2"], params["ba2"])

    out = out.reshape(N, H, W, C)
    return jnp.transpose(out, (0, 3, 1, 2))                 # back to NCHW


# ----------------------------------------------------------------------------
# Parameters: raw (PyTorch-shaped) init + folding into matmul form
# ----------------------------------------------------------------------------
def _init_bn(key, n):
    kg, kb, km, kv = jax.random.split(key, 4)
    return {
        "gamma": 1.0 + 0.1 * jax.random.normal(kg, (n,), jnp.float32),
        "beta": 0.1 * jax.random.normal(kb, (n,), jnp.float32),
        "mean": 0.1 * jax.random.normal(km, (n,), jnp.float32),
        "var": 1.0 + 0.1 * jax.random.uniform(kv, (n,), jnp.float32),
    }


def init_cot_params(key, dim=64, kernel_size=3, factor=4):
    """Raw parameters with the same shapes as the PyTorch CoTAttention module."""
    assert kernel_size == 3
    cg = dim // 2                          # groups = 2
    mid = 2 * dim // factor
    ks = jax.random.split(key, 8)
    return {
        "key_w": 0.1 * jax.random.normal(ks[0], (dim, cg, 3, 3), jnp.float32),
        "key_bn": _init_bn(ks[1], dim),
        "val_w": 0.1 * jax.random.normal(ks[2], (dim, dim, 1, 1), jnp.float32),
        "val_bn": _init_bn(ks[3], dim),
        "att1_w": 0.1 * jax.random.normal(ks[4], (mid, 2 * dim, 1, 1), jnp.float32),
        "att1_bn": _init_bn(ks[5], mid),
        "att2_w": 0.1 * jax.random.normal(ks[6], (9 * dim, mid, 1, 1), jnp.float32),
        "att2_b": 0.01 * jax.random.normal(ks[7], (9 * dim,), jnp.float32),
    }


def fold_cot_params(p, dim, eps=1e-5):
    """Fold BatchNorm (inference form), conv groups, and the 9-tap mean into
    matmul weights/biases consumed by the Pallas kernel."""
    # TODO(synk): BatchNorm is folded with running statistics (eval mode); the
    # training-mode batch-statistics path is not implemented.
    C = dim
    cg = C // 2

    def scale_shift(bn):
        s = bn["gamma"] / jnp.sqrt(bn["var"] + eps)
        return s, bn["beta"] - bn["mean"] * s

    # key_embed: grouped 3x3 conv -> block-diagonal (9*C, C), BN folded.
    sk, bk = scale_shift(p["key_bn"])
    w_full = jnp.zeros((C, C, 3, 3), jnp.float32)
    for g in range(2):
        w_full = w_full.at[g * cg:(g + 1) * cg, g * cg:(g + 1) * cg].set(
            p["key_w"][g * cg:(g + 1) * cg])
    w_full = w_full * sk[:, None, None, None]
    wk = jnp.transpose(w_full, (2, 3, 1, 0)).reshape(9 * C, C)   # [(dy*3+dx)*C+ci, co]

    # value_embed: 1x1 conv, BN folded.
    sv, bv = scale_shift(p["val_bn"])
    wv = (p["val_w"][:, :, 0, 0] * sv[:, None]).T                # (C_in, C_out)

    # attention conv1, BN folded; rows [0:C) consume k1, rows [C:2C) consume x.
    sa, ba1 = scale_shift(p["att1_bn"])
    wa1 = (p["att1_w"][:, :, 0, 0] * sa[:, None]).T              # (2C, mid)

    # attention conv2: out-channel index = ci*9 + ki; fold the mean over ki.
    w2 = p["att2_w"][:, :, 0, 0]                                 # (9C, mid)
    mid = w2.shape[1]
    wa2 = w2.reshape(C, 9, mid).mean(axis=1).T                   # (mid, C)
    ba2 = p["att2_b"].reshape(C, 9).mean(axis=1)                 # (C,)

    bf = lambda a: a.astype(jnp.bfloat16)
    f32row = lambda a: a.reshape(1, -1).astype(jnp.float32)
    return {
        "wk": bf(wk), "bk": f32row(bk),
        "wv": bf(wv), "bv": f32row(bv),
        "wa1": bf(wa1), "ba1": f32row(ba1),
        "wa2": bf(wa2), "ba2": f32row(ba2),
    }


if __name__ == "__main__":
    dim, ksize = 64, 3                    # module defaults (dim=64, kernel_size=3)
    N, H, W = 2, 16, 16                   # small deterministic example

    key = jax.random.PRNGKey(0)
    k_param, k_x = jax.random.split(key)
    raw = init_cot_params(k_param, dim=dim, kernel_size=ksize)
    params = fold_cot_params(raw, dim=dim)

    x = jax.random.normal(k_x, (N, dim, H, W), jnp.float32)

    fwd = jax.jit(cot_attention_forward)
    out = jax.block_until_ready(fwd(params, x))

    assert out.shape == (N, dim, H, W), out.shape
    assert bool(jnp.all(jnp.isfinite(out)))
    print("KERNEL_OK")
</pallas_src>

<mosaic_0001>
module attributes {stable_mosaic.version = 11 : i64} {
  func.func @_cot_attention_kernel(%arg0: i32, %arg1: memref<1x18x18x64xf32, #tpu.memory_space<vmem>>, %arg2: memref<576x64xbf16, #tpu.memory_space<vmem>>, %arg3: memref<1x64xf32, #tpu.memory_space<vmem>>, %arg4: memref<64x64xbf16, #tpu.memory_space<vmem>>, %arg5: memref<1x64xf32, #tpu.memory_space<vmem>>, %arg6: memref<128x32xbf16, #tpu.memory_space<vmem>>, %arg7: memref<1x32xf32, #tpu.memory_space<vmem>>, %arg8: memref<32x64xbf16, #tpu.memory_space<vmem>>, %arg9: memref<1x64xf32, #tpu.memory_space<vmem>>, %arg10: memref<1x256x64xf32, #tpu.memory_space<vmem>>, %arg11: memref<256x576xbf16, #tpu.memory_space<vmem>>) attributes {dimension_semantics = [#tpu.dimension_semantics<parallel>], iteration_bounds = array<i64: 2>, scalar_prefetch = 0 : i64, scratch_operands = 1 : i64, tpu.core_type = #tpu.core_type<tc>, window_params = [{transform_indices = @transform_0, window_bounds = array<i64: 1, 18, 18, 64>}, {pipeline_mode = #tpu.pipeline_mode<synchronous>, transform_indices = @transform_1, window_bounds = array<i64: 576, 64>}, {pipeline_mode = #tpu.pipeline_mode<synchronous>, transform_indices = @transform_2, window_bounds = array<i64: 1, 64>}, {pipeline_mode = #tpu.pipeline_mode<synchronous>, transform_indices = @transform_3, window_bounds = array<i64: 64, 64>}, {pipeline_mode = #tpu.pipeline_mode<synchronous>, transform_indices = @transform_4, window_bounds = array<i64: 1, 64>}, {pipeline_mode = #tpu.pipeline_mode<synchronous>, transform_indices = @transform_5, window_bounds = array<i64: 128, 32>}, {pipeline_mode = #tpu.pipeline_mode<synchronous>, transform_indices = @transform_6, window_bounds = array<i64: 1, 32>}, {pipeline_mode = #tpu.pipeline_mode<synchronous>, transform_indices = @transform_7, window_bounds = array<i64: 32, 64>}, {pipeline_mode = #tpu.pipeline_mode<synchronous>, transform_indices = @transform_8, window_bounds = array<i64: 1, 64>}, {transform_indices = @transform_9, window_bounds = array<i64: 1, 256, 64>}]} {
    %c0 = arith.constant 0 : index
    %c0_0 = arith.constant 0 : index
    %c0_1 = arith.constant 0 : index
    %c0_2 = arith.constant 0 : index
    %0 = vector.load %arg1[%c0, %c0_0, %c0_1, %c0_2] : memref<1x18x18x64xf32, #tpu.memory_space<vmem>>, vector<1x16x16x64xf32>
    %1 = vector.shape_cast %0 : vector<1x16x16x64xf32> to vector<16x16x64xf32>
    %2 = vector.shape_cast %1 : vector<16x16x64xf32> to vector<256x64xf32>
    %3 = arith.truncf %2 : vector<256x64xf32> to vector<256x64xbf16>
    %c0_3 = arith.constant 0 : index
    %c0_4 = arith.constant 0 : index
    %4 = vector.load %arg11[%c0_3, %c0_4] : memref<256x576xbf16, #tpu.memory_space<vmem>>, vector<256x64xbf16>
    tpu.vector_store %arg11[%c0_3, %c0_4], %3 {strides = array<i32>} : memref<256x576xbf16, #tpu.memory_space<vmem>>, vector<256x64xbf16>,
    %c0_5 = arith.constant 0 : index
    %c0_6 = arith.constant 0 : index
    %c1 = arith.constant 1 : index
    %c0_7 = arith.constant 0 : index
    %5 = vector.load %arg1[%c0_5, %c0_6, %c1, %c0_7] : memref<1x18x18x64xf32, #tpu.memory_space<vmem>>, vector<1x16x16x64xf32>
    %6 = vector.shape_cast %5 : vector<1x16x16x64xf32> to vector<16x16x64xf32>
    %7 = vector.shape_cast %6 : vector<16x16x64xf32> to vector<256x64xf32>
    %8 = arith.truncf %7 : vector<256x64xf32> to vector<256x64xbf16>
    %c0_8 = arith.constant 0 : index
    %c64 = arith.constant 64 : index
    %9 = vector.load %arg11[%c0_8, %c64] : memref<256x576xbf16, #tpu.memory_space<vmem>>, vector<256x64xbf16>
    tpu.vector_store %arg11[%c0_8, %c64], %8 {strides = array<i32>} : memref<256x576xbf16, #tpu.memory_space<vmem>>, vector<256x64xbf16>,
    %c0_9 = arith.constant 0 : index
    %c0_10 = arith.constant 0 : index
    %c2 = arith.constant 2 : index
    %c0_11 = arith.constant 0 : index
    %10 = vector.load %arg1[%c0_9, %c0_10, %c2, %c0_11] : memref<1x18x18x64xf32, #tpu.memory_space<vmem>>, vector<1x16x16x64xf32>
    %11 = vector.shape_cast %10 : vector<1x16x16x64xf32> to vector<16x16x64xf32>
    %12 = vector.shape_cast %11 : vector<16x16x64xf32> to vector<256x64xf32>
    %13 = arith.truncf %12 : vector<256x64xf32> to vector<256x64xbf16>
    %c0_12 = arith.constant 0 : index
    %c128 = arith.constant 128 : index
    %14 = vector.load %arg11[%c0_12, %c128] : memref<256x576xbf16, #tpu.memory_space<vmem>>, vector<256x64xbf16>
    tpu.vector_store %arg11[%c0_12, %c128], %13 {strides = array<i32>} : memref<256x576xbf16, #tpu.memory_space<vmem>>, vector<256x64xbf16>,
    %c0_13 = arith.constant 0 : index
    %c1_14 = arith.constant 1 : index
    %c0_15 = arith.constant 0 : index
    %c0_16 = arith.constant 0 : index
    %15 = vector.load %arg1[%c0_13, %c1_14, %c0_15, %c0_16] : memref<1x18x18x64xf32, #tpu.memory_space<vmem>>, vector<1x16x16x64xf32>
    %16 = vector.shape_cast %15 : vector<1x16x16x64xf32> to vector<16x16x64xf32>
    %17 = vector.shape_cast %16 : vector<16x16x64xf32> to vector<256x64xf32>
    %18 = arith.truncf %17 : vector<256x64xf32> to vector<256x64xbf16>
    %c0_17 = arith.constant 0 : index
    %c192 = arith.constant 192 : index
    %19 = vector.load %arg11[%c0_17, %c192] : memref<256x576xbf16, #tpu.memory_space<vmem>>, vector<256x64xbf16>
    tpu.vector_store %arg11[%c0_17, %c192], %18 {strides = array<i32>} : memref<256x576xbf16, #tpu.memory_space<vmem>>, vector<256x64xbf16>,
    %c0_18 = arith.constant 0 : index
    %c1_19 = arith.constant 1 : index
    %c1_20 = arith.constant 1 : index
    %c0_21 = arith.constant 0 : index
    %20 = vector.load %arg1[%c0_18, %c1_19, %c1_20, %c0_21] : memref<1x18x18x64xf32, #tpu.memory_space<vmem>>, vector<1x16x16x64xf32>
    %21 = vector.shape_cast %20 : vector<1x16x16x64xf32> to vector<16x16x64xf32>
    %22 = vector.shape_cast %21 : vector<16x16x64xf32> to vector<256x64xf32>
    %23 = arith.truncf %22 : vector<256x64xf32> to vector<256x64xbf16>
    %c0_22 = arith.constant 0 : index
    %c256 = arith.constant 256 : index
    %24 = vector.load %arg11[%c0_22, %c256] : memref<256x576xbf16, #tpu.memory_space<vmem>>, vector<256x64xbf16>
    tpu.vector_store %arg11[%c0_22, %c256], %23 {strides = array<i32>} : memref<256x576xbf16, #tpu.memory_space<vmem>>, vector<256x64xbf16>,
    %c0_23 = arith.constant 0 : index
    %c1_24 = arith.constant 1 : index
    %c2_25 = arith.constant 2 : index
    %c0_26 = arith.constant 0 : index
    %25 = vector.load %arg1[%c0_23, %c1_24, %c2_25, %c0_26] : memref<1x18x18x64xf32, #tpu.memory_space<vmem>>, vector<1x16x16x64xf32>
    %26 = vector.shape_cast %25 : vector<1x16x16x64xf32> to vector<16x16x64xf32>
    %27 = vector.shape_cast %26 : vector<16x16x64xf32> to vector<256x64xf32>
    %28 = arith.truncf %27 : vector<256x64xf32> to vector<256x64xbf16>
    %c0_27 = arith.constant 0 : index
    %c320 = arith.constant 320 : index
    %29 = vector.load %arg11[%c0_27, %c320] : memref<256x576xbf16, #tpu.memory_space<vmem>>, vector<256x64xbf16>
    tpu.vector_store %arg11[%c0_27, %c320], %28 {strides = array<i32>} : memref<256x576xbf16, #tpu.memory_space<vmem>>, vector<256x64xbf16>,
    %c0_28 = arith.constant 0 : index
    %c2_29 = arith.constant 2 : index
    %c0_30 = arith.constant 0 : index
    %c0_31 = arith.constant 0 : index
    %30 = vector.load %arg1[%c0_28, %c2_29, %c0_30, %c0_31] : memref<1x18x18x64xf32, #tpu.memory_space<vmem>>, vector<1x16x16x64xf32>
    %31 = vector.shape_cast %30 : vector<1x16x16x64xf32> to vector<16x16x64xf32>
    %32 = vector.shape_cast %31 : vector<16x16x64xf32> to vector<256x64xf32>
    %33 = arith.truncf %32 : vector<256x64xf32> to vector<256x64xbf16>
    %c0_32 = arith.constant 0 : index
    %c384 = arith.constant 384 : index
    %34 = vector.load %arg11[%c0_32, %c384] : memref<256x576xbf16, #tpu.memory_space<vmem>>, vector<256x64xbf16>
    tpu.vector_store %arg11[%c0_32, %c384], %33 {strides = array<i32>} : memref<256x576xbf16, #tpu.memory_space<vmem>>, vector<256x64xbf16>,
    %c0_33 = arith.constant 0 : index
    %c2_34 = arith.constant 2 : index
    %c1_35 = arith.constant 1 : index
    %c0_36 = arith.constant 0 : index
    %35 = vector.load %arg1[%c0_33, %c2_34, %c1_35, %c0_36] : memref<1x18x18x64xf32, #tpu.memory_space<vmem>>, vector<1x16x16x64xf32>
    %36 = vector.shape_cast %35 : vector<1x16x16x64xf32> to vector<16x16x64xf32>
    %37 = vector.shape_cast %36 : vector<16x16x64xf32> to vector<256x64xf32>
    %38 = arith.truncf %37 : vector<256x64xf32> to vector<256x64xbf16>
    %c0_37 = arith.constant 0 : index
    %c448 = arith.constant 448 : index
    %39 = vector.load %arg11[%c0_37, %c448] : memref<256x576xbf16, #tpu.memory_space<vmem>>, vector<256x64xbf16>
    tpu.vector_store %arg11[%c0_37, %c448], %38 {strides = array<i32>} : memref<256x576xbf16, #tpu.memory_space<vmem>>, vector<256x64xbf16>,
    %c0_38 = arith.constant 0 : index
    %c2_39 = arith.constant 2 : index
    %c2_40 = arith.constant 2 : index
    %c0_41 = arith.constant 0 : index
    %40 = vector.load %arg1[%c0_38, %c2_39, %c2_40, %c0_41] : memref<1x18x18x64xf32, #tpu.memory_space<vmem>>, vector<1x16x16x64xf32>
    %41 = vector.shape_cast %40 : vector<1x16x16x64xf32> to vector<16x16x64xf32>
    %42 = vector.shape_cast %41 : vector<16x16x64xf32> to vector<256x64xf32>
    %43 = arith.truncf %42 : vector<256x64xf32> to vector<256x64xbf16>
    %c0_42 = arith.constant 0 : index
    %c512 = arith.constant 512 : index
    %44 = vector.load %arg11[%c0_42, %c512] : memref<256x576xbf16, #tpu.memory_space<vmem>>, vector<256x64xbf16>
    tpu.vector_store %arg11[%c0_42, %c512], %43 {strides = array<i32>} : memref<256x576xbf16, #tpu.memory_space<vmem>>, vector<256x64xbf16>,
    %c0_43 = arith.constant 0 : index
    %c256_44 = arith.constant 256 : index
    %45 = vector.load %arg11[%c0_43, %c256_44] : memref<256x576xbf16, #tpu.memory_space<vmem>>, vector<256x64xbf16>
    %c0_45 = arith.constant 0 : index
    %c0_46 = arith.constant 0 : index
    %46 = vector.load %arg11[%c0_45, %c0_46] : memref<256x576xbf16, #tpu.memory_space<vmem>>, vector<256x576xbf16>
    %c0_47 = arith.constant 0 : index
    %c0_48 = arith.constant 0 : index
    %47 = vector.load %arg2[%c0_47, %c0_48] : memref<576x64xbf16, #tpu.memory_space<vmem>>, vector<576x64xbf16>
    %cst = arith.constant dense<0.000000e+00> : vector<256x64xf32>
    %48 = tpu.matmul %46, %47, %cst {dimension_numbers = #tpu.dot_dimension_numbers<[1], [0], [0], [1], [0, 0, 1, 1], [], []>} : vector<256x576xbf16>, vector<576x64xbf16>, vector<256x64xf32> -> vector<256x64xf32>
    %c0_49 = arith.constant 0 : index
    %c0_50 = arith.constant 0 : index
    %49 = vector.load %arg3[%c0_49, %c0_50] : memref<1x64xf32, #tpu.memory_space<vmem>>, vector<1x64xf32>
    %50 = vector.broadcast %49 : vector<1x64xf32> to vector<256x64xf32>
    %51 = arith.addf %48, %50 : vector<256x64xf32>
    %cst_51 = arith.constant 0.000000e+00 : f32
    %52 = vector.broadcast %cst_51 : f32 to vector<256x64xf32>
    %53 = arith.maximumf %51, %52 : vector<256x64xf32>
    %c0_52 = arith.constant 0 : index
    %c0_53 = arith.constant 0 : index
    %54 = vector.load %arg4[%c0_52, %c0_53] : memref<64x64xbf16, #tpu.memory_space<vmem>>, vector<64x64xbf16>
    %cst_54 = arith.constant dense<0.000000e+00> : vector<256x64xf32>
    %55 = tpu.matmul %45, %54, %cst_54 {dimension_numbers = #tpu.dot_dimension_numbers<[1], [0], [0], [1], [0, 0, 1, 1], [], []>} : vector<256x64xbf16>, vector<64x64xbf16>, vector<256x64xf32> -> vector<256x64xf32>
    %c0_55 = arith.constant 0 : index
    %c0_56 = arith.constant 0 : index
    %56 = vector.load %arg5[%c0_55, %c0_56] : memref<1x64xf32, #tpu.memory_space<vmem>>, vector<1x64xf32>
    %57 = vector.broadcast %56 : vector<1x64xf32> to vector<256x64xf32>
    %58 = arith.addf %55, %57 : vector<256x64xf32>
    %c0_57 = arith.constant 0 : index
    %c0_58 = arith.constant 0 : index
    %59 = vector.load %arg6[%c0_57, %c0_58] : memref<128x32xbf16, #tpu.memory_space<vmem>>, vector<128x32xbf16>
    %60 = arith.truncf %53 : vector<256x64xf32> to vector<256x64xbf16>
    %61 = vector.extract_strided_slice %59 {offsets = [0, 0], sizes = [64, 32], strides = [1, 1]} : vector<128x32xbf16> to vector<64x32xbf16>
    %cst_59 = arith.constant dense<0.000000e+00> : vector<256x32xf32>
    %62 = tpu.matmul %60, %61, %cst_59 {dimension_numbers = #tpu.dot_dimension_numbers<[1], [0], [0], [1], [0, 0, 1, 1], [], []>} : vector<256x64xbf16>, vector<64x32xbf16>, vector<256x32xf32> -> vector<256x32xf32>
    %63 = vector.extract_strided_slice %59 {offsets = [64, 0], sizes = [64, 32], strides = [1, 1]} : vector<128x32xbf16> to vector<64x32xbf16>
    %cst_60 = arith.constant dense<0.000000e+00> : vector<256x32xf32>
    %64 = tpu.matmul %45, %63, %cst_60 {dimension_numbers = #tpu.dot_dimension_numbers<[1], [0], [0], [1], [0, 0, 1, 1], [], []>} : vector<256x64xbf16>, vector<64x32xbf16>, vector<256x32xf32> -> vector<256x32xf32>
    %65 = arith.addf %62, %64 : vector<256x32xf32>
    %c0_61 = arith.constant 0 : index
    %c0_62 = arith.constant 0 : index
    %66 = vector.load %arg7[%c0_61, %c0_62] : memref<1x32xf32, #tpu.memory_space<vmem>>, vector<1x32xf32>
    %67 = vector.broadcast %66 : vector<1x32xf32> to vector<256x32xf32>
    %68 = arith.addf %65, %67 : vector<256x32xf32>
    %cst_63 = arith.constant 0.000000e+00 : f32
    %69 = vector.broadcast %cst_63 : f32 to vector<256x32xf32>
    %70 = arith.maximumf %68, %69 : vector<256x32xf32>
    %71 = arith.truncf %70 : vector<256x32xf32> to vector<256x32xbf16>
    %c0_64 = arith.constant 0 : index
    %c0_65 = arith.constant 0 : index
    %72 = vector.load %arg8[%c0_64, %c0_65] : memref<32x64xbf16, #tpu.memory_space<vmem>>, vector<32x64xbf16>
    %cst_66 = arith.constant dense<0.000000e+00> : vector<256x64xf32>
    %73 = tpu.matmul %71, %72, %cst_66 {dimension_numbers = #tpu.dot_dimension_numbers<[1], [0], [0], [1], [0, 0, 1, 1], [], []>} : vector<256x32xbf16>, vector<32x64xbf16>, vector<256x64xf32> -> vector<256x64xf32>
    %c0_67 = arith.constant 0 : index
    %c0_68 = arith.constant 0 : index
    %74 = vector.load %arg9[%c0_67, %c0_68] : memref<1x64xf32, #tpu.memory_space<vmem>>, vector<1x64xf32>
    %75 = vector.broadcast %74 : vector<1x64xf32> to vector<256x64xf32>
    %76 = arith.addf %73, %75 : vector<256x64xf32>
    %cst_69 = arith.constant dense<0xFF800000> : vector<64xf32>
    %77 = vector.multi_reduction <maximumf>, %76, %cst_69 [0] : vector<256x64xf32> to vector<64xf32>
    %78 = vector.shape_cast %77 : vector<64xf32> to vector<1x64xf32>
    %79 = vector.broadcast %78 : vector<1x64xf32> to vector<256x64xf32>
    %80 = arith.subf %76, %79 : vector<256x64xf32>
    %81 = math.exp %80 : vector<256x64xf32>
    %cst_70 = arith.constant dense<0.000000e+00> : vector<64xf32>
    %82 = vector.multi_reduction <add>, %81, %cst_70 [0] : vector<256x64xf32> to vector<64xf32>
    %83 = vector.shape_cast %82 : vector<64xf32> to vector<1x64xf32>
    %cst_71 = arith.constant 1.000000e+00 : f32
    %84 = vector.broadcast %cst_71 : f32 to vector<1x64xf32>
    %85 = arith.divf %84, %83 : vector<1x64xf32>
    %86 = vector.broadcast %85 : vector<1x64xf32> to vector<256x64xf32>
    %87 = arith.mulf %81, %86 : vector<256x64xf32>
    %88 = arith.mulf %87, %58 : vector<256x64xf32>
    %89 = arith.addf %53, %88 : vector<256x64xf32>
    %c0_72 = arith.constant 0 : index
    %c0_73 = arith.constant 0 : index
    %c0_74 = arith.constant 0 : index
    %90 = vector.load %arg10[%c0_72, %c0_73, %c0_74] : memref<1x256x64xf32, #tpu.memory_space<vmem>>, vector<1x256x64xf32>
    %91 = vector.shape_cast %90 : vector<1x256x64xf32> to vector<256x64xf32>
    %92 = vector.shape_cast %89 : vector<256x64xf32> to vector<1x256x64xf32>
    tpu.vector_store %arg10[%c0_72, %c0_73, %c0_74], %92 {strides = array<i32>} : memref<1x256x64xf32, #tpu.memory_space<vmem>>, vector<1x256x64xf32>,
    return
  }
  func.func @transform_0(%arg0: i32) -> (i32, i32, i32, i32) {
    %c0_i32 = arith.constant 0 : i32
    %c0_i32_0 = arith.constant 0 : i32
    %c0_i32_1 = arith.constant 0 : i32
    %c0_i32_2 = arith.constant 0 : i32
    return %arg0, %c0_i32, %c0_i32_0, %c0_i32_1 : i32, i32, i32, i32
  }
  func.func @transform_1(%arg0: i32) -> (i32, i32) {
    %c0_i32 = arith.constant 0 : i32
    %c0_i32_0 = arith.constant 0 : i32
    %c0_i32_1 = arith.constant 0 : i32
    return %c0_i32, %c0_i32_0 : i32, i32
  }
  func.func @transform_2(%arg0: i32) -> (i32, i32) {
    %c0_i32 = arith.constant 0 : i32
    %c0_i32_0 = arith.constant 0 : i32
    %c0_i32_1 = arith.constant 0 : i32
    return %c0_i32, %c0_i32_0 : i32, i32
  }
  func.func @transform_3(%arg0: i32) -> (i32, i32) {
    %c0_i32 = arith.constant 0 : i32
    %c0_i32_0 = arith.constant 0 : i32
    %c0_i32_1 = arith.constant 0 : i32
    return %c0_i32, %c0_i32_0 : i32, i32
  }
  func.func @transform_4(%arg0: i32) -> (i32, i32) {
    %c0_i32 = arith.constant 0 : i32
    %c0_i32_0 = arith.constant 0 : i32
    %c0_i32_1 = arith.constant 0 : i32
    return %c0_i32, %c0_i32_0 : i32, i32
  }
  func.func @transform_5(%arg0: i32) -> (i32, i32) {
    %c0_i32 = arith.constant 0 : i32
    %c0_i32_0 = arith.constant 0 : i32
    %c0_i32_1 = arith.constant 0 : i32
    return %c0_i32, %c0_i32_0 : i32, i32
  }
  func.func @transform_6(%arg0: i32) -> (i32, i32) {
    %c0_i32 = arith.constant 0 : i32
    %c0_i32_0 = arith.constant 0 : i32
    %c0_i32_1 = arith.constant 0 : i32
    return %c0_i32, %c0_i32_0 : i32, i32
  }
  func.func @transform_7(%arg0: i32) -> (i32, i32) {
    %c0_i32 = arith.constant 0 : i32
    %c0_i32_0 = arith.constant 0 : i32
    %c0_i32_1 = arith.constant 0 : i32
    return %c0_i32, %c0_i32_0 : i32, i32
  }
  func.func @transform_8(%arg0: i32) -> (i32, i32) {
    %c0_i32 = arith.constant 0 : i32
    %c0_i32_0 = arith.constant 0 : i32
    %c0_i32_1 = arith.constant 0 : i32
    return %c0_i32, %c0_i32_0 : i32, i32
  }
  func.func @transform_9(%arg0: i32) -> (i32, i32, i32) {
    %c0_i32 = arith.constant 0 : i32
    %c0_i32_0 = arith.constant 0 : i32
    %c0_i32_1 = arith.constant 0 : i32
    return %arg0, %c0_i32, %c0_i32_0 : i32, i32, i32
  }
}

</mosaic_0001>

<bundles_post_ra>
// kernel: cot_attention_forward.1
= control target key start
LH: loop header
LB: loop body
LE: loop exit
PB: predicated region body
PF: predicated region fallthrough
CT: control target
= control target key end

     0   :  { %14 = vsyncpa [#allocation4], 0  ;;  %s8093_s0 = inlined_call_operand.vmem [shape: f32[2,18,18,64], index: 0, kind: input, shape index: {}]   ;;  %s8094_s1 = inlined_call_operand.vmem [shape: bf16[576,64], index: 1, kind: input, shape index: {}]   ;;  %s8095_s2 = inlined_call_operand.vmem [shape: f32[1,64], index: 2, kind: input, shape index: {}]   ;;  %s8096_s3 = inlined_call_operand.vmem [shape: bf16[64,64], index: 3, kind: input, shape index: {}]   ;;  %s8097_s4 = inlined_call_operand.vmem [shape: f32[1,64], index: 4, kind: input, shape index: {}]   ;;  %s8098_s5 = inlined_call_operand.vmem [shape: bf16[128,32], index: 5, kind: input, shape index: {}]   ;;  %s8099_s6 = inlined_call_operand.vmem [shape: f32[1,32], index: 6, kind: input, shape index: {}]   ;;  %s8100_s7 = inlined_call_operand.vmem [shape: bf16[32,64], index: 7, kind: input, shape index: {}]   ;;  %s8101_s8 = inlined_call_operand.vmem [shape: f32[1,64], index: 8, kind: input, shape index: {}]   ;;  %s8102_s9 = inlined_call_operand.hbm [shape: f32[2,256,64], index: 9, kind: output, shape index: {}]  }
   0x1   :  { %16 = vsyncpa [#allocation4 + $0x1], 0  ;;  %s5583_s30 = smov 0   ;;  %s5585_s10 = smov 0  }
   0x2   :  { %s5587_s11 = smov 0   ;;  %s5589_s12 = smov 0  }
   0x3 LB: > { %s5604_s13 = sadd.s32 4294967295, %s5528_s12   ;;  %s4314_s14 = sadd.s32 4294967294, %s5528_s12   ;;  %s5528_s12 = sphi %s5589_s12, %s8363_s12   ;;  %s5524_s11 = sphi %s5587_s11, %s8362_s11   ;;  %s5520_s10 = sphi %s5585_s10, %s8361_s10   ;;  %s5516_s30 = sphi %s5583_s30, %s8360_s30  }
   0x4   : > { %s5608_s15 = sadd.s32 1, %s5528_s12   ;;  %s223_s16 = sadd.s32 1, %s5524_s11 }
   0x5   : > { %s220_s17 = ssub.s32 %s5528_s12, %s5608_s15  ;;  %p233_p0 = scmp.ne.s32.totalorder %s5524_s11, %s5520_s10 }
   0x6   : > { %p221_p1 = scmp.eq.s32.totalorder %s220_s17, 0  ;;  %p234_p2 = scmp.eq.s32.totalorder %s5604_s13, 1 }
   0x7   : > { %p239_p3 = scmp.ne.s32.totalorder %s5520_s10, %s5516_s30  ;;  %p240_p4 = scmp.eq.s32.totalorder %s4314_s14, 1 }
   0x8   : > { %s5619_s18 = scalar_select %p221_p1, %s5524_s11, %s223_s16  }
   0x9   : > { %p5621_p5 = por %p234_p2, %p233_p0  ;;  %p5625_p6 = por %p240_p4, %p239_p3 }
   0xa   : > { %p4317_p7 = scmp.ge.s32.totalorder %s5528_s12, 1  ;;  %p290_p8 = scmp.lt.s32.totalorder %s5528_s12, 3 }
   0xc   : > { %p291_p9 = pnand %p4317_p7, %p290_p8 }
   0xe   : > { %294 = sbr.rel (%p291_p9) target bundleno = 1186 (0x4a2), region = 56 }
  0x13   : > { %p326_p10 = scmp.lt.s32.totalorder %s5604_s13, 1  ;;  %s5530_s26 = smov 64   ;;  %v5284_v54 = vld [vmem:[%s8094_s1 + $0x38] sm:$0xff]  ;;  %v5283_v57 = vld [vmem:[%s8094_s1 + $0x30] sm:$0xff]  ;;  %v5282_v60 = vld [vmem:[%s8094_s1 + $0x28] sm:$0xff]  ;;  %vm396_vm0 = vcmask 519168  }
  0x14   : > { %5329 = vmatpush.bf16.msra.mxu2 %v5284_v54  ;;  %5330 = vmatpush.bf16.msra.mxu3 %v5284_v54  ;;  %vm621_vm1 = vcmask 1043968   ;;  %vm2532_vm2 = vcmask 523264   ;;  %vm3721_vm3 = vcmask 261120   ;;  %s5327_s24 = sshll.u32 %s5604_s13, 8 }
  0x15   : > { %s327_s21 = scalar_select %p326_p10, %s5604_s13, 1  ;;  %5328 = vmatpush.bf16.msra.mxu1 %v5284_v54  ;;  %2581 = vmatpush.bf16.msra.mxu0 %v5284_v54 }
  0x16   : > { %s4248_s27 = scalar_lea.hbm %s8102_s9, %s5327_s24  ;;  %s5486_s24 = scalar_lea.hbm %s8102_s9, 512 }
  0x17   : > { %s5352_s22 = smul.u32 432, %s327_s21  ;;  %s323_s21 = sand.u32 1, %s5520_s10  }
  0x18   : > { %5332 = vmatpush.bf16.msra.mxu2 %v5283_v57  ;;  %5333 = vmatpush.bf16.msra.mxu3 %v5283_v57  ;;  %s4251_s29 = sshll.u32 %s4248_s27, 4  ;;  %s4237_s14 = scalar_lea.sflag [#allocation4], %s323_s21  ;;  %s4252_s29 = int_to_ptr.hbm [resolvable:$true] %s4251_s29 }
  0x19   : > { %s5636_s25 = scalar_lea.vmem %s8093_s0, %s5352_s22  ;;  %5331 = vmatpush.bf16.msra.mxu1 %v5283_v57  ;;  %2582 = vmatpush.bf16.msra.mxu0 %v5283_v57  ;;  %s4318_s22 = sshll.u32 %s323_s21, 8 }
  0x1a   : > { %v453_v0 = vld [vmem:[%s5636_s25 + $0x121] sm:$0xff]  ;;  %v447_v4 = vld [vmem:[%s5636_s25 + $0xd9] sm:$0xff]  ;;  %v454_v6 = vld [vmem:[%s5636_s25 + $0x129] sm:$0xff]  ;;  %s7874_s23 = scalar_lea.vmem [#allocation3], %s4318_s22  ;;  %s5480_s16 = sshra.s32 %s4252_s29, 4  ;;  %s5481_s16 = int_to_ptr.hbm [resolvable:$true] %s5480_s16 }
  0x1b   : > { %v445_v1 = vld [vmem:[%s5636_s25 + $0xc1] sm:$0xff]  ;;  %v485_v2 = vpack.c.bf16 %v453_v0, %v453_v0  ;;  %v5646_v5 = vpack.c.bf16 %v447_v4, %v447_v4  ;;  %v446_v7 = vld [vmem:[%s5636_s25 + $0xc9] sm:$0xff]  ;;  %v486_v9 = vpack.c.bf16 %v454_v6, %v454_v6  ;;  %v455_v13 = vld [vmem:[%s5636_s25 + $0x139] sm:$0xff]  ;;  %s4249_s28 = sshll.u32 %s7874_s23, 4  ;;  %p5487_p0 = scmp.lt.s32.totalorder %s5481_s16, %s8102_s9  ;;  %s4250_s28 = int_to_ptr.vmem [resolvable:$true] %s4249_s28 }
  0x1c   : > { %v5640_v3 = vpack.c.bf16 %v445_v1, %v445_v1  ;;  %v448_v8 = vld [vmem:[%s5636_s25 + $0xe1] sm:$0xff]  ;;  %v5653_v10 = vpack.c.bf16 %v446_v7, %v446_v7  ;;  %v449_v14 = vld [vmem:[%s5636_s25 + $0xf1] sm:$0xff]  ;;  %v487_v16 = vpack.c.bf16 %v455_v13, %v455_v13  ;;  %v450_v19 = vld [vmem:[%s5636_s25 + $0xf9] sm:$0xff]  ;;  %5335 = vmatpush.bf16.msra.mxu2 %v5282_v60  ;;  %5336 = vmatpush.bf16.msra.mxu3 %v5282_v60 }
  0x1d   : > { %573 = vrot.lane.b32.xlu1 %v485_v2, %s5530_s26  ;;  %561 = vrot.lane.b32.xlu2 %v5646_v5, %s5530_s26  ;;  %v480_v11 = vpack.c.bf16 %v448_v8, %v448_v8  ;;  %v456_v12 = vld [vmem:[%s5636_s25 + $0x141] sm:$0xff]  ;;  %v5662_v17 = vpack.c.bf16 %v449_v14, %v449_v14  ;;  %v457_v18 = vld [vmem:[%s5636_s25 + $0x151] sm:$0xff]  ;;  %v482_v22 = vpack.c.bf16 %v450_v19, %v450_v19 }
  0x1e   : > { %557 = vrot.lane.b32.xlu0 %v5640_v3, %s5530_s26  ;;  %v488_v15 = vpack.c.bf16 %v456_v12, %v456_v12  ;;  %v458_v20 = vld [vmem:[%s5636_s25 + $0x159] sm:$0xff]  ;;  %v489_v21 = vpack.c.bf16 %v457_v18, %v457_v18  ;;  %v452_v24 = vld [vmem:[%s5636_s25 + $0x111] sm:$0xff]  ;;  %v451_v25 = vld [vmem:[%s5636_s25 + $0x109] sm:$0xff]  ;;  %5334 = vmatpush.bf16.msra.mxu1 %v5282_v60 }
  0x1f   : > { %v490_v23 = vpack.c.bf16 %v458_v20, %v458_v20  ;;  %v459_v26 = vld [vmem:[%s5636_s25 + $0x169] sm:$0xff]  ;;  %v484_v27 = vpack.c.bf16 %v452_v24, %v452_v24  ;;  %v5677_v28 = vpack.c.bf16 %v451_v25, %v451_v25  ;;  %v4384_v30 = vld [vmem:[%s5636_s25 + $0x1a] sm:$0xff]  ;;  %v460_v31 = vld [vmem:[%s5636_s25 + $0x171] sm:$0xff]  ;;  %2583 = vmatpush.bf16.msra.mxu0 %v5282_v60 }
  0x20   : > { %v491_v29 = vpack.c.bf16 %v459_v26, %v459_v26  ;;  %v4385_v32 = vld [vmem:[%s5636_s25 + $0x22] sm:$0xff]  ;;  %v1103_v33 = vpack.c.bf16 %v4384_v30, %v4384_v30  ;;  %v492_v34 = vpack.c.bf16 %v460_v31, %v460_v31  ;;  %v4449_v36 = vld [vmem:[%s5636_s25 + $0x39] sm:$0xff]  ;;  %v4448_v37 = vld [vmem:[%s5636_s25 + $0x31] sm:$0xff] }
  0x21   : > { %v1104_v35 = vpack.c.bf16 %v4385_v32, %v4385_v32  ;;  %v4386_v38 = vld [vmem:[%s5636_s25 + $0x32] sm:$0xff]  ;;  %v5692_v39 = vpack.c.bf16 %v4449_v36, %v4449_v36  ;;  %v5694_v40 = vpack.c.bf16 %v4448_v37, %v4448_v37  ;;  %v4450_v42 = vld [vmem:[%s5636_s25 + $0x49] sm:$0xff]  ;;  %v4387_v43 = vld [vmem:[%s5636_s25 + $0x3a] sm:$0xff] }
  0x22   : > { %v1105_v41 = vpack.c.bf16 %v4386_v38, %v4386_v38  ;;  %v4451_v44 = vld [vmem:[%s5636_s25 + $0x51] sm:$0xff]  ;;  %v5704_v45 = vpack.c.bf16 %v4450_v42, %v4450_v42  ;;  %v1106_v46 = vpack.c.bf16 %v4387_v43, %v4387_v43  ;;  %v437_v52 = vld [vmem:[%s5636_s25 + $0x61] sm:$0xff]  ;;  %v4453_v55 = vld [vmem:[%s5636_s25 + $0x69] sm:$0xff] }
  0x23   : > { %v5706_v47 = vpack.c.bf16 %v4451_v44, %v4451_v44  ;;  %v4389_v48 = vld [vmem:[%s5636_s25 + $0x52] sm:$0xff]  ;;  %v4388_v49 = vld [vmem:[%s5636_s25 + $0x4a] sm:$0xff]  ;;  %v5718_v53 = vpack.c.bf16 %v437_v52, %v437_v52  ;;  %v5726_v56 = vpack.c.bf16 %v4453_v55, %v4453_v55  ;;  %v4390_v58 = vld [vmem:[%s5636_s25 + $0x62] sm:$0xff]  ;;  %1041 = vst.msk [vmem:[#allocation2 + $0x30] sm:$0xf] %vm396_vm0, %v5694_v40 }
  0x24   : > { %v1108_v50 = vpack.c.bf16 %v4389_v48, %v4389_v48  ;;  %v1107_v51 = vpack.c.bf16 %v4388_v49, %v4388_v49  ;;  %v4391_v59 = vld [vmem:[%s5636_s25 + $0x6a] sm:$0xff]  ;;  %v1109_v61 = vpack.c.bf16 %v4390_v58, %v4390_v58  ;;  %v431_v63 = vld [vmem:[%s5636_s25 + $0x19] sm:$0xff]  ;;  %v432_v2 = vld [vmem:[%s5636_s25 + $0x21] sm:$0xff]  ;;  %1042 = vst.msk [vmem:[#allocation2 + $0x44] sm:$0xf] %vm396_vm0, %v5692_v39 }
  0x25   : > { %575 = vrot.lane.b32.xlu1 %v486_v9, %s5530_s26  ;;  %563 = vrot.lane.b32.xlu2 %v480_v11, %s5530_s26  ;;  %v1110_v62 = vpack.c.bf16 %v4391_v59, %v4391_v59  ;;  %v439_v0 = vld [vmem:[%s5636_s25 + $0x79] sm:$0xff]  ;;  %v5744_v1 = vpack.c.bf16 %v431_v63, %v431_v63  ;;  %v4455_v12 = vld [vmem:[%s5636_s25 + $0x81] sm:$0xff]  ;;  %v5762_v14 = vpack.c.bf16 %v432_v2, %v432_v2 }
  0x26   : > { %559 = vrot.lane.b32.xlu0 %v5653_v10, %s5530_s26  ;;  %v356_v4 = vld [vmem:[%s5636_s25 + $0x120] sm:$0xff]  ;;  %v5751_v7 = vpack.c.bf16 %v439_v0, %v439_v0  ;;  %v1431_v18 = vpack.c.bf16 %v4455_v12, %v4455_v12  ;;  %v357_v24 = vld [vmem:[%s5636_s25 + $0x128] sm:$0xff]  ;;  %1044 = vst.msk [vmem:[#allocation2 + $0x6c] sm:$0xf] %vm396_vm0, %v5706_v47  ;;  %v4456_v37 = vld [vmem:[%s5636_s25 + $0x91] sm:$0xff] }
  0x27   : > { %v348_v6 = vld [vmem:[%s5636_s25 + $0xc0] sm:$0xff]  ;;  %v388_v9 = vpack.c.bf16 %v356_v4, %v356_v4  ;;  %1039 = vst.msk [vmem:[#allocation2 + $0x8] sm:$0xf] %vm396_vm0, %v5744_v1  ;;  %v389_v25 = vpack.c.bf16 %v357_v24, %v357_v24  ;;  %v349_v26 = vld [vmem:[%s5636_s25 + $0xc8] sm:$0xff]  ;;  %v352_v42 = vld [vmem:[%s5636_s25 + $0xf0] sm:$0xff] }
  0x28   : > { %v5281_v8 = vld [vmem:[%s8094_s1 + $0x20] sm:$0xff]  ;;  %v380_v11 = vpack.c.bf16 %v348_v6, %v348_v6  ;;  %1040 = vst.msk [vmem:[#allocation2 + $0x1c] sm:$0xf] %vm396_vm0, %v5762_v14  ;;  %v358_v43 = vld [vmem:[%s5636_s25 + $0x138] sm:$0xff]  ;;  %v384_v49 = vpack.c.bf16 %v352_v42, %v352_v42  ;;  %v360_v55 = vld [vmem:[%s5636_s25 + $0x150] sm:$0xff] }
  0x29   : > { %v429_v13 = vld [vmem:[%s5636_s25 + $0x1] sm:$0xff]  ;;  %5338 = vmatpush.bf16.msra.mxu2 %v5281_v8  ;;  %421 = vst.msk [vmem:[#allocation2 + $0x1e0] sm:$0xf] %vm396_vm0, %v388_v9  ;;  %5339 = vmatpush.bf16.msra.mxu3 %v5281_v8  ;;  %v5300_v52 = vld [vmem:[%s8094_s1 + $0xb8] sm:$0xff]  ;;  %v5307_v63 = vld [vmem:[%s8094_s1 + $0xf0] sm:$0xff] }
  0x2a   : > { %413 = vst.msk [vmem:[#allocation2 + $0x140] sm:$0xf] %vm396_vm0, %v380_v11  ;;  %5337 = vmatpush.bf16.msra.mxu1 %v5281_v8  ;;  %v461_v19 = vpack.c.bf16 %v429_v13, %v429_v13  ;;  %2584 = vmatpush.bf16.msra.mxu0 %v5281_v8  ;;  %v351_v30 = vld [vmem:[%s5636_s25 + $0xe0] sm:$0xff]  ;;  %v361_v57 = vld [vmem:[%s5636_s25 + $0x158] sm:$0xff]  ;;  %v355_v6 = vld [vmem:[%s5636_s25 + $0x110] sm:$0xff] }
  0x2b   : > { %1043 = vst.msk [vmem:[#allocation2 + $0x58] sm:$0xf] %vm396_vm0, %v5704_v45  ;;  %v383_v32 = vpack.c.bf16 %v351_v30, %v351_v30  ;;  %v4393_v36 = vld [vmem:[%s5636_s25 + $0x82] sm:$0xff]  ;;  %v353_v58 = vld [vmem:[%s5636_s25 + $0xf8] sm:$0xff]  ;;  %v393_v60 = vpack.c.bf16 %v361_v57, %v361_v57  ;;  %v387_v8 = vpack.c.bf16 %v355_v6, %v355_v6 }
  0x2c   : > { %1045 = vst.msk [vmem:[#allocation2 + $0x80] sm:$0xf] %vm396_vm0, %v5718_v53  ;;  %v359_v38 = vld [vmem:[%s5636_s25 + $0x140] sm:$0xff]  ;;  %v1112_v44 = vpack.c.bf16 %v4393_v36, %v4393_v36  ;;  %v4394_v0 = vld [vmem:[%s5636_s25 + $0x92] sm:$0xff]  ;;  %v362_v9 = vld [vmem:[%s5636_s25 + $0x168] sm:$0xff] }
  0x2d   : > { %579 = vrot.lane.b32.xlu1 %v488_v15, %s5530_s26  ;;  %565 = vrot.lane.b32.xlu2 %v5662_v17, %s5530_s26  ;;  %v430_v15 = vld [vmem:[%s5636_s25 + $0x9] sm:$0xff]  ;;  %422 = vst.msk [vmem:[#allocation2 + $0x1f4] sm:$0xf] %vm396_vm0, %v389_v25  ;;  %v394_v13 = vpack.c.bf16 %v362_v9, %v362_v9  ;;  %v5305_v30 = vld [vmem:[%s8094_s1 + $0xe0] sm:$0xff] }
  0x2e   : > { %577 = vrot.lane.b32.xlu0 %v487_v16, %s5530_s26  ;;  %v350_v16 = vld [vmem:[%s5636_s25 + $0xd8] sm:$0xff]  ;;  %416 = vst.msk [vmem:[#allocation2 + $0x17c] sm:$0xf] %vm396_vm0, %v383_v32  ;;  %v354_v11 = vld [vmem:[%s5636_s25 + $0x108] sm:$0xff] }
  0x2f   : > { %v382_v20 = vpack.c.bf16 %v350_v16, %v350_v16  ;;  %1046 = vst.msk [vmem:[#allocation2 + $0x94] sm:$0xf] %vm396_vm0, %v5726_v56  ;;  %v5298_v16 = vld [vmem:[%s8094_s1 + $0xa8] sm:$0xff] }
  0x30   : > { %1047 = vst.msk [vmem:[#allocation2 + $0xa8] sm:$0xf] %vm396_vm0, %v5751_v7 }
  0x31   : > { %415 = vst.msk [vmem:[#allocation2 + $0x168] sm:$0xf] %vm396_vm0, %v382_v20  ;;  %v4459_v20 = vld [vmem:[%s5636_s25 + $0xb1] sm:$0xff] }
  0x32   : > { %417 = vst.msk [vmem:[#allocation2 + $0x190] sm:$0xf] %vm396_vm0, %v384_v49  ;;  %v1435_v25 = vpack.c.bf16 %v4459_v20, %v4459_v20 }
  0x33   : > { %426 = vst.msk [vmem:[#allocation2 + $0x244] sm:$0xf] %vm396_vm0, %v393_v60 }
  0x34   : > { %420 = vst.msk [vmem:[#allocation2 + $0x1cc] sm:$0xf] %vm396_vm0, %v387_v8 }
  0x35   : > { %581 = vrot.lane.b32.xlu1 %v489_v21, %s5530_s26  ;;  %583 = vrot.lane.b32.xlu2 %v490_v23, %s5530_s26  ;;  %v5280_v21 = vld [vmem:[%s8094_s1 + $0x18] sm:$0xff]  ;;  %v5279_v23 = vld [vmem:[%s8094_s1 + $0x10] sm:$0xff]  ;;  %427 = vst.msk [vmem:[#allocation2 + $0x258] sm:$0xf] %vm396_vm0, %v394_v13 }
  0x36   : > { %567 = vrot.lane.b32.xlu0 %v482_v22, %s5530_s26  ;;  %v462_v22 = vpack.c.bf16 %v430_v15, %v430_v15  ;;  %5341 = vmatpush.bf16.msra.mxu2 %v5280_v21 }
  0x37   : > { %5342 = vmatpush.bf16.msra.mxu3 %v5280_v21  ;;  %5340 = vmatpush.bf16.msra.mxu1 %v5280_v21 }
  0x38   : > { %2585 = vmatpush.bf16.msra.mxu0 %v5280_v21 }
  0x3a   : > { %5344 = vmatpush.bf16.msra.mxu2 %v5279_v23 }
  0x3b   : > { %5345 = vmatpush.bf16.msra.mxu3 %v5279_v23  ;;  %5343 = vmatpush.bf16.msra.mxu1 %v5279_v23 }
  0x3c   : > { %2586 = vmatpush.bf16.msra.mxu0 %v5279_v23  ;;  %v363_v23 = vld [vmem:[%s5636_s25 + $0x170] sm:$0xff] }
  0x3d   : > { %571 = vrot.lane.b32.xlu1 %v484_v27, %s5530_s26  ;;  %585 = vrot.lane.b32.xlu2 %v491_v29, %s5530_s26  ;;  %v381_v27 = vpack.c.bf16 %v349_v26, %v349_v26  ;;  %v4392_v29 = vld [vmem:[%s5636_s25 + $0x7a] sm:$0xff] }
  0x3e   : > { %569 = vrot.lane.b32.xlu0 %v5677_v28, %s5530_s26 }
  0x3f   : > { %414 = vst.msk [vmem:[#allocation2 + $0x154] sm:$0xf] %vm396_vm0, %v381_v27  ;;  %v395_v27 = vpack.c.bf16 %v363_v23, %v363_v23 }
  0x41   : > { %428 = vst.msk [vmem:[#allocation2 + $0x26c] sm:$0xf] %vm396_vm0, %v395_v27 }
  0x45   : > { %1167 = vrot.lane.b32.xlu1 %v1103_v33, %s5530_s26  ;;  %1169 = vrot.lane.b32.xlu2 %v1104_v35, %s5530_s26  ;;  %v5278_v33 = vld [vmem:[%s8094_s1 + $0x8] sm:$0xff]  ;;  %v5277_v35 = vld [vmem:[%s8094_s1] sm:$0xff] }
  0x46   : > { %587 = vrot.lane.b32.xlu0 %v492_v34, %s5530_s26  ;;  %v1111_v34 = vpack.c.bf16 %v4392_v29, %v4392_v29  ;;  %5347 = vmatpush.bf16.msra.mxu2 %v5278_v33  ;;  %v5297_v29 = vld [vmem:[%s8094_s1 + $0xa0] sm:$0xff] }
  0x47   : > { %5348 = vmatpush.bf16.msra.mxu3 %v5278_v33  ;;  %5346 = vmatpush.bf16.msra.mxu1 %v5278_v33 }
  0x48   : > { %2587 = vmatpush.bf16.msra.mxu0 %v5278_v33  ;;  %v4321_v33 = vld [vmem:[%s5636_s25 + $0x20] sm:$0xff] }
  0x4a   : > { %5350 = vmatpush.bf16.msra.mxu2 %v5277_v35 }
  0x4b   : > { %5351 = vmatpush.bf16.msra.mxu3 %v5277_v35  ;;  %5349 = vmatpush.bf16.msra.mxu1 %v5277_v35 }
  0x4c   : > { %2588 = vmatpush.bf16.msra.mxu0 %v5277_v35  ;;  %v4417_v35 = vld [vmem:[%s5636_s25 + $0x38] sm:$0xff] }
  0x4d   : > { %1490 = vrot.lane.b32.xlu1 %v5692_v39, %s5530_s26  ;;  %1171 = vrot.lane.b32.xlu2 %v1105_v41, %s5530_s26  ;;  %v391_v41 = vpack.c.bf16 %v359_v38, %v359_v38 }
  0x4e   : > { %1488 = vrot.lane.b32.xlu0 %v5694_v40, %s5530_s26  ;;  %2759 = vmatpush.bf16.msrb.mxu2 %v5300_v52  ;;  %v5304_v52 = vld [vmem:[%s8094_s1 + $0xd8] sm:$0xff] }
  0x4f   : > { %424 = vst.msk [vmem:[#allocation2 + $0x21c] sm:$0xf] %vm396_vm0, %v391_v41 }
  0x55   : > { %1492 = vrot.lane.b32.xlu1 %v5704_v45, %s5530_s26  ;;  %1494 = vrot.lane.b32.xlu2 %v5706_v47, %s5530_s26 }
  0x56   : > { %1173 = vrot.lane.b32.xlu0 %v1106_v46, %s5530_s26  ;;  %v1432_v46 = vpack.c.bf16 %v4456_v37, %v4456_v37 }
  0x5d   : > { %1177 = vrot.lane.b32.xlu1 %v1108_v50, %s5530_s26  ;;  %1496 = vrot.lane.b32.xlu2 %v5718_v53, %s5530_s26  ;;  %v390_v50 = vpack.c.bf16 %v358_v43, %v358_v43 }
  0x5e   : > { %1175 = vrot.lane.b32.xlu0 %v1107_v51, %s5530_s26  ;;  %v442_v51 = vld [vmem:[%s5636_s25 + $0x99] sm:$0xff] }
  0x5f   : > { %v474_v54 = vpack.c.bf16 %v442_v51, %v442_v51  ;;  %423 = vst.msk [vmem:[#allocation2 + $0x208] sm:$0xf] %vm396_vm0, %v390_v50  ;;  %v5900_v50 = vpack.c.bf16 %v4417_v35, %v4417_v35 }
  0x61   : > { %1361 = vst.msk [vmem:[#allocation2 + $0x20] sm:$0xf] %vm396_vm0, %v5900_v50 }
  0x62   : > { %402 = vst.msk [vmem:[#allocation2 + $0x64] sm:$0xf] %vm396_vm0, %v5900_v50 }
  0x65   : > { %541 = vrot.lane.b32.xlu1 %v5718_v53, %s5530_s26  ;;  %543 = vrot.lane.b32.xlu2 %v5726_v56, %s5530_s26  ;;  %v5308_v53 = vld [vmem:[%s8094_s1 + $0xf8] sm:$0xff] }
  0x66   : > { %1498 = vrot.lane.b32.xlu0 %v5726_v56, %s5530_s26  ;;  %2848 = vmatpush.bf16.msrb.mxu3 %v5308_v53  ;;  %v392_v56 = vpack.c.bf16 %v360_v55, %v360_v55  ;;  %v4418_v53 = vld [vmem:[%s5636_s25 + $0x48] sm:$0xff]  ;;  %v4397_v55 = vld [vmem:[%s5636_s25 + $0xb2] sm:$0xff] }
  0x67   : > { %v1116_v60 = vpack.c.bf16 %v4397_v55, %v4397_v55 }
  0x68   : > { %425 = vst.msk [vmem:[#allocation2 + $0x230] sm:$0xf] %vm396_vm0, %v392_v56 }
  0x6a   : > { %2849 = vmatpush.bf16.msrb.mxu3 %v5307_v63  ;;  %v5295_v63 = vld [vmem:[%s8094_s1 + $0x90] sm:$0xff] }
  0x6d   : > { %1181 = vrot.lane.b32.xlu1 %v1110_v62, %s5530_s26  ;;  %1500 = vrot.lane.b32.xlu2 %v5751_v7, %s5530_s26  ;;  %v5299_v62 = vld [vmem:[%s8094_s1 + $0xb0] sm:$0xff] }
  0x6e   : > { %1179 = vrot.lane.b32.xlu0 %v1109_v61, %s5530_s26  ;;  %v385_v61 = vpack.c.bf16 %v353_v58, %v353_v58  ;;  %2760 = vmatpush.bf16.msrb.mxu2 %v5299_v62  ;;  %v5926_v58 = vpack.c.bf16 %v4418_v53, %v4418_v53 }
  0x70   : > { %418 = vst.msk [vmem:[#allocation2 + $0x1a4] sm:$0xf] %vm396_vm0, %v385_v61 }
  0x71   : > { %1362 = vst.msk [vmem:[#allocation2 + $0x34] sm:$0xf] %vm396_vm0, %v5926_v58 }
  0x72   : > { %2761 = vmatpush.bf16.msrb.mxu2 %v5298_v16  ;;  %403 = vst.msk [vmem:[#allocation2 + $0x78] sm:$0xf] %vm396_vm0, %v5926_v58  ;;  %v4421_v16 = vld [vmem:[%s5636_s25 + $0x68] sm:$0xff] }
  0x73   : > { %v5975_v20 = vpack.c.bf16 %v4421_v16, %v4421_v16 }
  0x75   : > { %525 = vrot.lane.b32.xlu1 %v461_v19, %s5530_s26  ;;  %527 = vrot.lane.b32.xlu2 %v462_v22, %s5530_s26  ;;  %v4458_v19 = vld [vmem:[%s5636_s25 + $0xa9] sm:$0xff]  ;;  %1365 = vst.msk [vmem:[#allocation2 + $0x70] sm:$0xf] %vm396_vm0, %v5975_v20 }
  0x76   : > { %1502 = vrot.lane.b32.xlu0 %v1431_v18, %s5530_s26  ;;  %v1434_v24 = vpack.c.bf16 %v4458_v19, %v4458_v19  ;;  %2762 = vmatpush.bf16.msrb.mxu2 %v5297_v29  ;;  %406 = vst.msk [vmem:[#allocation2 + $0xb4] sm:$0xf] %vm396_vm0, %v5975_v20 }
  0x77   : > { %v562_v31 = vpop.permute.xlu2 %561 }
  0x78   : > { %640 = vst.msk [vmem:[#allocation2 + $0x168] sm:$0xf] %vm621_vm1, %v562_v31  ;;  %v4320_v31 = vld [vmem:[%s5636_s25 + $0x18] sm:$0xff] }
  0x79   : > { %v5882_v32 = vpack.c.bf16 %v4320_v31, %v4320_v31 }
  0x7b   : > { %399 = vst.msk [vmem:[#allocation2 + $0x28] sm:$0xf] %vm396_vm0, %v5882_v32 }
  0x7d   : > { %547 = vrot.lane.b32.xlu1 %v1431_v18, %s5530_s26  ;;  %1183 = vrot.lane.b32.xlu2 %v1111_v34, %s5530_s26  ;;  %v5306_v18 = vld [vmem:[%s8094_s1 + $0xe8] sm:$0xff]  ;;  %v5886_v34 = vpack.c.bf16 %v4321_v33, %v4321_v33 }
  0x7e   : > { %545 = vrot.lane.b32.xlu0 %v5751_v7, %s5530_s26  ;;  %v4395_v7 = vld [vmem:[%s5636_s25 + $0x9a] sm:$0xff]  ;;  %2850 = vmatpush.bf16.msrb.mxu3 %v5306_v18 }
  0x7f   : > { %v564_v48 = vpop.permute.xlu2 %563  ;;  %v1114_v15 = vpack.c.bf16 %v4395_v7, %v4395_v7  ;;  %400 = vst.msk [vmem:[#allocation2 + $0x3c] sm:$0xf] %vm396_vm0, %v5886_v34  ;;  %v4694_v6 = vld [vmem:[#allocation2 + $0x168] sm:$0xf] }
  0x80   : > { %641 = vst.msk [vmem:[#allocation2 + $0x17c] sm:$0xf] %vm621_vm1, %v564_v48 }
  0x82   : > { %2851 = vmatpush.bf16.msrb.mxu3 %v5305_v30  ;;  %v4422_v30 = vld [vmem:[%s5636_s25 + $0x78] sm:$0xff] }
  0x85   : > { %1504 = vrot.lane.b32.xlu1 %v1432_v46, %s5530_s26  ;;  %1506 = vrot.lane.b32.xlu2 %v474_v54, %s5530_s26 }
  0x86   : > { %1185 = vrot.lane.b32.xlu0 %v1112_v44, %s5530_s26  ;;  %2852 = vmatpush.bf16.msrb.mxu3 %v5304_v52  ;;  %v4463_v52 = vld [vmem:[%s5636_s25 + $0xe1] sm:$0xff] }
  0x87   : > { %v566_v59 = vpop.permute.xlu2 %565  ;;  %v5244_v7 = vld [vmem:[#allocation2 + $0x178] sm:$0xf0] }
  0x88   : > { %642 = vst.msk [vmem:[#allocation2 + $0x190] sm:$0xf] %vm621_vm1, %v566_v59 }
  0x8d   : > { %531 = vrot.lane.b32.xlu1 %v5762_v14, %s5530_s26  ;;  %549 = vrot.lane.b32.xlu2 %v1432_v46, %s5530_s26  ;;  %v386_v14 = vpack.c.bf16 %v354_v11, %v354_v11  ;;  %v4416_v46 = vld [vmem:[%s5636_s25 + $0x30] sm:$0xff] }
  0x8e   : > { %529 = vrot.lane.b32.xlu0 %v5744_v1, %s5530_s26  ;;  %v1113_v1 = vpack.c.bf16 %v4394_v0, %v4394_v0  ;;  %v5903_v51 = vpack.c.bf16 %v4416_v46, %v4416_v46  ;;  %v5303_v0 = vld [vmem:[%s8094_s1 + $0xd0] sm:$0xff]  ;;  %v333_v46 = vld [vmem:[%s5636_s25 + $0x8] sm:$0xff] }
  0x8f   : > { %v574_v2 = vpop.permute.xlu1 %573  ;;  %v584_v12 = vpop.permute.xlu2 %583  ;;  %419 = vst.msk [vmem:[#allocation2 + $0x1b8] sm:$0xf] %vm396_vm0, %v386_v14  ;;  %2853 = vmatpush.bf16.msrb.mxu3 %v5303_v0  ;;  %v4714_v23 = vld [vmem:[#allocation2 + $0x190] sm:$0xf]  ;;  %v4400_v0 = vld [vmem:[%s5636_s25 + $0xda] sm:$0xff] }
  0x90   : > { %v558_v4 = vpop.permute.xlu0 %557  ;;  %646 = vst.msk [vmem:[#allocation2 + $0x1e0] sm:$0xf] %vm621_vm1, %v574_v2 }
  0x91   : > { %638 = vst.msk [vmem:[#allocation2 + $0x140] sm:$0xf] %vm621_vm1, %v558_v4 }
  0x92   : > { %651 = vst.msk [vmem:[#allocation2 + $0x244] sm:$0xf] %vm621_vm1, %v584_v12  ;;  %v4695_v12 = vor.u32 %v5244_v7, %v4694_v6 }
  0x93   : > { %1360 = vst.msk [vmem:[#allocation2 + $0xc] sm:$0xf] %vm396_vm0, %v5903_v51 }
  0x94   : > { %401 = vst.msk [vmem:[#allocation2 + $0x50] sm:$0xf] %vm396_vm0, %v5903_v51 }
  0x95   : > { %1187 = vrot.lane.b32.xlu1 %v1113_v1, %s5530_s26  ;;  %1189 = vrot.lane.b32.xlu2 %v1114_v15, %s5530_s26  ;;  %v4420_v1 = vld [vmem:[%s5636_s25 + $0x60] sm:$0xff]  ;;  %v5302_v15 = vld [vmem:[%s8094_s1 + $0xc8] sm:$0xff] }
  0x96   : > { %551 = vrot.lane.b32.xlu0 %v474_v54, %s5530_s26  ;;  %v4396_v54 = vld [vmem:[%s5636_s25 + $0xaa] sm:$0xff]  ;;  %v5955_v14 = vpack.c.bf16 %v4420_v1, %v4420_v1  ;;  %2854 = vmatpush.bf16.msrb.mxu3 %v5302_v15 }
  0x97   : > { %v576_v21 = vpop.permute.xlu1 %575  ;;  %v586_v26 = vpop.permute.xlu2 %585  ;;  %v4754_v41 = vld [vmem:[#allocation2 + $0x1e0] sm:$0xf]  ;;  %v1115_v59 = vpack.c.bf16 %v4396_v54, %v4396_v54  ;;  %v1439_v54 = vpack.c.bf16 %v4463_v52, %v4463_v52 }
  0x98   : > { %v560_v22 = vpop.permute.xlu0 %559  ;;  %647 = vst.msk [vmem:[#allocation2 + $0x1f4] sm:$0xf] %vm621_vm1, %v576_v21  ;;  %v4674_v38 = vld [vmem:[#allocation2 + $0x140] sm:$0xf] }
  0x99   : > { %639 = vst.msk [vmem:[#allocation2 + $0x154] sm:$0xf] %vm621_vm1, %v560_v22  ;;  %v5269_v22 = vld [vmem:[#allocation2 + $0x240] sm:$0xf0] }
  0x9a   : > { %652 = vst.msk [vmem:[#allocation2 + $0x258] sm:$0xf] %vm621_vm1, %v586_v26  ;;  %v4399_v26 = vld [vmem:[%s5636_s25 + $0xca] sm:$0xff] }
  0x9b   : > { %1364 = vst.msk [vmem:[#allocation2 + $0x5c] sm:$0xf] %vm396_vm0, %v5955_v14  ;;  %v1118_v33 = vpack.c.bf16 %v4399_v26, %v4399_v26  ;;  %v4402_v26 = vld [vmem:[%s5636_s25 + $0xf2] sm:$0xff] }
  0x9c   : > { %405 = vst.msk [vmem:[#allocation2 + $0xa0] sm:$0xf] %vm396_vm0, %v5955_v14 }
  0x9d   : > { %1510 = vrot.lane.b32.xlu1 %v1435_v25, %s5530_s26  ;;  %533 = vrot.lane.b32.xlu2 %v5694_v40, %s5530_s26  ;;  %v5296_v40 = vld [vmem:[%s8094_s1 + $0x98] sm:$0xff]  ;;  %1056 = vst.msk [vmem:[#allocation2 + $0x15c] sm:$0xf] %vm396_vm0, %v1439_v54 }
  0x9e   : > { %1508 = vrot.lane.b32.xlu0 %v1434_v24, %s5530_s26  ;;  %2763 = vmatpush.bf16.msrb.mxu2 %v5296_v40 }
  0x9f   : > { %v580_v36 = vpop.permute.xlu1 %579  ;;  %v5259_v42 = vld [vmem:[#allocation2 + $0x1f0] sm:$0xf0]  ;;  %v1170_v49 = vpop.permute.xlu2 %1169 }
  0xa0   : > { %v578_v37 = vpop.permute.xlu0 %577  ;;  %649 = vst.msk [vmem:[#allocation2 + $0x21c] sm:$0xf] %vm621_vm1, %v580_v36  ;;  %v5239_v43 = vld [vmem:[#allocation2 + $0x150] sm:$0xf0]  ;;  %v4755_v44 = vor.u32 %v5259_v42, %v4754_v41  ;;  %v5320_v36 = vld [vmem:[%s8098_s5 + $0x18] sm:$0xff]  ;;  %v4423_v41 = vld [vmem:[%s5636_s25 + $0x80] sm:$0xff] }
  0xa1   : > { %648 = vst.msk [vmem:[#allocation2 + $0x208] sm:$0xf] %vm621_vm1, %v578_v37  ;;  %v4675_v48 = vor.u32 %v5239_v43, %v4674_v38  ;;  %v4398_v37 = vld [vmem:[%s5636_s25 + $0xc2] sm:$0xff]  ;;  %v4814_v53 = vld [vmem:[#allocation2 + $0x258] sm:$0xf] }
  0xa2   : > { %2649 = vmatmul.bf16.vlgmr.msra.gmra.mxu3 %v4755_v44  ;;  %1264 = vst.msk [vmem:[#allocation2 + $0x1c] sm:$0xf] %vm621_vm1, %v1170_v49  ;;  %2764 = vmatpush.bf16.msrb.mxu2 %v5295_v63  ;;  %v1117_v38 = vpack.c.bf16 %v4398_v37, %v4398_v37  ;;  %v6017_v44 = vpack.c.bf16 %v4423_v41, %v4423_v41 }
  0xa3   : > { %2629 = vmatmul.bf16.vlgmr.msra.gmra.mxu2 %v4675_v48  ;;  %v332_v48 = vld [vmem:[%s5636_s25] sm:$0xff] }
  0xa4   : > { %v364_v40 = vpack.c.bf16 %v332_v48, %v332_v48  ;;  %1367 = vst.msk [vmem:[#allocation2 + $0x98] sm:$0xf] %vm396_vm0, %v6017_v44  ;;  %v4468_v48 = vld [vmem:[%s5636_s25 + $0x121] sm:$0xff] }
  0xa5   : > { %553 = vrot.lane.b32.xlu1 %v1434_v24, %s5530_s26  ;;  %555 = vrot.lane.b32.xlu2 %v1435_v25, %s5530_s26  ;;  %408 = vst.msk [vmem:[#allocation2 + $0xdc] sm:$0xf] %vm396_vm0, %v6017_v44 }
  0xa6   : > { %535 = vrot.lane.b32.xlu0 %v5692_v39, %s5530_s26  ;;  %v4419_v39 = vld [vmem:[%s5636_s25 + $0x50] sm:$0xff]  ;;  %397 = vst.msk [vmem:[#allocation2] sm:$0xf] %vm396_vm0, %v364_v40 }
  0xa7   : > { %v582_v56 = vpop.permute.xlu1 %581  ;;  %v1172_v61 = vpop.permute.xlu2 %1171  ;;  %v5931_v62 = vpack.c.bf16 %v4419_v39, %v4419_v39  ;;  %v5264_v4 = vld [vmem:[#allocation2 + $0x218] sm:$0xf0] }
  0xa8   : > { %v568_v57 = vpop.permute.xlu0 %567  ;;  %650 = vst.msk [vmem:[#allocation2 + $0x230] sm:$0xf] %vm621_vm1, %v582_v56  ;;  %v4774_v2 = vld [vmem:[#allocation2 + $0x208] sm:$0xf] }
  0xa9   : > { %643 = vst.msk [vmem:[#allocation2 + $0x1a4] sm:$0xf] %vm621_vm1, %v568_v57  ;;  %v4775_v8 = vor.u32 %v5264_v4, %v4774_v2  ;;  %v4401_v56 = vld [vmem:[%s5636_s25 + $0xe2] sm:$0xff]  ;;  %v1119_v2 = vpack.c.bf16 %v4400_v0, %v4400_v0  ;;  %v5200_v15 = vld [vmem:[#allocation2 + $0x18] sm:$0xf0] }
  0xaa   : > { %1265 = vst.msk [vmem:[#allocation2 + $0x30] sm:$0xf] %vm621_vm1, %v1172_v61  ;;  %v1120_v61 = vpack.c.bf16 %v4401_v56, %v4401_v56  ;;  %v4361_v4 = vld [vmem:[%s5636_s25 + $0x81] sm:$0xff]  ;;  %v1444_v56 = vpack.c.bf16 %v4468_v48, %v4468_v48  ;;  %v5288_v48 = vld [vmem:[%s8094_s1 + $0x58] sm:$0xff] }
  0xab   : > { %1363 = vst.msk [vmem:[#allocation2 + $0x48] sm:$0xf] %vm396_vm0, %v5931_v62 }
  0xac   : > { %404 = vst.msk [vmem:[#allocation2 + $0x8c] sm:$0xf] %vm396_vm0, %v5931_v62 }
  0xad   : > { %1193 = vrot.lane.b32.xlu1 %v1116_v60, %s5530_s26  ;;  %1512 = vrot.lane.b32.xlu2 %v5640_v3, %s5530_s26  ;;  %v5294_v3 = vld [vmem:[%s8094_s1 + $0x88] sm:$0xff] }
  0xae   : > { %1191 = vrot.lane.b32.xlu0 %v1115_v59, %s5530_s26  ;;  %2765 = vmatpush.bf16.msrb.mxu2 %v5294_v3 }
  0xaf   : > { %v572_v9 = vpop.permute.xlu1 %571  ;;  %v1495_v13 = vpop.permute.xlu2 %1494 }
  0xb0   : > { %v570_v11 = vpop.permute.xlu0 %569  ;;  %645 = vst.msk [vmem:[#allocation2 + $0x1cc] sm:$0xf] %vm621_vm1, %v572_v9  ;;  %v5249_v24 = vld [vmem:[#allocation2 + $0x1a0] sm:$0xf0]  ;;  %v4425_v9 = vld [vmem:[%s5636_s25 + $0x98] sm:$0xff] }
  0xb1   : > { %644 = vst.msk [vmem:[#allocation2 + $0x1b8] sm:$0xf] %vm621_vm1, %v570_v11  ;;  %v4715_v31 = vor.u32 %v5249_v24, %v4714_v23  ;;  %v4424_v11 = vld [vmem:[%s5636_s25 + $0x90] sm:$0xff] }
  0xb2   : > { %2654 = vmatmul.bf16.gmra.mxu3 %v4775_v8  ;;  %1587 = vst.msk [vmem:[#allocation2 + $0x48] sm:$0xf] %vm621_vm1, %v1495_v13  ;;  %v1016_v8 = vpack.c.bf16 %v4361_v4, %v4361_v4  ;;  %v6053_v13 = vpack.c.bf16 %v4424_v11, %v4424_v11  ;;  %v4542_v37 = vld [vmem:[#allocation2 + $0x30] sm:$0xf] }
  0xb3   : > { %2634 = vmatmul.bf16.gmra.mxu2 %v4695_v12  ;;  %v6051_v12 = vpack.c.bf16 %v4425_v9, %v4425_v9  ;;  %v5291_v9 = vld [vmem:[%s8094_s1 + $0x70] sm:$0xff] }
  0xb4   : > { %1048 = vst.msk [vmem:[#allocation2 + $0xbc] sm:$0xf] %vm396_vm0, %v1016_v8  ;;  %v4469_v11 = vld [vmem:[%s5636_s25 + $0x129] sm:$0xff] }
  0xb5   : > { %537 = vrot.lane.b32.xlu1 %v5704_v45, %s5530_s26  ;;  %539 = vrot.lane.b32.xlu2 %v5706_v47, %s5530_s26  ;;  %v5301_v45 = vld [vmem:[%s8094_s1 + $0xc0] sm:$0xff]  ;;  %v4794_v47 = vld [vmem:[#allocation2 + $0x230] sm:$0xf]  ;;  %1369 = vst.msk [vmem:[#allocation2 + $0xc0] sm:$0xf] %vm396_vm0, %v6051_v12 }
  0xb6   : > { %1514 = vrot.lane.b32.xlu0 %v5653_v10, %s5530_s26  ;;  %v5293_v10 = vld [vmem:[%s8094_s1 + $0x80] sm:$0xff]  ;;  %2855 = vmatpush.bf16.msrb.mxu3 %v5301_v45  ;;  %v4795_v25 = vor.u32 %v5269_v22, %v4794_v47  ;;  %1368 = vst.msk [vmem:[#allocation2 + $0xac] sm:$0xf] %vm396_vm0, %v6053_v13 }
  0xb7   : > { %v1168_v18 = vpop.permute.xlu1 %1167  ;;  %v1497_v21 = vpop.permute.xlu2 %1496  ;;  %2766 = vmatpush.bf16.msrb.mxu2 %v5293_v10  ;;  %v5254_v39 = vld [vmem:[#allocation2 + $0x1c8] sm:$0xf0]  ;;  %409 = vst.msk [vmem:[#allocation2 + $0xf0] sm:$0xf] %vm396_vm0, %v6053_v13 }
  0xb8   : > { %v588_v19 = vpop.permute.xlu0 %587  ;;  %1263 = vst.msk [vmem:[#allocation2 + $0x8] sm:$0xf] %vm621_vm1, %v1168_v18  ;;  %v4734_v57 = vld [vmem:[#allocation2 + $0x1b8] sm:$0xf] }
  0xb9   : > { %653 = vst.msk [vmem:[#allocation2 + $0x26c] sm:$0xf] %vm621_vm1, %v588_v19 }
  0xba   : > { %1588 = vst.msk [vmem:[#allocation2 + $0x5c] sm:$0xf] %vm621_vm1, %v1497_v21  ;;  %3532 = vmatpush.bf16.msra.mxu3 %v5320_v36  ;;  %v4403_v21 = vld [vmem:[%s5636_s25 + $0xfa] sm:$0xff] }
  0xbb   : > { %410 = vst.msk [vmem:[#allocation2 + $0x104] sm:$0xf] %vm396_vm0, %v6051_v12  ;;  %v1122_v23 = vpack.c.bf16 %v4403_v21, %v4403_v21  ;;  %v4470_v21 = vld [vmem:[%s5636_s25 + $0x139] sm:$0xff] }
  0xbd   : > { %849 = vrot.lane.b32.xlu1 %v5886_v34, %s5530_s26  ;;  %v5324_v34 = vld [vmem:[%s8098_s5 + $0x38] sm:$0xff]  ;;  %1195 = vrot.lane.b32.xlu2 %v1117_v38, %s5530_s26  ;;  %v4544_v38 = vld [vmem:[#allocation2 + $0x44] sm:$0xf0] }
  0xbe   : > { %847 = vrot.lane.b32.xlu0 %v5882_v32, %s5530_s26  ;;  %v5998_v32 = vpack.c.bf16 %v4422_v30, %v4422_v30  ;;  %3371 = vmatpush.bf16.msra.mxu2 %v5324_v34 }
  0xbf   : > { %v1491_v27 = vpop.permute.xlu1 %1490  ;;  %v544_v35 = vpop.permute.xlu2 %543  ;;  %v4522_v3 = vld [vmem:[#allocation2 + $0x8] sm:$0xf] }
  0xc0   : > { %v1489_v29 = vpop.permute.xlu0 %1488  ;;  %1585 = vst.msk [vmem:[#allocation2 + $0x20] sm:$0xf] %vm621_vm1, %v1491_v27  ;;  %v5274_v55 = vld [vmem:[#allocation2 + $0x268] sm:$0xf0]  ;;  %v4523_v22 = vor.u32 %v5200_v15, %v4522_v3  ;;  %v1121_v27 = vpack.c.bf16 %v4402_v26, %v4402_v26 }
  0xc1   : > { %1584 = vst.msk [vmem:[#allocation2 + $0xc] sm:$0xf] %vm621_vm1, %v1489_v29  ;;  %v5290_v26 = vld [vmem:[%s8094_s1 + $0x68] sm:$0xff] }
  0xc2   : > { %2659 = vmatmul.bf16.gmra.mxu3 %v4795_v25  ;;  %631 = vst.msk [vmem:[#allocation2 + $0xb4] sm:$0xf] %vm621_vm1, %v544_v35 }
  0xc3   : > { %2639 = vmatmul.bf16.gmra.mxu2 %v4715_v31  ;;  %1366 = vst.msk [vmem:[#allocation2 + $0x84] sm:$0xf] %vm396_vm0, %v5998_v32  ;;  %v4363_v31 = vld [vmem:[%s5636_s25 + $0x99] sm:$0xff] }
  0xc4   : > { %407 = vst.msk [vmem:[#allocation2 + $0xc8] sm:$0xf] %vm396_vm0, %v5998_v32  ;;  %v1018_v34 = vpack.c.bf16 %v4363_v31, %v4363_v31  ;;  %v4406_v31 = vld [vmem:[%s5636_s25 + $0x122] sm:$0xff] }
  0xc5   : > { %1516 = vrot.lane.b32.xlu1 %v5646_v5, %s5530_s26  ;;  %v365_v5 = vpack.c.bf16 %v333_v46, %v333_v46  ;;  %1518 = vrot.lane.b32.xlu2 %v1439_v54, %s5530_s26  ;;  %v4405_v46 = vld [vmem:[%s5636_s25 + $0x112] sm:$0xff] }
  0xc6   : > { %1197 = vrot.lane.b32.xlu0 %v1118_v33, %s5530_s26  ;;  %v4362_v33 = vld [vmem:[%s5636_s25 + $0x91] sm:$0xff]  ;;  %1050 = vst.msk [vmem:[#allocation2 + $0xe4] sm:$0xf] %vm396_vm0, %v1018_v34 }
  0xc7   : > { %v1493_v42 = vpop.permute.xlu1 %1492  ;;  %v1501_v49 = vpop.permute.xlu2 %1500  ;;  %398 = vst.msk [vmem:[#allocation2 + $0x14] sm:$0xf] %vm396_vm0, %v365_v5  ;;  %v4524_v19 = vld [vmem:[#allocation2 + $0x1c] sm:$0xf0]  ;;  %v1017_v36 = vpack.c.bf16 %v4362_v33, %v4362_v33  ;;  %v4426_v5 = vld [vmem:[%s5636_s25 + $0xa8] sm:$0xff]  ;;  %v1125_v33 = vpack.c.bf16 %v4406_v31, %v4406_v31 }
  0xc8   : > { %v1174_v43 = vpop.permute.xlu0 %1173  ;;  %1586 = vst.msk [vmem:[#allocation2 + $0x34] sm:$0xf] %vm621_vm1, %v1493_v42  ;;  %v5198_v18 = vld [vmem:[#allocation2 + $0xc] sm:$0xf] }
  0xc9   : > { %1266 = vst.msk [vmem:[#allocation2 + $0x44] sm:$0xf] %vm621_vm1, %v1174_v43  ;;  %v5219_v10 = vld [vmem:[#allocation2 + $0xb0] sm:$0xf0] }
  0xca   : > { %1590 = vst.msk [vmem:[#allocation2 + $0x84] sm:$0xf] %vm621_vm1, %v1501_v49 }
  0xcb   : > { %1049 = vst.msk [vmem:[#allocation2 + $0xd0] sm:$0xf] %vm396_vm0, %v1017_v36 }
  0xcd   : > { %853 = vrot.lane.b32.xlu1 %v5900_v50, %s5530_s26  ;;  %v4815_v50 = vor.u32 %v5274_v55, %v4814_v53  ;;  %1199 = vrot.lane.b32.xlu2 %v1119_v2, %s5530_s26  ;;  %v4427_v55 = vld [vmem:[%s5636_s25 + $0xb0] sm:$0xff] }
  0xce   : > { %851 = vrot.lane.b32.xlu0 %v5903_v51, %s5530_s26  ;;  %v4735_v51 = vor.u32 %v5254_v39, %v4734_v57 }
  0xcf   : > { %v1178_v59 = vpop.permute.xlu1 %1177  ;;  %v528_v63 = vpop.permute.xlu2 %527  ;;  %v5203_v43 = vld [vmem:[#allocation2 + $0x34] sm:$0xf] }
  0xd0   : > { %v1176_v60 = vpop.permute.xlu0 %1175  ;;  %1268 = vst.msk [vmem:[#allocation2 + $0x6c] sm:$0xf] %vm621_vm1, %v1178_v59  ;;  %v5205_v42 = vld [vmem:[#allocation2 + $0x40] sm:$0xf0]  ;;  %v6101_v59 = vpack.c.bf16 %v4426_v5, %v4426_v5 }
  0xd1   : > { %1267 = vst.msk [vmem:[#allocation2 + $0x58] sm:$0xf] %vm621_vm1, %v1176_v60  ;;  %v4543_v53 = vor.u32 %v5205_v42, %v4542_v37  ;;  %v5292_v60 = vld [vmem:[%s8094_s1 + $0x78] sm:$0xff]  ;;  %v5311_v37 = vld [vmem:[%s8094_s1 + $0x110] sm:$0xff]  ;;  %v4471_v5 = vld [vmem:[%s5636_s25 + $0x141] sm:$0xff] }
  0xd2   : > { %2664 = vmatmul.bf16.gmra.mxu3 %v4815_v50  ;;  %623 = vst.msk [vmem:[#allocation2 + $0x14] sm:$0xf] %vm621_vm1, %v528_v63  ;;  %v6107_v50 = vpack.c.bf16 %v4427_v55, %v4427_v55  ;;  %2670 = vmatpush.bf16.msrb.mxu1 %v5292_v60  ;;  %v5312_v63 = vld [vmem:[%s8094_s1 + $0x118] sm:$0xff]  ;;  %v654_v55 = vld [vmem:[%s5636_s25 + $0x2] sm:$0xff] }
  0xd3   : > { %2644 = vmatmul.bf16.gmra.mxu2 %v4735_v51  ;;  %1370 = vst.msk [vmem:[#allocation2 + $0xd4] sm:$0xf] %vm396_vm0, %v6101_v59  ;;  %v4404_v51 = vld [vmem:[%s5636_s25 + $0x10a] sm:$0xff]  ;;  %2941 = vmatpush.bf16.msrb.mxu0 %v5312_v63 }
  0xd4   : > { %1371 = vst.msk [vmem:[#allocation2 + $0xe8] sm:$0xf] %vm396_vm0, %v6107_v50 }
  0xd5   : > { %1520 = vrot.lane.b32.xlu1 %v5662_v17, %s5530_s26  ;;  %v4465_v17 = vld [vmem:[%s5636_s25 + $0xf9] sm:$0xff]  ;;  %412 = vst.msk [vmem:[#allocation2 + $0x12c] sm:$0xf] %vm396_vm0, %v6107_v50 }
  0xd6   : > { %1201 = vrot.lane.b32.xlu0 %v1120_v61, %s5530_s26  ;;  %v1441_v16 = vpack.c.bf16 %v4465_v17, %v4465_v17  ;;  %v1123_v61 = vpack.c.bf16 %v4404_v51, %v4404_v51  ;;  %411 = vst.msk [vmem:[#allocation2 + $0x118] sm:$0xf] %vm396_vm0, %v6101_v59  ;;  %2671 = vmatpush.bf16.msrb.mxu1 %v5291_v9  ;;  %v4408_v9 = vld [vmem:[%s5636_s25 + $0x13a] sm:$0xff] }
  0xd7   : > { %v542_v7 = vpop.permute.xlu1 %541  ;;  %v1184_v1 = vpop.permute.xlu2 %1183  ;;  %v1445_v17 = vpack.c.bf16 %v4469_v11, %v4469_v11  ;;  %v5210_v3 = vld [vmem:[#allocation2 + $0x68] sm:$0xf0]  ;;  %2942 = vmatpush.bf16.msrb.mxu0 %v5311_v37  ;;  %v1127_v11 = vpack.c.bf16 %v4408_v9, %v4408_v9  ;;  %v657_v37 = vld [vmem:[%s5636_s25 + $0x22] sm:$0xff] }
  0xd8   : > { %v1499_v6 = vpop.permute.xlu0 %1498  ;;  %630 = vst.msk [vmem:[#allocation2 + $0xa0] sm:$0xf] %vm621_vm1, %v542_v7  ;;  %1522 = vrot.lane.b32.xlu2 %v1441_v16, %s5530_s26 }
  0xd9   : > { %1589 = vst.msk [vmem:[#allocation2 + $0x70] sm:$0xf] %vm621_vm1, %v1499_v6  ;;  %v5199_v49 = vld [vmem:[#allocation2 + $0x10] sm:$0xf0] }
  0xda   : > { %1271 = vst.msk [vmem:[#allocation2 + $0xa8] sm:$0xf] %vm621_vm1, %v1184_v1  ;;  %v5208_v1 = vld [vmem:[#allocation2 + $0x5c] sm:$0xf]  ;;  %2672 = vmatpush.bf16.msrb.mxu1 %v5290_v26  ;;  %v4474_v26 = vld [vmem:[%s5636_s25 + $0x169] sm:$0xff] }
  0xdb   : > { %1058 = vst.msk [vmem:[#allocation2 + $0x184] sm:$0xf] %vm396_vm0, %v1441_v16  ;;  %v4364_v16 = vld [vmem:[%s5636_s25 + $0xa9] sm:$0xff] }
  0xdc   : > { %1062 = vst.msk [vmem:[#allocation2 + $0x1d4] sm:$0xf] %vm396_vm0, %v1445_v17 }
  0xdd   : > { %857 = vrot.lane.b32.xlu1 %v5931_v62, %s5530_s26 }
  0xde   : > { %855 = vrot.lane.b32.xlu0 %v5926_v58, %s5530_s26  ;;  %v4527_v58 = vor.u32 %v5198_v18, %v4524_v19  ;;  %v4562_v18 = vld [vmem:[#allocation2 + $0x58] sm:$0xf]  ;;  %v4407_v19 = vld [vmem:[%s5636_s25 + $0x12a] sm:$0xff] }
  0xdf   : > { %v1182_v47 = vpop.permute.xlu1 %1181  ;;  %v4594_v62 = vld [vmem:[#allocation2 + $0xa0] sm:$0xf]  ;;  %v1507_v25 = vpop.permute.xlu2 %1506 }
  0xe0   : > { %v1180_v45 = vpop.permute.xlu0 %1179  ;;  %1270 = vst.msk [vmem:[#allocation2 + $0x94] sm:$0xf] %vm621_vm1, %v1182_v47  ;;  %v4595_v24 = vor.u32 %v5219_v10, %v4594_v62  ;;  %1203 = vrot.lane.b32.xlu2 %v1121_v27, %s5530_s26  ;;  %v4564_v15 = vld [vmem:[#allocation2 + $0x6c] sm:$0xf0]  ;;  %v1019_v47 = vpack.c.bf16 %v4364_v16, %v4364_v16 }
  0xe1   : > { %1269 = vst.msk [vmem:[#allocation2 + $0x80] sm:$0xf] %vm621_vm1, %v1180_v45  ;;  %v4365_v62 = vld [vmem:[%s5636_s25 + $0xb1] sm:$0xff] }
  0xe2   : > { %2856 = vmatmul.bf16.vlgmr.msrb.gmra.mxu3 %v4527_v58  ;;  %1593 = vst.msk [vmem:[#allocation2 + $0xc0] sm:$0xf] %vm621_vm1, %v1507_v25  ;;  %2609 = vmatmul.bf16.vlgmr.msra.gmra.mxu1 %v4595_v24  ;;  %v4428_v58 = vld [vmem:[%s5636_s25 + $0xc0] sm:$0xff]  ;;  %v1020_v25 = vpack.c.bf16 %v4365_v62, %v4365_v62 }
  0xe3   : > { %2767 = vmatmul.bf16.vlgmr.msrb.gmra.mxu2 %v4523_v22  ;;  %v1126_v22 = vpack.c.bf16 %v4407_v19, %v4407_v19  ;;  %v6148_v27 = vpack.c.bf16 %v4428_v58, %v4428_v58  ;;  %1051 = vst.msk [vmem:[#allocation2 + $0xf8] sm:$0xf] %vm396_vm0, %v1019_v47  ;;  %v4367_v19 = vld [vmem:[%s5636_s25 + $0xc9] sm:$0xff] }
  0xe4   : > { %1052 = vst.msk [vmem:[#allocation2 + $0x10c] sm:$0xf] %vm396_vm0, %v1020_v25  ;;  %v4602_v58 = vld [vmem:[#allocation2 + $0xa8] sm:$0xf]  ;;  %v4411_v25 = vld [vmem:[%s5636_s25 + $0x15a] sm:$0xff] }
  0xe5   : > { %1524 = vrot.lane.b32.xlu1 %v5677_v28, %s5530_s26  ;;  %v4467_v28 = vld [vmem:[%s5636_s25 + $0x111] sm:$0xff]  ;;  %1372 = vst.msk [vmem:[#allocation2 + $0xfc] sm:$0xf] %vm396_vm0, %v6148_v27 }
  0xe6   : > { %1205 = vrot.lane.b32.xlu0 %v1122_v23, %s5530_s26  ;;  %v1443_v41 = vpack.c.bf16 %v4467_v28, %v4467_v28  ;;  %v1446_v23 = vpack.c.bf16 %v4470_v21, %v4470_v21  ;;  %v1022_v21 = vpack.c.bf16 %v4367_v19, %v4367_v19  ;;  %v4476_v19 = vld [vmem:[%s5636_s25 + $0x181] sm:$0xff] }
  0xe7   : > { %v526_v30 = vpop.permute.xlu1 %525  ;;  %v550_v35 = vpop.permute.xlu2 %549 }
  0xe8   : > { %v1503_v29 = vpop.permute.xlu0 %1502  ;;  %622 = vst.msk [vmem:[#allocation2] sm:$0xf] %vm621_vm1, %v526_v30  ;;  %1526 = vrot.lane.b32.xlu2 %v1443_v41, %s5530_s26  ;;  %v5319_v30 = vld [vmem:[%s8098_s5 + $0x10] sm:$0xff] }
  0xe9   : > { %1591 = vst.msk [vmem:[#allocation2 + $0x98] sm:$0xf] %vm621_vm1, %v1503_v29  ;;  %v5323_v29 = vld [vmem:[%s8098_s5 + $0x30] sm:$0xff]  ;;  %3533 = vmatpush.bf16.msra.mxu3 %v5319_v30 }
  0xea   : > { %634 = vst.msk [vmem:[#allocation2 + $0xf0] sm:$0xf] %vm621_vm1, %v550_v35  ;;  %3372 = vmatpush.bf16.msra.mxu2 %v5323_v29  ;;  %v5289_v35 = vld [vmem:[%s8094_s1 + $0x60] sm:$0xff] }
  0xeb   : > { %1060 = vst.msk [vmem:[#allocation2 + $0x1ac] sm:$0xf] %vm396_vm0, %v1443_v41  ;;  %2673 = vmatpush.bf16.msrb.mxu1 %v5289_v35  ;;  %v4366_v35 = vld [vmem:[%s5636_s25 + $0xc1] sm:$0xff] }
  0xec   : > { %1054 = vst.msk [vmem:[#allocation2 + $0x134] sm:$0xf] %vm396_vm0, %v1022_v21 }
  0xed   : > { %861 = vrot.lane.b32.xlu1 %v5975_v20, %s5530_s26  ;;  %v1124_v20 = vpack.c.bf16 %v4405_v46, %v4405_v46 }
  0xee   : > { %859 = vrot.lane.b32.xlu0 %v5955_v14, %s5530_s26  ;;  %v4547_v14 = vor.u32 %v5203_v43, %v4544_v38  ;;  %v4429_v38 = vld [vmem:[%s5636_s25 + $0xc8] sm:$0xff] }
  0xef   : > { %v548_v52 = vpop.permute.xlu1 %547  ;;  %v4514_v54 = vld [vmem:[#allocation2] sm:$0xf]  ;;  %v1190_v39 = vpop.permute.xlu2 %1189  ;;  %v6173_v46 = vpack.c.bf16 %v4429_v38, %v4429_v38  ;;  %2674 = vmatpush.bf16.msrb.mxu1 %v5288_v48 }
  0xf0   : > { %v546_v40 = vpop.permute.xlu0 %545  ;;  %633 = vst.msk [vmem:[#allocation2 + $0xdc] sm:$0xf] %vm621_vm1, %v548_v52  ;;  %v4515_v57 = vor.u32 %v5199_v49, %v4514_v54  ;;  %1207 = vrot.lane.b32.xlu2 %v1123_v61, %s5530_s26  ;;  %v5213_v49 = vld [vmem:[#allocation2 + $0x84] sm:$0xf]  ;;  %v5215_v52 = vld [vmem:[#allocation2 + $0x90] sm:$0xf0] }
  0xf1   : > { %632 = vst.msk [vmem:[#allocation2 + $0xc8] sm:$0xf] %vm621_vm1, %v546_v40  ;;  %v4582_v40 = vld [vmem:[#allocation2 + $0x80] sm:$0xf]  ;;  %v4634_v54 = vld [vmem:[#allocation2 + $0xf0] sm:$0xf] }
  0xf2   : > { %2861 = vmatmul.bf16.gmra.mxu3 %v4547_v14  ;;  %1274 = vst.msk [vmem:[#allocation2 + $0xe4] sm:$0xf] %vm621_vm1, %v1190_v39  ;;  %2589 = vmatmul.bf16.vlgmr.msra.gmra.mxu0 %v4515_v57  ;;  %v1447_v14 = vpack.c.bf16 %v4471_v5, %v4471_v5  ;;  %v4472_v57 = vld [vmem:[%s5636_s25 + $0x151] sm:$0xff]  ;;  %v1130_v5 = vpack.c.bf16 %v4411_v25, %v4411_v25 }
  0xf3   : > { %2772 = vmatmul.bf16.gmra.mxu2 %v4543_v53  ;;  %1373 = vst.msk [vmem:[#allocation2 + $0x110] sm:$0xf] %vm396_vm0, %v6173_v46  ;;  %v4584_v53 = vld [vmem:[#allocation2 + $0x94] sm:$0xf0]  ;;  %v5287_v39 = vld [vmem:[%s8094_s1 + $0x50] sm:$0xff] }
  0xf4   : > { %1064 = vst.msk [vmem:[#allocation2 + $0x1fc] sm:$0xf] %vm396_vm0, %v1447_v14  ;;  %v4587_v63 = vor.u32 %v5213_v49, %v4584_v53  ;;  %2675 = vmatpush.bf16.msrb.mxu1 %v5287_v39  ;;  %v4483_v39 = vld [vmem:[%s5636_s25 + $0x52] sm:$0xff] }
  0xf5   : > { %1528 = vrot.lane.b32.xlu1 %v1444_v56, %s5530_s26  ;;  %v4409_v56 = vld [vmem:[%s5636_s25 + $0x142] sm:$0xff] }
  0xf6   : > { %1209 = vrot.lane.b32.xlu0 %v1124_v20, %s5530_s26  ;;  %v655_v20 = vld [vmem:[%s5636_s25 + $0xa] sm:$0xff] }
  0xf7   : > { %v1505_v2 = vpop.permute.xlu1 %1504  ;;  %v5224_v6 = vld [vmem:[#allocation2 + $0xd8] sm:$0xf0]  ;;  %v534_v8 = vpop.permute.xlu2 %533 }
  0xf8   : > { %v1186_v0 = vpop.permute.xlu0 %1185  ;;  %v4614_v4 = vld [vmem:[#allocation2 + $0xc8] sm:$0xf]  ;;  %1592 = vst.msk [vmem:[#allocation2 + $0xac] sm:$0xf] %vm621_vm1, %v1505_v2  ;;  %1530 = vrot.lane.b32.xlu2 %v1445_v17, %s5530_s26  ;;  %v4583_v2 = vor.u32 %v5215_v52, %v4582_v40  ;;  %v4480_v17 = vld [vmem:[%s5636_s25 + $0x32] sm:$0xff]  ;;  %v1450_v40 = vpack.c.bf16 %v4474_v26, %v4474_v26 }
  0xf9   : > { %1272 = vst.msk [vmem:[#allocation2 + $0xbc] sm:$0xf] %vm621_vm1, %v1186_v0  ;;  %v4615_v7 = vor.u32 %v5224_v6, %v4614_v4  ;;  %v687_v0 = vpack.c.bf16 %v655_v20, %v655_v20  ;;  %v1128_v4 = vpack.c.bf16 %v4409_v56, %v4409_v56  ;;  %v1448_v6 = vpack.c.bf16 %v4472_v57, %v4472_v57  ;;  %v4482_v57 = vld [vmem:[%s5636_s25 + $0x4a] sm:$0xff] }
  0xfa   : > { %626 = vst.msk [vmem:[#allocation2 + $0x50] sm:$0xf] %vm621_vm1, %v534_v8  ;;  %v5286_v8 = vld [vmem:[%s8094_s1 + $0x48] sm:$0xff] }
  0xfb   : > { %2614 = vmatmul.bf16.gmra.mxu1 %v4615_v7  ;;  %719 = vst.msk [vmem:[#allocation2 + $0x18] sm:$0xf] %vm396_vm0, %v687_v0  ;;  %v1651_v0 = vpack.c.bf16 %v4483_v39, %v4483_v39 }
  0xfc   : > { %2676 = vmatpush.bf16.msrb.mxu1 %v5286_v8 }
  0xfd   : > { %865 = vrot.lane.b32.xlu1 %v6017_v44, %s5530_s26  ;;  %v4563_v44 = vor.u32 %v5210_v3, %v4562_v18  ;;  %v4481_v3 = vld [vmem:[%s5636_s25 + $0x3a] sm:$0xff]  ;;  %v5310_v18 = vld [vmem:[%s8094_s1 + $0x108] sm:$0xff]  ;;  %1683 = vst.msk [vmem:[#allocation2 + $0x4c] sm:$0xf] %vm396_vm0, %v1651_v0 }
  0xfe   : > { %863 = vrot.lane.b32.xlu0 %v5998_v32, %s5530_s26  ;;  %v4567_v32 = vor.u32 %v5208_v1, %v4564_v15  ;;  %v5285_v1 = vld [vmem:[%s8094_s1 + $0x40] sm:$0xff]  ;;  %2943 = vmatpush.bf16.msrb.mxu0 %v5310_v18  ;;  %v4413_v18 = vld [vmem:[%s5636_s25 + $0x172] sm:$0xff]  ;;  %725 = vst.msk [vmem:[#allocation2 + $0x90] sm:$0xf] %vm396_vm0, %v1651_v0 }
  0xff   : > { %v532_v45 = vpop.permute.xlu1 %531  ;;  %v556_v24 = vpop.permute.xlu2 %555 }
 0x100   : > { %v530_v10 = vpop.permute.xlu0 %529  ;;  %625 = vst.msk [vmem:[#allocation2 + $0x3c] sm:$0xf] %vm621_vm1, %v532_v45  ;;  %1211 = vrot.lane.b32.xlu2 %v1125_v33, %s5530_s26  ;;  %2677 = vmatpush.bf16.msrb.mxu1 %v5285_v1  ;;  %v1648_v45 = vpack.c.bf16 %v4480_v17, %v4480_v17  ;;  %v5220_v62 = vld [vmem:[#allocation2 + $0xb8] sm:$0xf0] }
 0x101   : > { %624 = vst.msk [vmem:[#allocation2 + $0x28] sm:$0xf] %vm621_vm1, %v530_v10  ;;  %v4430_v10 = vld [vmem:[%s5636_s25 + $0xd8] sm:$0xff]  ;;  %v4554_v31 = vld [vmem:[#allocation2 + $0x50] sm:$0xf] }
 0x102   : > { %2866 = vmatmul.bf16.gmra.mxu3 %v4567_v32  ;;  %637 = vst.msk [vmem:[#allocation2 + $0x12c] sm:$0xf] %vm621_vm1, %v556_v24  ;;  %v6219_v47 = vpack.c.bf16 %v4430_v10, %v4430_v10  ;;  %v1649_v32 = vpack.c.bf16 %v4481_v3, %v4481_v3  ;;  %v5218_v24 = vld [vmem:[#allocation2 + $0xac] sm:$0xf]  ;;  %v656_v33 = vld [vmem:[%s5636_s25 + $0x1a] sm:$0xff] }
 0x103   : > { %2777 = vmatmul.bf16.gmra.mxu2 %v4563_v44  ;;  %v4604_v44 = vld [vmem:[#allocation2 + $0xbc] sm:$0xf0]  ;;  %1680 = vst.msk [vmem:[#allocation2 + $0x10] sm:$0xf] %vm396_vm0, %v1648_v45 }
 0x104   : > { %1374 = vst.msk [vmem:[#allocation2 + $0x124] sm:$0xf] %vm396_vm0, %v6219_v47  ;;  %v4607_v48 = vor.u32 %v5218_v24, %v4604_v44  ;;  %v4368_v3 = vld [vmem:[%s5636_s25 + $0xd9] sm:$0xff]  ;;  %v1452_v44 = vpack.c.bf16 %v4476_v19, %v4476_v19  ;;  %v4487_v19 = vld [vmem:[%s5636_s25 + $0x82] sm:$0xff] }
 0x105   : > { %1532 = vrot.lane.b32.xlu1 %v1446_v23, %s5530_s26  ;;  %v4337_v23 = vld [vmem:[%s5636_s25 + $0xe0] sm:$0xff]  ;;  %1681 = vst.msk [vmem:[#allocation2 + $0x24] sm:$0xf] %vm396_vm0, %v1649_v32  ;;  %v1023_v21 = vpack.c.bf16 %v4368_v3, %v4368_v3 }
 0x106   : > { %1213 = vrot.lane.b32.xlu0 %v1126_v22, %s5530_s26  ;;  %v4473_v22 = vld [vmem:[%s5636_s25 + $0x159] sm:$0xff]  ;;  %v6228_v30 = vpack.c.bf16 %v4337_v23, %v4337_v23  ;;  %722 = vst.msk [vmem:[#allocation2 + $0x54] sm:$0xf] %vm396_vm0, %v1648_v45  ;;  %v4412_v23 = vld [vmem:[%s5636_s25 + $0x16a] sm:$0xff] }
 0x107   : > { %v1188_v36 = vpop.permute.xlu1 %1187  ;;  %v5204_v41 = vld [vmem:[#allocation2 + $0x38] sm:$0xf0]  ;;  %v1513_v43 = vpop.permute.xlu2 %1512  ;;  %v1449_v29 = vpack.c.bf16 %v4473_v22, %v4473_v22  ;;  %723 = vst.msk [vmem:[#allocation2 + $0x68] sm:$0xf] %vm396_vm0, %v1649_v32  ;;  %v1131_v24 = vpack.c.bf16 %v4412_v23, %v4412_v23 }
 0x108   : > { %v552_v34 = vpop.permute.xlu0 %551  ;;  %v4534_v28 = vld [vmem:[#allocation2 + $0x28] sm:$0xf]  ;;  %1273 = vst.msk [vmem:[#allocation2 + $0xd0] sm:$0xf] %vm621_vm1, %v1188_v36  ;;  %1534 = vrot.lane.b32.xlu2 %v1447_v14, %s5530_s26  ;;  %v5309_v36 = vld [vmem:[%s8094_s1 + $0x100] sm:$0xff]  ;;  %v689_v14 = vpack.c.bf16 %v657_v37, %v657_v37 }
 0x109   : > { %635 = vst.msk [vmem:[#allocation2 + $0x104] sm:$0xf] %vm621_vm1, %v552_v34  ;;  %v4535_v42 = vor.u32 %v5204_v41, %v4534_v28  ;;  %v5234_v34 = vld [vmem:[#allocation2 + $0x128] sm:$0xf0]  ;;  %v688_v28 = vpack.c.bf16 %v656_v33, %v656_v33  ;;  %2944 = vmatpush.bf16.msrb.mxu0 %v5309_v36 }
 0x10a   : > { %1596 = vst.msk [vmem:[#allocation2 + $0xfc] sm:$0xf] %vm621_vm1, %v1513_v43  ;;  %v4603_v43 = vor.u32 %v5220_v62, %v4602_v58  ;;  %v1132_v62 = vpack.c.bf16 %v4413_v18, %v4413_v18  ;;  %v4486_v18 = vld [vmem:[%s5636_s25 + $0x7a] sm:$0xff] }
 0x10b   : > { %2594 = vmatmul.bf16.gmra.mxu0 %v4535_v42  ;;  %1375 = vst.msk [vmem:[#allocation2 + $0x138] sm:$0xf] %vm396_vm0, %v6228_v30 }
 0x10c   : > { %720 = vst.msk [vmem:[#allocation2 + $0x2c] sm:$0xf] %vm396_vm0, %v688_v28  ;;  %v4434_v28 = vld [vmem:[%s5636_s25 + $0x108] sm:$0xff] }
 0x10d   : > { %869 = vrot.lane.b32.xlu1 %v6051_v12, %s5530_s26  ;;  %721 = vst.msk [vmem:[#allocation2 + $0x40] sm:$0xf] %vm396_vm0, %v689_v14 }
 0x10e   : > { %867 = vrot.lane.b32.xlu0 %v6053_v13, %s5530_s26  ;;  %v686_v13 = vpack.c.bf16 %v654_v55, %v654_v55  ;;  %1066 = vst.msk [vmem:[#allocation2 + $0x224] sm:$0xf] %vm396_vm0, %v1449_v29 }
 0x10f   : > { %v1511_v51 = vpop.permute.xlu1 %1510  ;;  %v540_v7 = vpop.permute.xlu2 %539  ;;  %1055 = vst.msk [vmem:[#allocation2 + $0x148] sm:$0xf] %vm396_vm0, %v1023_v21 }
 0x110   : > { %v1509_v60 = vpop.permute.xlu0 %1508  ;;  %v5229_v61 = vld [vmem:[#allocation2 + $0x100] sm:$0xf0]  ;;  %1595 = vst.msk [vmem:[#allocation2 + $0xe8] sm:$0xf] %vm621_vm1, %v1511_v51  ;;  %1215 = vrot.lane.b32.xlu2 %v1127_v11, %s5530_s26 }
 0x111   : > { %1594 = vst.msk [vmem:[#allocation2 + $0xd4] sm:$0xf] %vm621_vm1, %v1509_v60  ;;  %v4635_v12 = vor.u32 %v5229_v61, %v4634_v54  ;;  %v4410_v54 = vld [vmem:[%s5636_s25 + $0x152] sm:$0xff] }
 0x112   : > { %2871 = vmatmul.bf16.gmra.mxu3 %v4587_v63  ;;  %629 = vst.msk [vmem:[#allocation2 + $0x8c] sm:$0xf] %vm621_vm1, %v540_v7  ;;  %v1129_v55 = vpack.c.bf16 %v4410_v54, %v4410_v54  ;;  %v4432_v61 = vld [vmem:[%s5636_s25 + $0xf0] sm:$0xff]  ;;  %v5225_v7 = vld [vmem:[#allocation2 + $0xe0] sm:$0xf0] }
 0x113   : > { %2619 = vmatmul.bf16.gmra.mxu1 %v4635_v12  ;;  %2782 = vmatmul.bf16.gmra.mxu2 %v4583_v2  ;;  %718 = vst.msk [vmem:[#allocation2 + $0x4] sm:$0xf] %vm396_vm0, %v686_v13  ;;  %v1650_v13 = vpack.c.bf16 %v4482_v57, %v4482_v57  ;;  %v6267_v63 = vpack.c.bf16 %v4432_v61, %v4432_v61  ;;  %v4475_v2 = vld [vmem:[%s5636_s25 + $0x171] sm:$0xff] }
 0x114   : > { %v1451_v9 = vpack.c.bf16 %v4475_v2, %v4475_v2  ;;  %v4370_v57 = vld [vmem:[%s5636_s25 + $0xf1] sm:$0xff] }
 0x115   : > { %1536 = vrot.lane.b32.xlu1 %v1448_v6, %s5530_s26  ;;  %1376 = vst.msk [vmem:[#allocation2 + $0x14c] sm:$0xf] %vm396_vm0, %v6267_v63  ;;  %v4622_v6 = vld [vmem:[#allocation2 + $0xd0] sm:$0xf]  ;;  %v1025_v61 = vpack.c.bf16 %v4370_v57, %v4370_v57 }
 0x116   : > { %1217 = vrot.lane.b32.xlu0 %v1128_v4, %s5530_s26  ;;  %v4339_v4 = vld [vmem:[%s5636_s25 + $0xf8] sm:$0xff]  ;;  %1682 = vst.msk [vmem:[#allocation2 + $0x38] sm:$0xf] %vm396_vm0, %v1650_v13  ;;  %v4623_v58 = vor.u32 %v5225_v7, %v4622_v6  ;;  %v5322_v7 = vld [vmem:[%s8098_s5 + $0x28] sm:$0xff] }
 0x117   : > { %v554_v16 = vpop.permute.xlu1 %553  ;;  %v1196_v53 = vpop.permute.xlu2 %1195  ;;  %v6274_v11 = vpack.c.bf16 %v4339_v4, %v4339_v4  ;;  %v4624_v17 = vld [vmem:[#allocation2 + $0xe4] sm:$0xf0]  ;;  %724 = vst.msk [vmem:[#allocation2 + $0x7c] sm:$0xf] %vm396_vm0, %v1650_v13  ;;  %3373 = vmatpush.bf16.msra.mxu2 %v5322_v7 }
 0x118   : > { %v536_v15 = vpop.permute.xlu0 %535  ;;  %636 = vst.msk [vmem:[#allocation2 + $0x118] sm:$0xf] %vm621_vm1, %v554_v16  ;;  %1538 = vrot.lane.b32.xlu2 %v1449_v29, %s5530_s26  ;;  %v5223_v8 = vld [vmem:[#allocation2 + $0xd4] sm:$0xf]  ;;  %v4484_v29 = vld [vmem:[%s5636_s25 + $0x62] sm:$0xff] }
 0x119   : > { %627 = vst.msk [vmem:[#allocation2 + $0x64] sm:$0xf] %vm621_vm1, %v536_v15  ;;  %v5214_v16 = vld [vmem:[#allocation2 + $0x88] sm:$0xf0]  ;;  %v4627_v45 = vor.u32 %v5223_v8, %v4624_v17  ;;  %v1652_v37 = vpack.c.bf16 %v4484_v29, %v4484_v29  ;;  %v4479_v29 = vld [vmem:[%s5636_s25 + $0x1a1] sm:$0xff] }
 0x11a   : > { %1377 = vst.msk [vmem:[#allocation2 + $0x160] sm:$0xf] %vm396_vm0, %v6274_v11  ;;  %v5318_v8 = vld [vmem:[%s8098_s5 + $0x8] sm:$0xff] }
 0x11b   : > { %1068 = vst.msk [vmem:[#allocation2 + $0x24c] sm:$0xf] %vm396_vm0, %v1451_v9  ;;  %3534 = vmatpush.bf16.msra.mxu3 %v5318_v8 }
 0x11c   : > { %1684 = vst.msk [vmem:[#allocation2 + $0x60] sm:$0xf] %vm396_vm0, %v1652_v37 }
 0x11d   : > { %873 = vrot.lane.b32.xlu1 %v6107_v50, %s5530_s26  ;;  %v1021_v50 = vpack.c.bf16 %v4366_v35, %v4366_v35  ;;  %726 = vst.msk [vmem:[#allocation2 + $0xa4] sm:$0xf] %vm396_vm0, %v1652_v37 }
 0x11e   : > { %871 = vrot.lane.b32.xlu0 %v6101_v59, %s5530_s26  ;;  %1057 = vst.msk [vmem:[#allocation2 + $0x170] sm:$0xf] %vm396_vm0, %v1025_v61  ;;  %v4489_v61 = vld [vmem:[%s5636_s25 + $0x9a] sm:$0xff] }
 0x11f   : > { %v1194_v59 = vpop.permute.xlu1 %1193  ;;  %v4654_v49 = vld [vmem:[#allocation2 + $0x118] sm:$0xf]  ;;  %1053 = vst.msk [vmem:[#allocation2 + $0x120] sm:$0xf] %vm396_vm0, %v1021_v50  ;;  %v1519_v12 = vpop.permute.xlu2 %1518 }
 0x120   : > { %v1192_v38 = vpop.permute.xlu0 %1191  ;;  %v5209_v41 = vld [vmem:[#allocation2 + $0x60] sm:$0xf0]  ;;  %1276 = vst.msk [vmem:[#allocation2 + $0x10c] sm:$0xf] %vm621_vm1, %v1194_v59  ;;  %v4655_v52 = vor.u32 %v5234_v34, %v4654_v49  ;;  %1219 = vrot.lane.b32.xlu2 %v1129_v55, %s5530_s26  ;;  %v4477_v49 = vld [vmem:[%s5636_s25 + $0x189] sm:$0xff]  ;;  %v4478_v55 = vld [vmem:[%s5636_s25 + $0x199] sm:$0xff] }
 0x121   : > { %1275 = vst.msk [vmem:[#allocation2 + $0xf8] sm:$0xf] %vm621_vm1, %v1192_v38  ;;  %v4555_v42 = vor.u32 %v5209_v41, %v4554_v31  ;;  %v4485_v31 = vld [vmem:[%s5636_s25 + $0x6a] sm:$0xff]  ;;  %v6312_v41 = vpack.c.bf16 %v4434_v28, %v4434_v28  ;;  %v1454_v4 = vpack.c.bf16 %v4478_v55, %v4478_v55  ;;  %v4488_v55 = vld [vmem:[%s5636_s25 + $0x92] sm:$0xff] }
 0x122   : > { %2876 = vmatmul.bf16.gmra.mxu3 %v4607_v48  ;;  %1277 = vst.msk [vmem:[#allocation2 + $0x120] sm:$0xf] %vm621_vm1, %v1196_v53  ;;  %v1653_v50 = vpack.c.bf16 %v4485_v31, %v4485_v31  ;;  %v4341_v48 = vld [vmem:[%s5636_s25 + $0x110] sm:$0xff]  ;;  %v1453_v53 = vpack.c.bf16 %v4477_v49, %v4477_v49  ;;  %v4550_v31 = vld [vmem:[#allocation2 + $0x38] sm:$0xf] }
 0x123   : > { %2599 = vmatmul.bf16.gmra.mxu0 %v4555_v42  ;;  %2787 = vmatmul.bf16.gmra.mxu2 %v4603_v43  ;;  %1599 = vst.msk [vmem:[#allocation2 + $0x138] sm:$0xf] %vm621_vm1, %v1519_v12  ;;  %v5228_v42 = vld [vmem:[#allocation2 + $0xfc] sm:$0xf]  ;;  %v4530_v43 = vld [vmem:[#allocation2 + $0x10] sm:$0xf] }
 0x124   : > { %2624 = vmatmul.bf16.gmra.mxu1 %v4655_v52  ;;  %1378 = vst.msk [vmem:[#allocation2 + $0x174] sm:$0xf] %vm396_vm0, %v6312_v41  ;;  %v6320_v52 = vpack.c.bf16 %v4341_v48, %v4341_v48  ;;  %v4570_v7 = vld [vmem:[#allocation2 + $0x60] sm:$0xf] }
 0x125   : > { %1540 = vrot.lane.b32.xlu1 %v1450_v40, %s5530_s26  ;;  %v6254_v20 = vpop.f32.mrf.mxu3  ;;  %v4415_v40 = vld [vmem:[%s5636_s25 + $0x18a] sm:$0xff]  ;;  %1685 = vst.msk [vmem:[#allocation2 + $0x74] sm:$0xf] %vm396_vm0, %v1653_v50 }
 0x126   : > { %1221 = vrot.lane.b32.xlu0 %v1130_v5, %s5530_s26  ;;  %8176 = vst [vmem:[#allocation6_spill] sm:$0xff] %v6254_v20  ;;  %v6257_v56 = vpop.f32.mrf.mxu2  ;;  %v5201_v5 = vld [vmem:[#allocation2 + $0x20] sm:$0xf0]  ;;  %v1134_v2 = vpack.c.bf16 %v4415_v40, %v4415_v40 }
 0x127   : > { %8177 = vst [vmem:[#allocation7_spill] sm:$0xff] %v6257_v56  ;;  %v538_v51 = vpop.permute.xlu1 %537  ;;  %v1200_v22 = vpop.permute.xlu2 %1199  ;;  %v4531_v12 = vor.u32 %v5201_v5, %v4530_v43  ;;  %v4437_v5 = vld [vmem:[%s5636_s25 + $0x128] sm:$0xff] }
 0x128   : > { %v1515_v60 = vpop.permute.xlu0 %1514  ;;  %628 = vst.msk [vmem:[#allocation2 + $0x78] sm:$0xf] %vm621_vm1, %v538_v51  ;;  %1542 = vrot.lane.b32.xlu2 %v1451_v9, %s5530_s26  ;;  %v5230_v51 = vld [vmem:[#allocation2 + $0x108] sm:$0xf0]  ;;  %v4414_v9 = vld [vmem:[%s5636_s25 + $0x182] sm:$0xff] }
 0x129   : > { %1597 = vst.msk [vmem:[#allocation2 + $0x110] sm:$0xf] %vm621_vm1, %v1515_v60  ;;  %v4642_v60 = vld [vmem:[#allocation2 + $0xf8] sm:$0xf]  ;;  %v1133_v3 = vpack.c.bf16 %v4414_v9, %v4414_v9  ;;  %v4662_v37 = vld [vmem:[#allocation2 + $0x120] sm:$0xf] }
 0x12a   : > { %1279 = vst.msk [vmem:[#allocation2 + $0x148] sm:$0xf] %vm621_vm1, %v1200_v22  ;;  %v4643_v0 = vor.u32 %v5230_v51, %v4642_v60  ;;  %v1655_v22 = vpack.c.bf16 %v4487_v19, %v4487_v19  ;;  %v4664_v23 = vld [vmem:[#allocation2 + $0x134] sm:$0xf0] }
 0x12b   : > { %1379 = vst.msk [vmem:[#allocation2 + $0x188] sm:$0xf] %vm396_vm0, %v6320_v52 }
 0x12c   : > { %727 = vst.msk [vmem:[#allocation2 + $0xb8] sm:$0xf] %vm396_vm0, %v1653_v50  ;;  %v5211_v8 = vld [vmem:[#allocation2 + $0x70] sm:$0xf0] }
 0x12d   : > { %877 = vrot.lane.b32.xlu1 %v6173_v46, %s5530_s26  ;;  %v6281_v1 = vpop.f32.mrf.mxu3  ;;  %1070 = vst.msk [vmem:[#allocation2 + $0x274] sm:$0xf] %vm396_vm0, %v1453_v53 }
 0x12e   : > { %875 = vrot.lane.b32.xlu0 %v6148_v27, %s5530_s26  ;;  %8178 = vst [vmem:[#allocation8_spill] sm:$0xff] %v6281_v1  ;;  %v6285_v15 = vpop.f32.mrf.mxu2  ;;  %v4502_v1 = vld [vmem:[%s5636_s25 + $0x13a] sm:$0xff] }
 0x12f   : > { %8179 = vst [vmem:[#allocation9_spill] sm:$0xff] %v6285_v15  ;;  %v850_v27 = vpop.permute.xlu1 %849  ;;  %v4574_v46 = vld [vmem:[#allocation2 + $0x78] sm:$0xf] }
 0x130   : > { %v848_v10 = vpop.permute.xlu0 %847  ;;  %944 = vst.msk [vmem:[#allocation2 + $0x18] sm:$0xf] %vm621_vm1, %v850_v27  ;;  %v4575_v32 = vor.u32 %v5214_v16, %v4574_v46  ;;  %1223 = vrot.lane.b32.xlu2 %v1131_v24, %s5530_s26  ;;  %v4644_v54 = vld [vmem:[#allocation2 + $0x10c] sm:$0xf0] }
 0x131   : > { %943 = vst.msk [vmem:[#allocation2 + $0x4] sm:$0xf] %vm621_vm1, %v848_v10 }
 0x132   : > { %2881 = vmatmul.bf16.gmra.mxu3 %v4627_v45  ;;  %v1523_v59 = vpop.permute.xlu2 %1522  ;;  %v4436_v45 = vld [vmem:[%s5636_s25 + $0x120] sm:$0xff]  ;;  %1687 = vst.msk [vmem:[#allocation2 + $0x9c] sm:$0xf] %vm396_vm0, %v1655_v22 }
 0x133   : > { %2604 = vmatmul.bf16.gmra.mxu0 %v4575_v32  ;;  %2792 = vmatmul.bf16.gmra.mxu2 %v4623_v58  ;;  %1601 = vst.msk [vmem:[#allocation2 + $0x160] sm:$0xf] %vm621_vm1, %v1523_v59  ;;  %v1654_v32 = vpack.c.bf16 %v4486_v18, %v4486_v18  ;;  %v4374_v18 = vld [vmem:[%s5636_s25 + $0x121] sm:$0xff] }
 0x134   : > { %729 = vst.msk [vmem:[#allocation2 + $0xe0] sm:$0xf] %vm396_vm0, %v1655_v22 }
 0x135   : > { %1544 = vrot.lane.b32.xlu1 %v1452_v44, %s5530_s26  ;;  %v6301_v25 = vpop.f32.mrf.mxu3  ;;  %v1348_v44 = vpack.c.bf16 %v4436_v45, %v4436_v45  ;;  %1686 = vst.msk [vmem:[#allocation2 + $0x88] sm:$0xf] %vm396_vm0, %v1654_v32 }
 0x136   : > { %1225 = vrot.lane.b32.xlu0 %v1132_v62, %s5530_s26  ;;  %8180 = vst [vmem:[#allocation10_spill] sm:$0xff] %v6301_v25  ;;  %v6304_v26 = vpop.f32.mrf.mxu2 }
 0x137   : > { %8181 = vst [vmem:[#allocation11_spill] sm:$0xff] %v6304_v26  ;;  %v1517_v35 = vpop.permute.xlu1 %1516  ;;  %v4516_v36 = vld [vmem:[#allocation2 + $0x14] sm:$0xf0] }
 0x138   : > { %v1198_v33 = vpop.permute.xlu0 %1197  ;;  %v5197_v34 = vld [vmem:[#allocation2 + $0x4] sm:$0xf]  ;;  %1598 = vst.msk [vmem:[#allocation2 + $0x124] sm:$0xf] %vm621_vm1, %v1517_v35  ;;  %1546 = vrot.lane.b32.xlu2 %v1453_v53, %s5530_s26  ;;  %v1455_v35 = vpack.c.bf16 %v4479_v29, %v4479_v29  ;;  %v5326_v53 = vld [vmem:[%s8100_s7 + $0x8] sm:$0xff]  ;;  %v4491_v29 = vld [vmem:[%s5636_s25 + $0xb2] sm:$0xff] }
 0x139   : > { %1278 = vst.msk [vmem:[#allocation2 + $0x134] sm:$0xf] %vm621_vm1, %v1198_v33  ;;  %v4519_v38 = vor.u32 %v5197_v34, %v4516_v36  ;;  %v5206_v33 = vld [vmem:[#allocation2 + $0x48] sm:$0xf0]  ;;  %3776 = vmatpush.bf16.msra.mxu0 %v5326_v53 }
 0x13a   : > { %v1204_v6 = vpop.permute.xlu2 %1203  ;;  %1380 = vst.msk [vmem:[#allocation2 + $0x19c] sm:$0xf] %vm396_vm0, %v1348_v44  ;;  %v4372_v36 = vld [vmem:[%s5636_s25 + $0x109] sm:$0xff] }
 0x13b   : > { %2678 = vmatmul.bf16.vlgmr.msrb.gmra.mxu1 %v4519_v38  ;;  %1281 = vst.msk [vmem:[#allocation2 + $0x170] sm:$0xf] %vm621_vm1, %v1204_v6  ;;  %v1027_v50 = vpack.c.bf16 %v4372_v36, %v4372_v36  ;;  %v4345_v6 = vld [vmem:[%s5636_s25 + $0x140] sm:$0xff] }
 0x13c   : > { %728 = vst.msk [vmem:[#allocation2 + $0xcc] sm:$0xf] %vm396_vm0, %v1654_v32  ;;  %v808_v9 = vpack.c.bf16 %v4345_v6, %v4345_v6  ;;  %v4590_v53 = vld [vmem:[#allocation2 + $0x88] sm:$0xf] }
 0x13d   : > { %881 = vrot.lane.b32.xlu1 %v6228_v30, %s5530_s26  ;;  %v6327_v14 = vpop.f32.mrf.mxu3  ;;  %v4647_v30 = vor.u32 %v5228_v42, %v4644_v54  ;;  %1059 = vst.msk [vmem:[#allocation2 + $0x198] sm:$0xf] %vm396_vm0, %v1027_v50  ;;  %v1349_v54 = vpack.c.bf16 %v4437_v5, %v4437_v5 }
 0x13e   : > { %879 = vrot.lane.b32.xlu0 %v6219_v47, %s5530_s26  ;;  %8182 = vst [vmem:[#allocation12_spill] sm:$0xff] %v6327_v14  ;;  %v6332_v39 = vpop.f32.mrf.mxu2 }
 0x13f   : > { %8183 = vst [vmem:[#allocation13_spill] sm:$0xff] %v6332_v39  ;;  %v854_v47 = vpop.permute.xlu1 %853  ;;  %v5233_v24 = vld [vmem:[#allocation2 + $0x124] sm:$0xf] }
 0x140   : > { %v852_v13 = vpop.permute.xlu0 %851  ;;  %946 = vst.msk [vmem:[#allocation2 + $0x40] sm:$0xf] %vm621_vm1, %v854_v47  ;;  %1227 = vrot.lane.b32.xlu2 %v1133_v3, %s5530_s26  ;;  %v5235_v38 = vld [vmem:[#allocation2 + $0x130] sm:$0xf0]  ;;  %v4667_v59 = vor.u32 %v5233_v24, %v4664_v23  ;;  %v4490_v24 = vld [vmem:[%s5636_s25 + $0xaa] sm:$0xff] }
 0x141   : > { %945 = vst.msk [vmem:[#allocation2 + $0x2c] sm:$0xf] %vm621_vm1, %v852_v13  ;;  %v4438_v13 = vld [vmem:[%s5636_s25 + $0x138] sm:$0xff] }
 0x142   : > { %2886 = vmatmul.bf16.gmra.mxu3 %v4647_v30  ;;  %v1527_v62 = vpop.permute.xlu2 %1526  ;;  %v1350_v30 = vpack.c.bf16 %v4438_v13, %v4438_v13  ;;  %1381 = vst.msk [vmem:[#allocation2 + $0x1b0] sm:$0xf] %vm396_vm0, %v1349_v54 }
 0x143   : > { %2797 = vmatmul.bf16.gmra.mxu2 %v4643_v0  ;;  %4976 = vmatmul.msk.bf16.vlgmr.msrb.gmra.mxu0 %vm2532_vm2, %v4531_v12  ;;  %1603 = vst.msk [vmem:[#allocation2 + $0x188] sm:$0xf] %vm621_vm1, %v1527_v62  ;;  %v1656_v0 = vpack.c.bf16 %v4488_v55, %v4488_v55 }
 0x144   : > { %1382 = vst.msk [vmem:[#allocation2 + $0x1c4] sm:$0xf] %vm396_vm0, %v1350_v30 }
 0x145   : > { %1548 = vrot.lane.b32.xlu1 %v1454_v4, %s5530_s26  ;;  %v6353_v17 = vpop.f32.mrf.mxu3  ;;  %v1657_v4 = vpack.c.bf16 %v4489_v61, %v4489_v61  ;;  %1688 = vst.msk [vmem:[#allocation2 + $0xb0] sm:$0xf] %vm396_vm0, %v1656_v0  ;;  %v4702_v61 = vld [vmem:[#allocation2 + $0x170] sm:$0xf] }
 0x146   : > { %1229 = vrot.lane.b32.xlu0 %v1134_v2, %s5530_s26  ;;  %8184 = vst [vmem:[#allocation14_spill] sm:$0xff] %v6353_v17  ;;  %v6356_v16 = vpop.f32.mrf.mxu2  ;;  %v4684_v2 = vld [vmem:[#allocation2 + $0x15c] sm:$0xf0] }
 0x147   : > { %8185 = vst [vmem:[#allocation15_spill] sm:$0xff] %v6356_v16  ;;  %v1521_v10 = vpop.permute.xlu1 %1520  ;;  %v4536_v46 = vld [vmem:[#allocation2 + $0x3c] sm:$0xf0] }
 0x148   : > { %v1202_v21 = vpop.permute.xlu0 %1201  ;;  %v5202_v27 = vld [vmem:[#allocation2 + $0x2c] sm:$0xf]  ;;  %1600 = vst.msk [vmem:[#allocation2 + $0x14c] sm:$0xf] %vm621_vm1, %v1521_v10  ;;  %1550 = vrot.lane.b32.xlu2 %v1455_v35, %s5530_s26 }
 0x149   : > { %1280 = vst.msk [vmem:[#allocation2 + $0x15c] sm:$0xf] %vm621_vm1, %v1202_v21  ;;  %v4539_v58 = vor.u32 %v5202_v27, %v4536_v46  ;;  %v4682_v21 = vld [vmem:[#allocation2 + $0x148] sm:$0xf]  ;;  %v1029_v46 = vpack.c.bf16 %v4374_v18, %v4374_v18 }
 0x14a   : > { %v1208_v48 = vpop.permute.xlu2 %1207  ;;  %1689 = vst.msk [vmem:[#allocation2 + $0xc4] sm:$0xf] %vm396_vm0, %v1657_v4 }
 0x14b   : > { %2683 = vmatmul.bf16.gmra.mxu1 %v4539_v58  ;;  %1283 = vst.msk [vmem:[#allocation2 + $0x198] sm:$0xf] %vm621_vm1, %v1208_v48  ;;  %v4571_v58 = vor.u32 %v5211_v8, %v4570_v7  ;;  %v4347_v48 = vld [vmem:[%s5636_s25 + $0x158] sm:$0xff]  ;;  %v4492_v8 = vld [vmem:[%s5636_s25 + $0xc2] sm:$0xff] }
 0x14c   : > { %1383 = vst.msk [vmem:[#allocation2 + $0x1d8] sm:$0xf] %vm396_vm0, %v808_v9  ;;  %v810_v55 = vpack.c.bf16 %v4347_v48, %v4347_v48 }
 0x14d   : > { %885 = vrot.lane.b32.xlu1 %v6274_v11, %s5530_s26  ;;  %v6372_v34 = vpop.f32.mrf.mxu3  ;;  %v4663_v11 = vor.u32 %v5235_v38, %v4662_v37  ;;  %1061 = vst.msk [vmem:[#allocation2 + $0x1c0] sm:$0xf] %vm396_vm0, %v1029_v46  ;;  %v4440_v37 = vld [vmem:[%s5636_s25 + $0x150] sm:$0xff]  ;;  %v1658_v38 = vpack.c.bf16 %v4490_v24, %v4490_v24  ;;  %v4442_v46 = vld [vmem:[%s5636_s25 + $0x168] sm:$0xff] }
 0x14e   : > { %883 = vrot.lane.b32.xlu0 %v6267_v63, %s5530_s26  ;;  %8186 = vst [vmem:[#allocation16_spill] sm:$0xff] %v6372_v34  ;;  %v6376_v28 = vpop.f32.mrf.mxu2  ;;  %v4551_v63 = vor.u32 %v5206_v33, %v4550_v31 }
 0x14f   : > { %8187 = vst [vmem:[#allocation17_spill] sm:$0xff] %v6376_v28  ;;  %v858_v43 = vpop.permute.xlu1 %857 }
 0x150   : > { %v856_v42 = vpop.permute.xlu0 %855  ;;  %948 = vst.msk [vmem:[#allocation2 + $0x68] sm:$0xf] %vm621_vm1, %v858_v43  ;;  %887 = vrot.lane.b32.xlu2 %v6312_v41, %s5530_s26  ;;  %v5238_v41 = vld [vmem:[#allocation2 + $0x14c] sm:$0xf]  ;;  %v5240_v10 = vld [vmem:[#allocation2 + $0x158] sm:$0xf0]  ;;  %v1659_v43 = vpack.c.bf16 %v4491_v29, %v4491_v29 }
 0x151   : > { %947 = vst.msk [vmem:[#allocation2 + $0x54] sm:$0xf] %vm621_vm1, %v856_v42  ;;  %v4687_v27 = vor.u32 %v5238_v41, %v4684_v2  ;;  %v4683_v62 = vor.u32 %v5240_v10, %v4682_v21  ;;  %v1352_v42 = vpack.c.bf16 %v4440_v37, %v4440_v37  ;;  %v4378_v37 = vld [vmem:[%s5636_s25 + $0x151] sm:$0xff] }
 0x152   : > { %2891 = vmatmul.bf16.gmra.mxu3 %v4667_v59  ;;  %v1531_v12 = vpop.permute.xlu2 %1530  ;;  %730 = vst.msk [vmem:[#allocation2 + $0xf4] sm:$0xf] %vm396_vm0, %v1656_v0 }
 0x153   : > { %2802 = vmatmul.bf16.gmra.mxu2 %v4663_v11  ;;  %4977 = vmatmul.msk.bf16.gmra.mxu0 %vm2532_vm2, %v4551_v63  ;;  %1605 = vst.msk [vmem:[#allocation2 + $0x1b0] sm:$0xf] %vm621_vm1, %v1531_v12  ;;  %v4704_v63 = vld [vmem:[#allocation2 + $0x184] sm:$0xf0] }
 0x154   : > { %731 = vst.msk [vmem:[#allocation2 + $0x108] sm:$0xf] %vm396_vm0, %v1657_v4 }
 0x155   : > { %v6386_v49 = vpop.f32.mrf.mxu3  ;;  %891 = vrot.lane.b32.xlu1 %v1348_v44, %s5530_s26  ;;  %1384 = vst.msk [vmem:[#allocation2 + $0x1ec] sm:$0xf] %vm396_vm0, %v1352_v42 }
 0x156   : > { %8188 = vst [vmem:[#allocation18_spill] sm:$0xff] %v6386_v49  ;;  %889 = vrot.lane.b32.xlu0 %v6320_v52, %s5530_s26  ;;  %v6392_v40 = vpop.f32.mrf.mxu2 }
 0x157   : > { %8189 = vst [vmem:[#allocation19_spill] sm:$0xff] %v6392_v40  ;;  %v1525_v60 = vpop.permute.xlu1 %1524  ;;  %v4556_v52 = vld [vmem:[#allocation2 + $0x64] sm:$0xf0] }
 0x158   : > { %v1206_v57 = vpop.permute.xlu0 %1205  ;;  %v5207_v51 = vld [vmem:[#allocation2 + $0x54] sm:$0xf]  ;;  %1602 = vst.msk [vmem:[#allocation2 + $0x174] sm:$0xf] %vm621_vm1, %v1525_v60  ;;  %893 = vrot.lane.b32.xlu2 %v1349_v54, %s5530_s26  ;;  %v5216_v54 = vld [vmem:[#allocation2 + $0x98] sm:$0xf0] }
 0x159   : > { %1282 = vst.msk [vmem:[#allocation2 + $0x184] sm:$0xf] %vm621_vm1, %v1206_v57  ;;  %v4559_v47 = vor.u32 %v5207_v51, %v4556_v52  ;;  %v4376_v60 = vld [vmem:[%s5636_s25 + $0x139] sm:$0xff]  ;;  %v4591_v0 = vor.u32 %v5216_v54, %v4590_v53 }
 0x15a   : > { %v1212_v44 = vpop.permute.xlu2 %1211  ;;  %1690 = vst.msk [vmem:[#allocation2 + $0xd8] sm:$0xf] %vm396_vm0, %v1658_v38 }
 0x15b   : > { %2688 = vmatmul.bf16.gmra.mxu1 %v4559_v47  ;;  %1285 = vst.msk [vmem:[#allocation2 + $0x1c0] sm:$0xf] %vm621_vm1, %v1212_v44  ;;  %v1031_v47 = vpack.c.bf16 %v4376_v60, %v4376_v60  ;;  %v5321_v60 = vld [vmem:[%s8098_s5 + $0x20] sm:$0xff] }
 0x15c   : > { %1691 = vst.msk [vmem:[#allocation2 + $0xec] sm:$0xf] %vm396_vm0, %v1659_v43  ;;  %3374 = vmatpush.bf16.msra.mxu2 %v5321_v60 }
 0x15d   : > { %v6408_v3 = vpop.f32.mrf.mxu3  ;;  %897 = vrot.lane.b32.xlu1 %v808_v9, %s5530_s26  ;;  %1385 = vst.msk [vmem:[#allocation2 + $0x200] sm:$0xf] %vm396_vm0, %v810_v55  ;;  %v4493_v9 = vld [vmem:[%s5636_s25 + $0xca] sm:$0xff] }
 0x15e   : > { %8190 = vst [vmem:[#allocation20_spill] sm:$0xff] %v6408_v3  ;;  %895 = vrot.lane.b32.xlu0 %v1350_v30, %s5530_s26  ;;  %v6413_v19 = vpop.f32.mrf.mxu2  ;;  %v1661_v44 = vpack.c.bf16 %v4493_v9, %v4493_v9  ;;  %v4495_v9 = vld [vmem:[%s5636_s25 + $0xe2] sm:$0xff] }
 0x15f   : > { %8191 = vst [vmem:[#allocation21_spill] sm:$0xff] %v6413_v19  ;;  %v862_v32 = vpop.permute.xlu1 %861  ;;  %v5243_v11 = vld [vmem:[#allocation2 + $0x174] sm:$0xf]  ;;  %v6439_v5 = vpop.f32.mrf.mxu1 }
 0x160   : > { %v860_v45 = vpop.permute.xlu0 %859  ;;  %950 = vst.msk [vmem:[#allocation2 + $0x90] sm:$0xf] %vm621_vm1, %v862_v32  ;;  %899 = vrot.lane.b32.xlu2 %v1352_v42, %s5530_s26  ;;  %v5245_v52 = vld [vmem:[#allocation2 + $0x180] sm:$0xf0]  ;;  %v4707_v13 = vor.u32 %v5243_v11, %v4704_v63  ;;  %v1033_v63 = vpack.c.bf16 %v4378_v37, %v4378_v37 }
 0x161   : > { %949 = vst.msk [vmem:[#allocation2 + $0x7c] sm:$0xf] %vm621_vm1, %v860_v45  ;;  %v4703_v2 = vor.u32 %v5245_v52, %v4702_v61  ;;  %v1660_v45 = vpack.c.bf16 %v4492_v8, %v4492_v8  ;;  %v5317_v61 = vld [vmem:[%s8098_s5] sm:$0xff] }
 0x162   : > { %2896 = vmatmul.bf16.gmra.mxu3 %v4687_v27  ;;  %v1535_v50 = vpop.permute.xlu2 %1534  ;;  %732 = vst.msk [vmem:[#allocation2 + $0x11c] sm:$0xf] %vm396_vm0, %v1658_v38 }
 0x163   : > { %2807 = vmatmul.bf16.gmra.mxu2 %v4683_v62  ;;  %4978 = vmatmul.msk.bf16.gmra.mxu0 %vm2532_vm2, %v4571_v58  ;;  %1607 = vst.msk [vmem:[#allocation2 + $0x1d8] sm:$0xf] %vm621_vm1, %v1535_v50  ;;  %v1354_v62 = vpack.c.bf16 %v4442_v46, %v4442_v46  ;;  %v4722_v50 = vld [vmem:[#allocation2 + $0x198] sm:$0xf] }
 0x164   : > { %1063 = vst.msk [vmem:[#allocation2 + $0x1e8] sm:$0xf] %vm396_vm0, %v1031_v47  ;;  %3535 = vmatpush.bf16.msra.mxu3 %v5317_v61  ;;  %v4443_v47 = vld [vmem:[%s5636_s25 + $0x170] sm:$0xff] }
 0x165   : > { %v6425_v22 = vpop.f32.mrf.mxu3  ;;  %733 = vst.msk [vmem:[#allocation2 + $0x130] sm:$0xf] %vm396_vm0, %v1659_v43  ;;  %903 = vrot.lane.b32.xlu1 %v1354_v62, %s5530_s26 }
 0x166   : > { %v6428_v23 = vpop.f32.mrf.mxu2  ;;  %901 = vrot.lane.b32.xlu0 %v810_v55, %s5530_s26  ;;  %1386 = vst.msk [vmem:[#allocation2 + $0x214] sm:$0xf] %vm396_vm0, %v1354_v62  ;;  %v1663_v62 = vpack.c.bf16 %v4495_v9, %v4495_v9  ;;  %v4497_v9 = vld [vmem:[%s5636_s25 + $0xfa] sm:$0xff] }
 0x167   : > { %v1529_v33 = vpop.permute.xlu1 %1528  ;;  %v4576_v36 = vld [vmem:[#allocation2 + $0x8c] sm:$0xf0]  ;;  %v6459_v6 = vpop.f32.mrf.mxu1  ;;  %1692 = vst.msk [vmem:[#allocation2 + $0x100] sm:$0xf] %vm396_vm0, %v1660_v45 }
 0x168   : > { %v1210_v31 = vpop.permute.xlu0 %1209  ;;  %v5212_v35 = vld [vmem:[#allocation2 + $0x7c] sm:$0xf]  ;;  %1604 = vst.msk [vmem:[#allocation2 + $0x19c] sm:$0xf] %vm621_vm1, %v1529_v33  ;;  %v4610_v33 = vld [vmem:[#allocation2 + $0xb0] sm:$0xf] }
 0x169   : > { %1284 = vst.msk [vmem:[#allocation2 + $0x1ac] sm:$0xf] %vm621_vm1, %v1210_v31  ;;  %v4579_v59 = vor.u32 %v5212_v35, %v4576_v36  ;;  %v4724_v31 = vld [vmem:[#allocation2 + $0x1ac] sm:$0xf0]  ;;  %v5221_v35 = vld [vmem:[#allocation2 + $0xc0] sm:$0xf0] }
 0x16a   : > { %v1216_v4 = vpop.permute.xlu2 %1215  ;;  %1693 = vst.msk [vmem:[#allocation2 + $0x114] sm:$0xf] %vm396_vm0, %v1661_v44  ;;  %v4611_v53 = vor.u32 %v5221_v35, %v4610_v33  ;;  %v4630_v33 = vld [vmem:[#allocation2 + $0xd8] sm:$0xf]  ;;  %v5226_v35 = vld [vmem:[#allocation2 + $0xe8] sm:$0xf0] }
 0x16b   : > { %2693 = vmatmul.bf16.gmra.mxu1 %v4579_v59  ;;  %1287 = vst.msk [vmem:[#allocation2 + $0x1e8] sm:$0xf] %vm621_vm1, %v1216_v4  ;;  %v4631_v60 = vor.u32 %v5226_v35, %v4630_v33 }
 0x16c   : > { %734 = vst.msk [vmem:[#allocation2 + $0x144] sm:$0xf] %vm396_vm0, %v1660_v45 }
 0x16d   : > { %v6442_v57 = vpop.f32.mrf.mxu3  ;;  %735 = vst.msk [vmem:[#allocation2 + $0x158] sm:$0xf] %vm396_vm0, %v1661_v44 }
 0x16e   : > { %v6446_v51 = vpop.f32.mrf.mxu2  ;;  %1065 = vst.msk [vmem:[#allocation2 + $0x210] sm:$0xf] %vm396_vm0, %v1033_v63  ;;  %v4742_v63 = vld [vmem:[#allocation2 + $0x1c0] sm:$0xf] }
 0x16f   : > { %v866_v30 = vpop.permute.xlu1 %865  ;;  %v6468_v24 = vpop.f32.mrf.mxu0  ;;  %v5248_v29 = vld [vmem:[#allocation2 + $0x19c] sm:$0xf]  ;;  %1695 = vst.msk [vmem:[#allocation2 + $0x13c] sm:$0xf] %vm396_vm0, %v1663_v62 }
 0x170   : > { %v864_v12 = vpop.permute.xlu0 %863  ;;  %952 = vst.msk [vmem:[#allocation2 + $0xb8] sm:$0xf] %vm621_vm1, %v866_v30  ;;  %v5250_v42 = vld [vmem:[#allocation2 + $0x1a8] sm:$0xf0]  ;;  %v4727_v43 = vor.u32 %v5248_v29, %v4724_v31  ;;  %v1355_v30 = vpack.c.bf16 %v4443_v47, %v4443_v47 }
 0x171   : > { %951 = vst.msk [vmem:[#allocation2 + $0xa4] sm:$0xf] %vm621_vm1, %v864_v12  ;;  %v4723_v54 = vor.u32 %v5250_v42, %v4722_v50  ;;  %v4351_v29 = vld [vmem:[%s5636_s25 + $0x188] sm:$0xff] }
 0x172   : > { %2901 = vmatmul.bf16.gmra.mxu3 %v4707_v13  ;;  %v1539_v58 = vpop.permute.xlu2 %1538  ;;  %905 = vrot.lane.b32.xlu2 %v1355_v30, %s5530_s26  ;;  %1387 = vst.msk [vmem:[#allocation2 + $0x228] sm:$0xf] %vm396_vm0, %v1355_v30  ;;  %v814_v37 = vpack.c.bf16 %v4351_v29, %v4351_v29  ;;  %v4380_v42 = vld [vmem:[%s5636_s25 + $0x169] sm:$0xff]  ;;  %v1665_v29 = vpack.c.bf16 %v4497_v9, %v4497_v9 }
 0x173   : > { %2812 = vmatmul.bf16.gmra.mxu2 %v4703_v2  ;;  %4979 = vmatmul.msk.bf16.gmra.mxu0 %vm2532_vm2, %v4591_v0  ;;  %1609 = vst.msk [vmem:[#allocation2 + $0x200] sm:$0xf] %vm621_vm1, %v1539_v58  ;;  %v4494_v0 = vld [vmem:[%s5636_s25 + $0xda] sm:$0xff] }
 0x174   : > { %v4744_v58 = vld [vmem:[#allocation2 + $0x1d4] sm:$0xf0]  ;;  %909 = vrot.lane.b32.xlu1 %v814_v37, %s5530_s26  ;;  %1389 = vst.msk [vmem:[#allocation2 + $0x250] sm:$0xf] %vm396_vm0, %v814_v37 }
 0x175   : > { %v6457_v41 = vpop.f32.mrf.mxu3  ;;  %737 = vst.msk [vmem:[#allocation2 + $0x180] sm:$0xf] %vm396_vm0, %v1663_v62 }
 0x176   : > { %v6461_v7 = vpop.f32.mrf.mxu2  ;;  %1697 = vst.msk [vmem:[#allocation2 + $0x164] sm:$0xf] %vm396_vm0, %v1665_v29 }
 0x177   : > { %v1533_v21 = vpop.permute.xlu1 %1532  ;;  %v4596_v27 = vld [vmem:[#allocation2 + $0xb4] sm:$0xf0]  ;;  %v6495_v52 = vpop.f32.mrf.mxu0  ;;  %739 = vst.msk [vmem:[#allocation2 + $0x1a8] sm:$0xf] %vm396_vm0, %v1665_v29 }
 0x178   : > { %v1214_v18 = vpop.permute.xlu0 %1213  ;;  %v5217_v10 = vld [vmem:[#allocation2 + $0xa4] sm:$0xf]  ;;  %1606 = vst.msk [vmem:[#allocation2 + $0x1c4] sm:$0xf] %vm621_vm1, %v1533_v21  ;;  %v6480_v59 = vpop.f32.mrf.mxu1  ;;  %v4499_v29 = vld [vmem:[%s5636_s25 + $0x112] sm:$0xff] }
 0x179   : > { %1286 = vst.msk [vmem:[#allocation2 + $0x1d4] sm:$0xf] %vm621_vm1, %v1214_v18  ;;  %v4599_v32 = vor.u32 %v5217_v10, %v4596_v27  ;;  %v4444_v10 = vld [vmem:[%s5636_s25 + $0x180] sm:$0xff] }
 0x17a   : > { %v1220_v55 = vpop.permute.xlu2 %1219  ;;  %v1356_v45 = vpack.c.bf16 %v4444_v10, %v4444_v10  ;;  %v4764_v35 = vld [vmem:[#allocation2 + $0x1fc] sm:$0xf0] }
 0x17b   : > { %2698 = vmatmul.bf16.gmra.mxu1 %v4599_v32  ;;  %1289 = vst.msk [vmem:[#allocation2 + $0x210] sm:$0xf] %vm621_vm1, %v1220_v55  ;;  %v1662_v32 = vpack.c.bf16 %v4494_v0, %v4494_v0 }
 0x17c   : > { %907 = vrot.lane.b32.xlu0 %v1356_v45, %s5530_s26  ;;  %1388 = vst.msk [vmem:[#allocation2 + $0x23c] sm:$0xf] %vm396_vm0, %v1356_v45  ;;  %v4446_v45 = vld [vmem:[%s5636_s25 + $0x198] sm:$0xff] }
 0x17d   : > { %v6474_v36 = vpop.f32.mrf.mxu3  ;;  %1694 = vst.msk [vmem:[#allocation2 + $0x128] sm:$0xf] %vm396_vm0, %v1662_v32  ;;  %v1358_v62 = vpack.c.bf16 %v4446_v45, %v4446_v45 }
 0x17e   : > { %v6478_v38 = vpop.f32.mrf.mxu2  ;;  %736 = vst.msk [vmem:[#allocation2 + $0x16c] sm:$0xf] %vm396_vm0, %v1662_v32 }
 0x17f   : > { %v870_v48 = vpop.permute.xlu1 %869  ;;  %v5253_v44 = vld [vmem:[#allocation2 + $0x1c4] sm:$0xf]  ;;  %1390 = vst.msk [vmem:[#allocation2 + $0x264] sm:$0xf] %vm396_vm0, %v1358_v62  ;;  %v4498_v62 = vld [vmem:[%s5636_s25 + $0x10a] sm:$0xff] }
 0x180   : > { %v868_v11 = vpop.permute.xlu0 %867  ;;  %954 = vst.msk [vmem:[#allocation2 + $0xe0] sm:$0xf] %vm621_vm1, %v870_v48  ;;  %v6505_v18 = vpop.f32.mrf.mxu1  ;;  %v4747_v48 = vor.u32 %v5253_v44, %v4744_v58 }
 0x181   : > { %953 = vst.msk [vmem:[#allocation2 + $0xcc] sm:$0xf] %vm621_vm1, %v868_v11  ;;  %v5255_v11 = vld [vmem:[#allocation2 + $0x1d0] sm:$0xf0] }
 0x182   : > { %2906 = vmatmul.bf16.gmra.mxu3 %v4727_v43  ;;  %v1543_v46 = vpop.permute.xlu2 %1542  ;;  %v4743_v61 = vor.u32 %v5255_v11, %v4742_v63  ;;  %v5231_v63 = vld [vmem:[#allocation2 + $0x110] sm:$0xf0] }
 0x183   : > { %2817 = vmatmul.bf16.gmra.mxu2 %v4723_v54  ;;  %4980 = vmatmul.msk.bf16.gmra.mxu0 %vm2532_vm2, %v4611_v53  ;;  %1611 = vst.msk [vmem:[#allocation2 + $0x228] sm:$0xf] %vm621_vm1, %v1543_v46  ;;  %v1035_v53 = vpack.c.bf16 %v4380_v42, %v4380_v42  ;;  %v4650_v42 = vld [vmem:[#allocation2 + $0x100] sm:$0xf] }
 0x184   : > { %v4651_v9 = vor.u32 %v5231_v63, %v4650_v42 }
 0x185   : > { %v6497_v13 = vpop.f32.mrf.mxu3  ;;  %1067 = vst.msk [vmem:[#allocation2 + $0x238] sm:$0xf] %vm396_vm0, %v1035_v53 }
 0x186   : > { %v6500_v12 = vpop.f32.mrf.mxu2 }
 0x187   : > { %v1537_v4 = vpop.permute.xlu1 %1536  ;;  %v4616_v21 = vld [vmem:[#allocation2 + $0xdc] sm:$0xf0] }
 0x188   : > { %v1218_v2 = vpop.permute.xlu0 %1217  ;;  %v5222_v8 = vld [vmem:[#allocation2 + $0xcc] sm:$0xf]  ;;  %1608 = vst.msk [vmem:[#allocation2 + $0x1ec] sm:$0xf] %vm621_vm1, %v1537_v4  ;;  %v6514_v31 = vpop.f32.mrf.mxu0 }
 0x189   : > { %1288 = vst.msk [vmem:[#allocation2 + $0x1fc] sm:$0xf] %vm621_vm1, %v1218_v2  ;;  %v4619_v27 = vor.u32 %v5222_v8, %v4616_v21  ;;  %v4496_v8 = vld [vmem:[%s5636_s25 + $0xf2] sm:$0xff] }
 0x18a   : > { %v1224_v47 = vpop.permute.xlu2 %1223  ;;  %v1664_v58 = vpack.c.bf16 %v4496_v8, %v4496_v8 }
 0x18b   : > { %2703 = vmatmul.bf16.gmra.mxu1 %v4619_v27  ;;  %1291 = vst.msk [vmem:[#allocation2 + $0x238] sm:$0xf] %vm621_vm1, %v1224_v47 }
 0x18c   : > { %1696 = vst.msk [vmem:[#allocation2 + $0x150] sm:$0xf] %vm396_vm0, %v1664_v58 }
 0x18d   : > { %v6517_v50 = vpop.f32.mrf.mxu3  ;;  %738 = vst.msk [vmem:[#allocation2 + $0x194] sm:$0xf] %vm396_vm0, %v1664_v58  ;;  %v4447_v58 = vld [vmem:[%s5636_s25 + $0x1a0] sm:$0xff] }
 0x18e   : > { %v6521_v43 = vpop.f32.mrf.mxu2 }
 0x18f   : > { %v874_v55 = vpop.permute.xlu1 %873  ;;  %v5258_v33 = vld [vmem:[#allocation2 + $0x1ec] sm:$0xf] }
 0x190   : > { %v872_v54 = vpop.permute.xlu0 %871  ;;  %956 = vst.msk [vmem:[#allocation2 + $0x108] sm:$0xf] %vm621_vm1, %v874_v55  ;;  %v6528_v30 = vpop.f32.mrf.mxu1  ;;  %v5260_v55 = vld [vmem:[#allocation2 + $0x1f8] sm:$0xf0] }
 0x191   : > { %955 = vst.msk [vmem:[#allocation2 + $0xf4] sm:$0xf] %vm621_vm1, %v872_v54  ;;  %v6539_v4 = vpop.f32.mrf.mxu0  ;;  %v4762_v54 = vld [vmem:[#allocation2 + $0x1e8] sm:$0xf] }
 0x192   : > { %2911 = vmatmul.bf16.gmra.mxu3 %v4747_v48  ;;  %v1547_v44 = vpop.permute.xlu2 %1546  ;;  %v4382_v48 = vld [vmem:[%s5636_s25 + $0x181] sm:$0xff]  ;;  %v4802_v34 = vld [vmem:[#allocation2 + $0x238] sm:$0xf] }
 0x193   : > { %2822 = vmatmul.bf16.gmra.mxu2 %v4743_v61  ;;  %4981 = vmatmul.msk.bf16.gmra.mxu0 %vm2532_vm2, %v4631_v60  ;;  %1613 = vst.msk [vmem:[#allocation2 + $0x250] sm:$0xf] %vm621_vm1, %v1547_v44  ;;  %v4767_v60 = vor.u32 %v5258_v33, %v4764_v35  ;;  %v1037_v61 = vpack.c.bf16 %v4382_v48, %v4382_v48 }
 0x194   : > { %v1359_v44 = vpack.c.bf16 %v4447_v58, %v4447_v58 }
 0x195   : > { %v6534_v0 = vpop.f32.mrf.mxu3  ;;  %1069 = vst.msk [vmem:[#allocation2 + $0x260] sm:$0xf] %vm396_vm0, %v1037_v61  ;;  %v1667_v61 = vpack.c.bf16 %v4499_v29, %v4499_v29  ;;  %v4782_v29 = vld [vmem:[#allocation2 + $0x210] sm:$0xf] }
 0x196   : > { %v6537_v2 = vpop.f32.mrf.mxu2  ;;  %1391 = vst.msk [vmem:[#allocation2 + $0x278] sm:$0xf] %vm396_vm0, %v1359_v44 }
 0x197   : > { %v1541_v10 = vpop.permute.xlu1 %1540  ;;  %v4636_v46 = vld [vmem:[#allocation2 + $0x104] sm:$0xf0]  ;;  %1699 = vst.msk [vmem:[#allocation2 + $0x18c] sm:$0xf] %vm396_vm0, %v1667_v61 }
 0x198   : > { %v1222_v21 = vpop.permute.xlu0 %1221  ;;  %v5227_v27 = vld [vmem:[#allocation2 + $0xf4] sm:$0xf]  ;;  %1610 = vst.msk [vmem:[#allocation2 + $0x214] sm:$0xf] %vm621_vm1, %v1541_v10  ;;  %v6548_v37 = vpop.f32.mrf.mxu1  ;;  %v4763_v10 = vor.u32 %v5260_v55, %v4762_v54  ;;  %v1666_v54 = vpack.c.bf16 %v4498_v62, %v4498_v62 }
 0x199   : > { %1290 = vst.msk [vmem:[#allocation2 + $0x224] sm:$0xf] %vm621_vm1, %v1222_v21  ;;  %v4639_v32 = vor.u32 %v5227_v27, %v4636_v46 }
 0x19a   : > { %v1228_v27 = vpop.permute.xlu2 %1227  ;;  %1698 = vst.msk [vmem:[#allocation2 + $0x178] sm:$0xf] %vm396_vm0, %v1666_v54 }
 0x19b   : > { %2708 = vmatmul.bf16.gmra.mxu1 %v4639_v32  ;;  %1293 = vst.msk [vmem:[#allocation2 + $0x260] sm:$0xf] %vm621_vm1, %v1228_v27 }
 0x19c   : > { %741 = vst.msk [vmem:[#allocation2 + $0x1d0] sm:$0xf] %vm396_vm0, %v1667_v61 }
 0x19d   : > { %v6551_v11 = vpop.f32.mrf.mxu3  ;;  %740 = vst.msk [vmem:[#allocation2 + $0x1bc] sm:$0xf] %vm396_vm0, %v1666_v54  ;;  %v4501_v54 = vld [vmem:[%s5636_s25 + $0x12a] sm:$0xff] }
 0x19e   : > { %v6555_v53 = vpop.f32.mrf.mxu2  ;;  %v1669_v17 = vpack.c.bf16 %v4501_v54, %v4501_v54 }
 0x19f   : > { %v878_v8 = vpop.permute.xlu1 %877 }
 0x1a0   : > { %v876_v47 = vpop.permute.xlu0 %875  ;;  %v6560_v21 = vpop.f32.mrf.mxu0  ;;  %958 = vst.msk [vmem:[#allocation2 + $0x130] sm:$0xf] %vm621_vm1, %v878_v8  ;;  %v4784_v8 = vld [vmem:[#allocation2 + $0x224] sm:$0xf0] }
 0x1a1   : > { %957 = vst.msk [vmem:[#allocation2 + $0x11c] sm:$0xf] %vm621_vm1, %v876_v47  ;;  %v6566_v46 = vpop.f32.mrf.mxu1  ;;  %v5263_v47 = vld [vmem:[#allocation2 + $0x214] sm:$0xf] }
 0x1a2   : > { %2916 = vmatmul.bf16.gmra.mxu3 %v4767_v60  ;;  %8192 = vst [vmem:[#allocation22_spill] sm:$0xff] %v6566_v46  ;;  %v1551_v60 = vpop.permute.xlu2 %1550  ;;  %v4787_v44 = vor.u32 %v5263_v47, %v4784_v8  ;;  %v4500_v8 = vld [vmem:[%s5636_s25 + $0x122] sm:$0xff] }
 0x1a3   : > { %2827 = vmatmul.bf16.gmra.mxu2 %v4763_v10  ;;  %4982 = vmatmul.msk.bf16.gmra.mxu0 %vm2532_vm2, %v4651_v9  ;;  %1615 = vst.msk [vmem:[#allocation2 + $0x278] sm:$0xf] %vm621_vm1, %v1551_v60  ;;  %v4670_v9 = vld [vmem:[#allocation2 + $0x128] sm:$0xf]  ;;  %v5236_v10 = vld [vmem:[#allocation2 + $0x138] sm:$0xf0]  ;;  %v1668_v3 = vpack.c.bf16 %v4500_v8, %v4500_v8 }
 0x1a4   : > { %1701 = vst.msk [vmem:[#allocation2 + $0x1b4] sm:$0xf] %vm396_vm0, %v1669_v17  ;;  %v5241_v8 = vld [vmem:[#allocation2 + $0x160] sm:$0xf0] }
 0x1a5   : > { %v6568_v45 = vpop.f32.mrf.mxu3  ;;  %1700 = vst.msk [vmem:[#allocation2 + $0x1a0] sm:$0xf] %vm396_vm0, %v1668_v3 }
 0x1a6   : > { %v6571_v32 = vpop.f32.mrf.mxu2  ;;  %742 = vst.msk [vmem:[#allocation2 + $0x1e4] sm:$0xf] %vm396_vm0, %v1668_v3 }
 0x1a7   : > { %v1545_v35 = vpop.permute.xlu1 %1544  ;;  %v4656_v48 = vld [vmem:[#allocation2 + $0x12c] sm:$0xf0]  ;;  %743 = vst.msk [vmem:[#allocation2 + $0x1f8] sm:$0xf] %vm396_vm0, %v1669_v17 }
 0x1a8   : > { %v1226_v33 = vpop.permute.xlu0 %1225  ;;  %v5232_v42 = vld [vmem:[#allocation2 + $0x11c] sm:$0xf]  ;;  %v6576_v63 = vpop.f32.mrf.mxu0  ;;  %1612 = vst.msk [vmem:[#allocation2 + $0x23c] sm:$0xf] %vm621_vm1, %v1545_v35 }
 0x1a9   : > { %1292 = vst.msk [vmem:[#allocation2 + $0x24c] sm:$0xf] %vm621_vm1, %v1226_v33  ;;  %v4659_v55 = vor.u32 %v5232_v42, %v4656_v48  ;;  %v6587_v62 = vpop.f32.mrf.mxu1  ;;  %v5265_v33 = vld [vmem:[#allocation2 + $0x220] sm:$0xf0]  ;;  %v4671_v48 = vor.u32 %v5236_v10, %v4670_v9 }
 0x1aa   : > { %8193 = vst [vmem:[#allocation23_spill] sm:$0xff] %v6587_v62  ;;  %v4783_v60 = vor.u32 %v5265_v33, %v4782_v29  ;;  %v888_v49 = vpop.permute.xlu2 %887 }
 0x1ab   : > { %2713 = vmatmul.bf16.gmra.mxu1 %v4659_v55  ;;  %963 = vst.msk [vmem:[#allocation2 + $0x194] sm:$0xf] %vm621_vm1, %v888_v49 }
 0x1ad   : > { %v6582_v27 = vpop.f32.mrf.mxu3 }
 0x1ae   : > { %v6585_v58 = vpop.f32.mrf.mxu2 }
 0x1af   : > { %v882_v42 = vpop.permute.xlu1 %881 }
 0x1b0   : > { %v880_v35 = vpop.permute.xlu0 %879  ;;  %v6592_v55 = vpop.f32.mrf.mxu0  ;;  %960 = vst.msk [vmem:[#allocation2 + $0x158] sm:$0xf] %vm621_vm1, %v882_v42  ;;  %v5268_v42 = vld [vmem:[#allocation2 + $0x23c] sm:$0xf] }
 0x1b1   : > { %959 = vst.msk [vmem:[#allocation2 + $0x144] sm:$0xf] %vm621_vm1, %v880_v35 }
 0x1b2   : > { %2921 = vmatmul.bf16.gmra.mxu3 %v4787_v44 }
 0x1b3   : > { %2832 = vmatmul.bf16.gmra.mxu2 %v4783_v60  ;;  %4983 = vmatmul.msk.bf16.gmra.mxu0 %vm2532_vm2, %v4671_v48  ;;  %v4804_v48 = vld [vmem:[#allocation2 + $0x24c] sm:$0xf0] }
 0x1b4   : > { %v4690_v60 = vld [vmem:[#allocation2 + $0x150] sm:$0xf] }
 0x1b5   : > { %v6597_v61 = vpop.f32.mrf.mxu3  ;;  %v4691_v14 = vor.u32 %v5241_v8, %v4690_v60  ;;  %v4503_v60 = vld [vmem:[%s5636_s25 + $0x142] sm:$0xff] }
 0x1b6   : > { %v6599_v47 = vpop.f32.mrf.mxu2  ;;  %v1671_v19 = vpack.c.bf16 %v4503_v60, %v4503_v60  ;;  %v5246_v60 = vld [vmem:[#allocation2 + $0x188] sm:$0xf0] }
 0x1b7   : > { %v1549_v10 = vpop.permute.xlu1 %1548  ;;  %v4676_v49 = vld [vmem:[#allocation2 + $0x154] sm:$0xf0] }
 0x1b8   : > { %v1230_v9 = vpop.permute.xlu0 %1229  ;;  %v5237_v35 = vld [vmem:[#allocation2 + $0x144] sm:$0xf]  ;;  %v6604_v29 = vpop.f32.mrf.mxu0  ;;  %1614 = vst.msk [vmem:[#allocation2 + $0x264] sm:$0xf] %vm621_vm1, %v1549_v10  ;;  %v5270_v10 = vld [vmem:[#allocation2 + $0x248] sm:$0xf0] }
 0x1b9   : > { %1294 = vst.msk [vmem:[#allocation2 + $0x274] sm:$0xf] %vm621_vm1, %v1230_v9  ;;  %v6606_v33 = vpop.f32.mrf.mxu1  ;;  %v4679_v44 = vor.u32 %v5237_v35, %v4676_v49  ;;  %v4807_v35 = vor.u32 %v5268_v42, %v4804_v48  ;;  %v894_v49 = vpop.permute.xlu2 %893  ;;  %v4803_v17 = vor.u32 %v5270_v10, %v4802_v34 }
 0x1ba   : > { %966 = vst.msk [vmem:[#allocation2 + $0x1d0] sm:$0xf] %vm621_vm1, %v894_v49 }
 0x1bb   : > { %2718 = vmatmul.bf16.gmra.mxu1 %v4679_v44  ;;  %1703 = vst.msk [vmem:[#allocation2 + $0x1dc] sm:$0xf] %vm396_vm0, %v1671_v19 }
 0x1bc   : > { %745 = vst.msk [vmem:[#allocation2 + $0x220] sm:$0xf] %vm396_vm0, %v1671_v19 }
 0x1bd   : > { %v6612_v54 = vpop.f32.mrf.mxu3 }
 0x1be   : > { %v6615_v9 = vpop.f32.mrf.mxu2 }
 0x1bf   : > { %v886_v25 = vpop.permute.xlu1 %885  ;;  %v5273_v10 = vld [vmem:[#allocation2 + $0x264] sm:$0xf] }
 0x1c0   : > { %v884_v44 = vpop.permute.xlu0 %883  ;;  %v6619_v20 = vpop.f32.mrf.mxu0  ;;  %962 = vst.msk [vmem:[#allocation2 + $0x180] sm:$0xf] %vm621_vm1, %v886_v25  ;;  %v5275_v26 = vld [vmem:[#allocation2 + $0x270] sm:$0xf0] }
 0x1c1   : > { %961 = vst.msk [vmem:[#allocation2 + $0x16c] sm:$0xf] %vm621_vm1, %v884_v44  ;;  %v2681_v3 = vpop.f32.mrf.mxu1  ;;  %v1670_v44 = vpack.c.bf16 %v4502_v1, %v4502_v1  ;;  %v4824_v1 = vld [vmem:[#allocation2 + $0x274] sm:$0xf0] }
 0x1c2   : > { %2926 = vmatmul.bf16.gmra.mxu3 %v4807_v35  ;;  %v4827_v39 = vor.u32 %v5273_v10, %v4824_v1  ;;  %v5247_v10 = vld [vmem:[#allocation2 + $0x194] sm:$0xf] }
 0x1c3   : > { %2837 = vmatmul.bf16.gmra.mxu2 %v4803_v17  ;;  %4984 = vmatmul.msk.bf16.gmra.mxu0 %vm2532_vm2, %v4691_v14  ;;  %v6636_v14 = vld [vmem:[%s8095_s2] ss:$0 sm:$0xff]  ;;  %1702 = vst.msk [vmem:[#allocation2 + $0x1c8] sm:$0xf] %vm396_vm0, %v1670_v44  ;;  %v4710_v17 = vld [vmem:[#allocation2 + $0x178] sm:$0xf] }
 0x1c4   : > { %v2593_v35 = vadd.f32 %v6636_v14, %v6495_v52  ;;  %744 = vst.msk [vmem:[#allocation2 + $0x20c] sm:$0xf] %vm396_vm0, %v1670_v44  ;;  %v4711_v56 = vor.u32 %v5246_v60, %v4710_v17 }
 0x1c5   : > { %v6623_v42 = vpop.f32.mrf.mxu3 }
 0x1c6   : > { %v6625_v48 = vpop.f32.mrf.mxu2 }
 0x1c7   : > { %v892_v40 = vpop.permute.xlu1 %891  ;;  %v4696_v25 = vld [vmem:[#allocation2 + $0x17c] sm:$0xf0] }
 0x1c8   : > { %v5242_v8 = vld [vmem:[#allocation2 + $0x16c] sm:$0xf]  ;;  %v890_v49 = vpop.permute.xlu0 %889  ;;  %v2948_v28 = vpop.f32.mrf.mxu0  ;;  %965 = vst.msk [vmem:[#allocation2 + $0x1bc] sm:$0xf] %vm621_vm1, %v892_v40 }
 0x1c9   : > { %v6629_v16 = vpop.f32.mrf.mxu1  ;;  %964 = vst.msk [vmem:[#allocation2 + $0x1a8] sm:$0xf] %vm621_vm1, %v890_v49  ;;  %v4699_v34 = vor.u32 %v5242_v8, %v4696_v25  ;;  %v2591_v8 = vadd.f32 %v6636_v14, %v6468_v24  ;;  %v2682_v49 = vadd.f32 %v2681_v3, %v2593_v35  ;;  %v4505_v35 = vld [vmem:[%s5636_s25 + $0x15a] sm:$0xff] }
 0x1cb   : > { %2723 = vmatmul.bf16.gmra.mxu1 %v4699_v34  ;;  %v4822_v34 = vld [vmem:[#allocation2 + $0x260] sm:$0xf]  ;;  %v2680_v52 = vadd.f32 %v6606_v33, %v2591_v8  ;;  %v2771_v24 = vadd.f32 %v6446_v51, %v2682_v49  ;;  %v5316_v33 = vld [vmem:[%s8096_s3 + $0x18] sm:$0xff]  ;;  %v1673_v8 = vpack.c.bf16 %v4505_v35, %v4505_v35 }
 0x1cc   : > { %v4823_v19 = vor.u32 %v5275_v26, %v4822_v34  ;;  %3226 = vmatpush.bf16.msra.mxu1 %v5316_v33 }
 0x1cd   : > { %v6643_v40 = vpop.f32.mrf.mxu3  ;;  %v2769_v3 = vadd.f32 %v6428_v23, %v2680_v52  ;;  %v2860_v1 = vadd.f32 %v6442_v57, %v2771_v24  ;;  %1705 = vst.msk [vmem:[#allocation2 + $0x204] sm:$0xf] %vm396_vm0, %v1673_v8 }
 0x1ce   : > { %v6648_v25 = vpop.f32.mrf.mxu2  ;;  %747 = vst.msk [vmem:[#allocation2 + $0x248] sm:$0xf] %vm396_vm0, %v1673_v8 }
 0x1cf   : > { %v898_v44 = vpop.permute.xlu1 %897  ;;  %v2858_v23 = vadd.f32 %v6425_v22, %v2769_v3  ;;  %v6672_v49 = vadd.f32 %v2948_v28, %v2860_v1  ;;  %v2598_v22 = vadd.f32 %v6636_v14, %v6539_v4  ;;  %v5181_v1 = vld [vmem:[#allocation2 + $0x18] sm:$0xf0] }
 0x1d0   : > { %v896_v15 = vpop.permute.xlu0 %895  ;;  %v6651_v62 = vpop.f32.mrf.mxu0  ;;  %968 = vst.msk [vmem:[#allocation2 + $0x1f8] sm:$0xf] %vm621_vm1, %v898_v44  ;;  %v5251_v44 = vld [vmem:[#allocation2 + $0x1b0] sm:$0xf0] }
 0x1d1   : > { %v2686_v46 = vpop.f32.mrf.mxu1  ;;  %967 = vst.msk [vmem:[#allocation2 + $0x1e4] sm:$0xf] %vm621_vm1, %v896_v15  ;;  %v4716_v15 = vld [vmem:[#allocation2 + $0x1a4] sm:$0xf0]  ;;  %v6678_v57 = vadd.f32 %v6619_v20, %v2858_v23  ;;  %v8105_v28 = vmax.f32 %v6672_v49, 0.0  ;;  %v2596_v20 = vadd.f32 %v6636_v14, %v6514_v31 }
 0x1d2   : > { %2931 = vmatmul.bf16.gmra.mxu3 %v4827_v39  ;;  %v5325_v39 = vld [vmem:[%s8100_s7] sm:$0xff]  ;;  %v4719_v17 = vor.u32 %v5247_v10, %v4716_v15  ;;  %8194 = vst [vmem:[#allocation24_spill] sm:$0xff] %v6672_v49  ;;  %v2687_v3 = vadd.f32 %v2686_v46, %v2598_v22  ;;  %v4994_v15 = vld [vmem:[#allocation2 + $0x8] sm:$0xf]  ;;  %v5252_v23 = vld [vmem:[#allocation2 + $0x1bc] sm:$0xf] }
 0x1d3   : > { %2842 = vmatmul.bf16.gmra.mxu2 %v4823_v19  ;;  %4985 = vmatmul.msk.bf16.gmra.mxu0 %vm2532_vm2, %v4711_v56  ;;  %v4504_v56 = vld [vmem:[%s5636_s25 + $0x152] sm:$0xff]  ;;  %8195 = vst [vmem:[#allocation25_spill] sm:$0xff] %v6678_v57  ;;  %v4730_v19 = vld [vmem:[#allocation2 + $0x1a0] sm:$0xf]  ;;  %v8106_v33 = vmax.f32 %v6678_v57, 0.0  ;;  %v2685_v4 = vadd.f32 %v6629_v16, %v2596_v20  ;;  %v6701_v46 = vor.u32 %v5181_v1, %v4994_v15 }
 0x1d4   : > { %v1672_v60 = vpack.c.bf16 %v4504_v56, %v4504_v56  ;;  %3777 = vmatpush.bf16.msra.mxu0 %v5325_v39  ;;  %v900_v39 = vpop.permute.xlu2 %899  ;;  %v4731_v56 = vor.u32 %v5251_v44, %v4730_v19  ;;  %v2776_v8 = vadd.f32 %v6478_v38, %v2687_v3  ;;  %v4736_v19 = vld [vmem:[#allocation2 + $0x1cc] sm:$0xf0] }
 0x1d5   : > { %v6661_v26 = vpop.f32.mrf.mxu3  ;;  %969 = vst.msk [vmem:[#allocation2 + $0x20c] sm:$0xf] %vm621_vm1, %v900_v39  ;;  %v3327_v35 = vpack.c.bf16 %v8105_v28, %v8106_v33  ;;  %v2774_v16 = vadd.f32 %v6461_v7, %v2685_v4  ;;  %v4506_v38 = vld [vmem:[%s5636_s25 + $0x16a] sm:$0xff]  ;;  %v4507_v3 = vld [vmem:[%s5636_s25 + $0x172] sm:$0xff]  ;;  %v4739_v15 = vor.u32 %v5252_v23, %v4736_v19 }
 0x1d6   : > { %v6664_v51 = vpop.f32.mrf.mxu2  ;;  %1704 = vst.msk [vmem:[#allocation2 + $0x1f0] sm:$0xf] %vm396_vm0, %v1672_v60  ;;  %v2865_v44 = vadd.f32 %v6474_v36, %v2776_v8  ;;  %v1674_v1 = vpack.c.bf16 %v4506_v38, %v4506_v38  ;;  %v1675_v39 = vpack.c.bf16 %v4507_v3, %v4507_v3  ;;  %v4750_v36 = vld [vmem:[#allocation2 + $0x1c8] sm:$0xf]  ;;  %v2603_v8 = vadd.f32 %v6636_v14, %v6576_v63  ;;  %v4998_v38 = vld [vmem:[#allocation2 + $0x30] sm:$0xf] }
 0x1d7   : > { %746 = vst.msk [vmem:[#allocation2 + $0x234] sm:$0xf] %vm396_vm0, %v1672_v60  ;;  %v5182_v3 = vld [vmem:[#allocation2 + $0x40] sm:$0xf0]  ;;  %v904_v63 = vpop.permute.xlu1 %903 }
 0x1d8   : > { %v2953_v52 = vpop.f32.mrf.mxu0  ;;  %v902_v60 = vpop.permute.xlu0 %901  ;;  %1706 = vst.msk [vmem:[#allocation2 + $0x218] sm:$0xf] %vm396_vm0, %v1674_v1 }
 0x1d9   : > { %v6674_v34 = vpop.f32.mrf.mxu1  ;;  %970 = vst.msk [vmem:[#allocation2 + $0x220] sm:$0xf] %vm621_vm1, %v902_v60 }
 0x1da   : > { %1707 = vst.msk [vmem:[#allocation2 + $0x22c] sm:$0xf] %vm396_vm0, %v1675_v39 }
 0x1db   : > { %2728 = vmatmul.bf16.gmra.mxu1 %v4719_v17  ;;  %748 = vst.msk [vmem:[#allocation2 + $0x25c] sm:$0xf] %vm396_vm0, %v1674_v1 }
 0x1dc   : > { %749 = vst.msk [vmem:[#allocation2 + $0x270] sm:$0xf] %vm396_vm0, %v1675_v39 }
 0x1dd   : > { %v6686_v24 = vpop.f32.mrf.mxu3  ;;  %971 = vst.msk [vmem:[#allocation2 + $0x234] sm:$0xf] %vm621_vm1, %v904_v63 }
 0x1de   : > { %v6691_v10 = vpop.f32.mrf.mxu2 }
 0x1e0   : > { %v6699_v17 = vpop.f32.mrf.mxu0 }
 0x1e1   : > { %v2691_v31 = vpop.f32.mrf.mxu1 }
 0x1e2   : > { %5136 = vmatmul.msk.bf16.vlgmr.msra.gmra.mxu3 %vm2532_vm2, %v3327_v35  ;;  %v6718_v35 = vadd.f32 %v2953_v52, %v2865_v44  ;;  %v5256_v52 = vld [vmem:[#allocation2 + $0x1d8] sm:$0xf0]  ;;  %v2692_v19 = vadd.f32 %v2691_v31, %v2603_v8  ;;  %v6748_v8 = vor.u32 %v5182_v3, %v4998_v38  ;;  %v4508_v38 = vld [vmem:[%s5636_s25 + $0x182] sm:$0xff]  ;;  %v4509_v3 = vld [vmem:[%s5636_s25 + $0x18a] sm:$0xff] }
 0x1e3   : > { %4986 = vmatmul.msk.bf16.gmra.mxu0 %vm2532_vm2, %v4731_v56  ;;  %5104 = vmatmul.msk.bf16.vlgmr.msra.gmra.mxu2 %vm2532_vm2, %v6701_v46  ;;  %v2863_v56 = vadd.f32 %v6457_v41, %v2774_v16  ;;  %v4751_v1 = vor.u32 %v5256_v52, %v4750_v36  ;;  %v5257_v52 = vld [vmem:[#allocation2 + $0x1e4] sm:$0xf] }
 0x1e4   : > { %8196 = vst [vmem:[#allocation26_spill] sm:$0xff] %v6718_v35  ;;  %v8103_v41 = vmax.f32 %v6718_v35, 0.0  ;;  %v2781_v36 = vadd.f32 %v6521_v43, %v2692_v19  ;;  %v1676_v19 = vpack.c.bf16 %v4508_v38, %v4508_v38  ;;  %v5002_v38 = vld [vmem:[#allocation2 + $0x58] sm:$0xf] }
 0x1e5   : > { %v6710_v22 = vpop.f32.mrf.mxu3  ;;  %v6724_v4 = vadd.f32 %v6651_v62, %v2863_v56  ;;  %v2601_v62 = vadd.f32 %v6636_v14, %v6560_v21 }
 0x1e6   : > { %v6713_v20 = vpop.f32.mrf.mxu2  ;;  %1708 = vst.msk [vmem:[#allocation2 + $0x240] sm:$0xf] %vm396_vm0, %v1676_v19 }
 0x1e7   : > { %8197 = vst [vmem:[#allocation27_spill] sm:$0xff] %v6724_v4  ;;  %v8104_v23 = vmax.f32 %v6724_v4, 0.0  ;;  %v2690_v56 = vadd.f32 %v6674_v34, %v2601_v62  ;;  %v4756_v62 = vld [vmem:[#allocation2 + $0x1f4] sm:$0xf0] }
 0x1e8   : > { %v2958_v7 = vpop.f32.mrf.mxu0  ;;  %v4759_v43 = vor.u32 %v5257_v52, %v4756_v62  ;;  %v4770_v52 = vld [vmem:[#allocation2 + $0x1f0] sm:$0xf] }
 0x1e9   : > { %v6720_v60 = vpop.f32.mrf.mxu1  ;;  %v3328_v21 = vpack.c.bf16 %v8103_v41, %v8104_v23  ;;  %v2779_v34 = vadd.f32 %v6500_v12, %v2690_v56  ;;  %v2870_v41 = vadd.f32 %v6517_v50, %v2781_v36  ;;  %v2608_v50 = vadd.f32 %v6636_v14, %v6604_v29 }
 0x1eb   : > { %2733 = vmatmul.bf16.gmra.mxu1 %v4739_v15  ;;  %v906_v15 = vpop.permute.xlu2 %905  ;;  %v6764_v23 = vadd.f32 %v2958_v7, %v2870_v41  ;;  %v2606_v41 = vadd.f32 %v6636_v14, %v6592_v55 }
 0x1ec   : > { %972 = vst.msk [vmem:[#allocation2 + $0x248] sm:$0xf] %vm621_vm1, %v906_v15 }
 0x1ed   : > { %v6732_v16 = vpop.f32.mrf.mxu3  ;;  %8198 = vst [vmem:[#allocation28_spill] sm:$0xff] %v6764_v23  ;;  %v8107_v36 = vmax.f32 %v6764_v23, 0.0  ;;  %v2695_v29 = vadd.f32 %v6720_v60, %v2606_v41 }
 0x1ee   : > { %v6737_v44 = vpop.f32.mrf.mxu2 }
 0x1ef   : > { %v2784_v60 = vadd.f32 %v6537_v2, %v2695_v29  ;;  %v4790_v29 = vld [vmem:[#allocation2 + $0x218] sm:$0xf] }
 0x1f0   : > { %v6745_v31 = vpop.f32.mrf.mxu0 }
 0x1f1   : > { %v2696_v39 = vpop.f32.mrf.mxu1 }
 0x1f2   : > { %5137 = vmatmul.msk.bf16.gmra.mxu3 %vm2532_vm2, %v3328_v21  ;;  %v1677_v21 = vpack.c.bf16 %v4509_v3, %v4509_v3  ;;  %v2697_v62 = vadd.f32 %v2696_v39, %v2608_v50  ;;  %v5183_v3 = vld [vmem:[#allocation2 + $0x68] sm:$0xf0]  ;;  %v910_v50 = vpop.permute.xlu1 %909 }
 0x1f3   : > { %4987 = vmatmul.msk.bf16.gmra.mxu0 %vm2532_vm2, %v4751_v1  ;;  %5105 = vmatmul.msk.bf16.gmra.mxu2 %vm2532_vm2, %v6748_v8  ;;  %v2868_v1 = vadd.f32 %v6497_v13, %v2779_v34  ;;  %v5261_v13 = vld [vmem:[#allocation2 + $0x200] sm:$0xf0]  ;;  %v6791_v39 = vor.u32 %v5183_v3, %v5002_v38  ;;  %974 = vst.msk [vmem:[#allocation2 + $0x270] sm:$0xf] %vm621_vm1, %v910_v50 }
 0x1f4   : > { %1709 = vst.msk [vmem:[#allocation2 + $0x254] sm:$0xf] %vm396_vm0, %v1677_v21  ;;  %v4771_v19 = vor.u32 %v5261_v13, %v4770_v52  ;;  %v2786_v33 = vadd.f32 %v6555_v53, %v2697_v62  ;;  %v5262_v52 = vld [vmem:[#allocation2 + $0x20c] sm:$0xf]  ;;  %v4776_v13 = vld [vmem:[#allocation2 + $0x21c] sm:$0xf0] }
 0x1f5   : > { %v6756_v15 = vpop.f32.mrf.mxu3  ;;  %v6770_v56 = vadd.f32 %v6699_v17, %v2868_v1  ;;  %v4510_v53 = vld [vmem:[%s5636_s25 + $0x19a] sm:$0xff]  ;;  %v4511_v62 = vld [vmem:[%s5636_s25 + $0x1a2] sm:$0xff]  ;;  %s5482_s25 = scalar_lea.hbm %s5481_s16, 256 }
 0x1f6   : > { %v6759_v63 = vpop.f32.mrf.mxu2  ;;  %v2875_v38 = vadd.f32 %v6551_v11, %v2786_v33  ;;  %v1679_v50 = vpack.c.bf16 %v4511_v62, %v4511_v62  ;;  %v2613_v11 = vadd.f32 %v6636_v14, %v6459_v6  ;;  %v5315_v6 = vld [vmem:[%s8096_s3 + $0x10] sm:$0xff]  ;;  %p5483_p11 = scmp.ne.s32.totalorder %s5481_s16, %s5482_s25  ;;  %p5488_p1 = scmp.lt.s32.totalorder %s5486_s24, %s5482_s25 }
 0x1f7   : > { %8199 = vst [vmem:[#allocation29_spill] sm:$0xff] %v6770_v56  ;;  %v8108_v34 = vmax.f32 %v6770_v56, 0.0  ;;  %3227 = vmatpush.bf16.msra.mxu1 %v5315_v6 }
 0x1f8   : > { %v2963_v12 = vpop.f32.mrf.mxu0  ;;  %1711 = vst.msk [vmem:[#allocation2 + $0x27c] sm:$0xf] %vm396_vm0, %v1679_v50  ;;  %p5484_p12 = pnand %p5483_p11, %p5621_p5  ;;  %p5489_p2 = por %p5488_p1, %p5487_p0 }
 0x1f9   : > { %v6766_v28 = vpop.f32.mrf.mxu1  ;;  %v3329_v21 = vpack.c.bf16 %v8107_v36, %v8108_v34  ;;  %v6808_v36 = vadd.f32 %v2963_v12, %v2875_v38  ;;  %v2611_v12 = vadd.f32 %v6636_v14, %v6439_v5  ;;  %v5006_v38 = vld [vmem:[#allocation2 + $0x80] sm:$0xf] }
 0x1fa   : > { %p5485_p13 = pneg %p5484_p12 }
 0x1fb   : > { %2738 = vmatmul.bf16.gmra.mxu1 %v4759_v43  ;;  %v908_v43 = vpop.permute.xlu0 %907  ;;  %8200 = vst [vmem:[#allocation30_spill] sm:$0xff] %v6808_v36  ;;  %v8110_v33 = vmax.f32 %v6808_v36, 0.0 }
 0x1fc   : > { %973 = vst.msk [vmem:[#allocation2 + $0x25c] sm:$0xf] %vm621_vm1, %v908_v43  ;;  %v4779_v43 = vor.u32 %v5262_v52, %v4776_v13  ;;  %v5266_v52 = vld [vmem:[#allocation2 + $0x228] sm:$0xf0]  ;;  %p5490_p3 = pnand %p5489_p2, %p5485_p13 }
 0x1fd   : > { %v6776_v7 = vpop.f32.mrf.mxu3  ;;  %v4791_v62 = vor.u32 %v5266_v52, %v4790_v29  ;;  %v5267_v29 = vld [vmem:[#allocation2 + $0x234] sm:$0xf]  ;;  %v4796_v52 = vld [vmem:[#allocation2 + $0x244] sm:$0xf0] }
 0x1fe   : > { %v6781_v17 = vpop.f32.mrf.mxu2 }
 0x200   : > { %v6789_v1 = vpop.f32.mrf.mxu0 }
 0x201   : > { %v2701_v55 = vpop.f32.mrf.mxu1 }
 0x202   : > { %5138 = vmatmul.msk.bf16.gmra.mxu3 %vm2532_vm2, %v3329_v21  ;;  %v1678_v21 = vpack.c.bf16 %v4510_v53, %v4510_v53  ;;  %v2702_v13 = vadd.f32 %v2701_v55, %v2613_v11  ;;  %v5184_v53 = vld [vmem:[#allocation2 + $0x90] sm:$0xf0]  ;;  %v5314_v11 = vld [vmem:[%s8096_s3 + $0x8] sm:$0xff] }
 0x203   : > { %4988 = vmatmul.msk.bf16.gmra.mxu0 %vm2532_vm2, %v4771_v19  ;;  %5106 = vmatmul.msk.bf16.gmra.mxu2 %vm2532_vm2, %v6791_v39  ;;  %v2873_v19 = vadd.f32 %v6534_v0, %v2784_v60  ;;  %v6833_v55 = vor.u32 %v5184_v53, %v5006_v38  ;;  %v5313_v38 = vld [vmem:[%s8096_s3] sm:$0xff]  ;;  %v4799_v53 = vor.u32 %v5267_v29, %v4796_v52  ;;  %v5185_v52 = vld [vmem:[#allocation2 + $0xb8] sm:$0xf0] }
 0x204   : > { %1710 = vst.msk [vmem:[#allocation2 + $0x268] sm:$0xf] %vm396_vm0, %v1678_v21  ;;  %3228 = vmatpush.bf16.msra.mxu1 %v5314_v11  ;;  %v4810_v11 = vld [vmem:[#allocation2 + $0x240] sm:$0xf] }
 0x205   : > { %v6800_v41 = vpop.f32.mrf.mxu3  ;;  %v6812_v2 = vadd.f32 %v6745_v31, %v2873_v19  ;;  %v2791_v19 = vadd.f32 %v6585_v58, %v2702_v13 }
 0x206   : > { %v6803_v3 = vpop.f32.mrf.mxu2 }
 0x207   : > { %8201 = vst [vmem:[#allocation31_spill] sm:$0xff] %v6812_v2  ;;  %v8111_v60 = vmax.f32 %v6812_v2, 0.0  ;;  %v2880_v58 = vadd.f32 %v6582_v27, %v2791_v19  ;;  %v2618_v27 = vadd.f32 %v6636_v14, %v6505_v18 }
 0x208   : > { %v2968_v23 = vpop.f32.mrf.mxu0  ;;  %3229 = vmatpush.bf16.msra.mxu1 %v5313_v38 }
 0x209   : > { %v2704_v34 = vpop.f32.mrf.mxu1  ;;  %v3330_v21 = vpack.c.bf16 %v8110_v33, %v8111_v60  ;;  %v5271_v33 = vld [vmem:[#allocation2 + $0x250] sm:$0xf0] }
 0x20b   : > { %2743 = vmatmul.bf16.gmra.mxu1 %v4779_v43  ;;  %v2700_v43 = vadd.f32 %v6766_v28, %v2611_v12 }
 0x20d   : > { %v6818_v0 = vpop.f32.mrf.mxu3  ;;  %v2789_v28 = vadd.f32 %v6571_v32, %v2700_v43 }
 0x20e   : > { %v6823_v31 = vpop.f32.mrf.mxu2 }
 0x20f   : > { %v2878_v6 = vadd.f32 %v6568_v45, %v2789_v28  ;;  %v2616_v45 = vadd.f32 %v6636_v14, %v6480_v59 }
 0x210   : > { %v2971_v50 = vpop.f32.mrf.mxu0 }
 0x211   : > { %v2706_v5 = vpop.f32.mrf.mxu1  ;;  %v6856_v43 = vadd.f32 %v6789_v1, %v2878_v6  ;;  %v5010_v1 = vld [vmem:[#allocation2 + $0xa8] sm:$0xf]  ;;  %v2705_v38 = vadd.f32 %v2704_v34, %v2616_v45 }
 0x212   : > { %5139 = vmatmul.msk.bf16.gmra.mxu3 %vm2532_vm2, %v3330_v21  ;;  %v2707_v28 = vadd.f32 %v2706_v5, %v2618_v27  ;;  %v6872_v36 = vor.u32 %v5185_v52, %v5010_v1  ;;  %v4816_v5 = vld [vmem:[#allocation2 + $0x26c] sm:$0xf0] }
 0x213   : > { %4989 = vmatmul.msk.bf16.gmra.mxu0 %vm2532_vm2, %v4791_v62  ;;  %5107 = vmatmul.msk.bf16.gmra.mxu2 %vm2532_vm2, %v6833_v55  ;;  %v6853_v62 = vadd.f32 %v2968_v23, %v2880_v58  ;;  %8203 = vst [vmem:[#allocation33_spill] sm:$0xff] %v6856_v43  ;;  %v8114_v23 = vmax.f32 %v6856_v43, 0.0  ;;  %v4811_v58 = vor.u32 %v5271_v33, %v4810_v11  ;;  %v5272_v33 = vld [vmem:[#allocation2 + $0x25c] sm:$0xf] }
 0x214   : > { %v2796_v59 = vadd.f32 %v6615_v9, %v2707_v28  ;;  %v2794_v34 = vadd.f32 %v6599_v47, %v2705_v38  ;;  %v4819_v1 = vor.u32 %v5272_v33, %v4816_v5  ;;  %v2623_v47 = vadd.f32 %v6636_v14, %v6548_v37  ;;  %v5186_v33 = vld [vmem:[#allocation2 + $0xe0] sm:$0xf0] }
 0x215   : > { %v6844_v12 = vpop.f32.mrf.mxu3  ;;  %8202 = vst [vmem:[#allocation32_spill] sm:$0xff] %v6853_v62  ;;  %v8113_v19 = vmax.f32 %v6853_v62, 0.0 }
 0x216   : > { %v6847_v13 = vpop.f32.mrf.mxu2  ;;  %v2885_v11 = vadd.f32 %v6612_v54, %v2796_v59  ;;  %v2883_v9 = vadd.f32 %v6597_v61, %v2794_v34  ;;  %v2621_v59 = vadd.f32 %v6636_v14, %v6528_v30 }
 0x217   : > { %v3331_v18 = vpack.c.bf16 %v8113_v19, %v8114_v23  ;;  %v4830_v19 = vld [vmem:[#allocation2 + $0x268] sm:$0xf]  ;;  %v5276_v23 = vld [vmem:[#allocation2 + $0x278] sm:$0xf0] }
 0x218   : > { %v2973_v32 = vpop.f32.mrf.mxu0  ;;  %v4831_v5 = vor.u32 %v5276_v23, %v4830_v19 }
 0x219   : > { %v2709_v21 = vpop.f32.mrf.mxu1  ;;  %v6886_v28 = vadd.f32 %v2973_v32, %v2885_v11 }
 0x21a   : > { %v2710_v11 = vadd.f32 %v2709_v21, %v2621_v59 }
 0x21b   : > { %2748 = vmatmul.bf16.gmra.mxu1 %v4799_v53  ;;  %8204 = vst [vmem:[#allocation34_spill] sm:$0xff] %v6886_v28  ;;  %v8116_v38 = vmax.f32 %v6886_v28, 0.0 }
 0x21c   : > { %v2799_v21 = vadd.f32 %v6625_v48, %v2710_v11 }
 0x21d   : > { %v6861_v60 = vpop.f32.mrf.mxu3 }
 0x21e   : > { %v6866_v29 = vpop.f32.mrf.mxu2 }
 0x220   : > { %v2976_v6 = vpop.f32.mrf.mxu0 }
 0x221   : > { %v2711_v53 = vpop.f32.mrf.mxu1 }
 0x222   : > { %5140 = vmatmul.msk.bf16.gmra.mxu3 %vm2532_vm2, %v3331_v18  ;;  %v6888_v18 = vadd.f32 %v2971_v50, %v2883_v9  ;;  %v2712_v32 = vadd.f32 %v2711_v53, %v2623_v47  ;;  %v5014_v50 = vld [vmem:[#allocation2 + $0xd0] sm:$0xf]  ;;  %v2888_v47 = vadd.f32 %v6623_v42, %v2799_v21  ;;  %v5187_v21 = vld [vmem:[#allocation2 + $0x108] sm:$0xf0] }
 0x223   : > { %4990 = vmatmul.msk.bf16.gmra.mxu0 %vm2532_vm2, %v4811_v58  ;;  %5108 = vmatmul.msk.bf16.gmra.mxu2 %vm2532_vm2, %v6872_v36  ;;  %v6904_v62 = vor.u32 %v5186_v33, %v5014_v50  ;;  %v8208_v33 = vld [vmem:[#allocation23_spill] sm:$0xff] }
 0x224   : > { %8205 = vst [vmem:[#allocation35_spill] sm:$0xff] %v6888_v18  ;;  %v8117_v61 = vmax.f32 %v6888_v18, 0.0  ;;  %v2801_v30 = vadd.f32 %v6648_v25, %v2712_v32  ;;  %v6920_v50 = vadd.f32 %v2976_v6, %v2888_v47  ;;  %v2628_v48 = vadd.f32 %v6636_v14, %v8208_v33  ;;  %v5018_v6 = vld [vmem:[#allocation2 + $0xf8] sm:$0xf] }
 0x225   : > { %v6880_v27 = vpop.f32.mrf.mxu3 }
 0x226   : > { %v6883_v45 = vpop.f32.mrf.mxu2  ;;  %v3332_v37 = vpack.c.bf16 %v8116_v38, %v8117_v61  ;;  %v2890_v23 = vadd.f32 %v6643_v40, %v2801_v30  ;;  %8207 = vst [vmem:[#allocation37_spill] sm:$0xff] %v6920_v50  ;;  %v8209_v40 = vld [vmem:[#allocation22_spill] sm:$0xff]  ;;  %v8119_v42 = vmax.f32 %v6920_v50, 0.0  ;;  %v6938_v38 = vor.u32 %v5187_v21, %v5018_v6 }
 0x228   : > { %v2978_v58 = vpop.f32.mrf.mxu0 }
 0x229   : > { %v2714_v52 = vpop.f32.mrf.mxu1  ;;  %v6918_v59 = vadd.f32 %v2978_v58, %v2890_v23 }
 0x22b   : > { %2753 = vmatmul.bf16.gmra.mxu1 %v4819_v1  ;;  %8206 = vst [vmem:[#allocation36_spill] sm:$0xff] %v6918_v59 }
 0x22d   : > { %v6893_v54 = vpop.f32.mrf.mxu3 }
 0x22e   : > { %v6898_v34 = vpop.f32.mrf.mxu2 }
 0x230   : > { %v2981_v9 = vpop.f32.mrf.mxu0 }
 0x231   : > { %v2716_v1 = vpop.f32.mrf.mxu1 }
 0x232   : > { %5141 = vmatmul.msk.bf16.gmra.mxu3 %vm2532_vm2, %v3332_v37  ;;  %v2626_v37 = vadd.f32 %v6636_v14, %v8209_v40  ;;  %v2717_v58 = vadd.f32 %v2716_v1, %v2628_v48 }
 0x233   : > { %4991 = vmatmul.msk.bf16.gmra.mxu0 %vm2532_vm2, %v4831_v5  ;;  %5109 = vmatmul.msk.bf16.gmra.mxu2 %vm2532_vm2, %v6904_v62  ;;  %v8118_v5 = vmax.f32 %v6918_v59, 0.0 }
 0x234   : > { %v2715_v23 = vadd.f32 %v2714_v52, %v2626_v37  ;;  %v2806_v61 = vadd.f32 %v6691_v10, %v2717_v58  ;;  %v8212_v58 = vld [vmem:[#allocation9_spill] sm:$0xff] }
 0x235   : > { %v6912_v19 = vpop.f32.mrf.mxu3 }
 0x236   : > { %v6915_v53 = vpop.f32.mrf.mxu2  ;;  %v2804_v1 = vadd.f32 %v6664_v51, %v2715_v23  ;;  %v2895_v52 = vadd.f32 %v6686_v24, %v2806_v61  ;;  %v2633_v51 = vadd.f32 %v6636_v14, %v8212_v58  ;;  %v8213_v24 = vld [vmem:[#allocation7_spill] sm:$0xff] }
 0x237   : > { %v2631_v61 = vadd.f32 %v6636_v14, %v8213_v24 }
 0x238   : > { %v2983_v32 = vpop.f32.mrf.mxu0  ;;  %v2893_v37 = vadd.f32 %v6661_v26, %v2804_v1 }
 0x239   : > { %v2719_v25 = vpop.f32.mrf.mxu1 }
 0x23a   : > { %v6953_v10 = vadd.f32 %v2981_v9, %v2893_v37  ;;  %v5022_v9 = vld [vmem:[#allocation2 + $0x120] sm:$0xf]  ;;  %v2720_v37 = vadd.f32 %v2719_v25, %v2631_v61 }
 0x23b   : > { %5072 = vmatmul.msk.bf16.vlgmr.msra.gmra.mxu1 %vm2532_vm2, %v6701_v46  ;;  %v3333_v46 = vpack.c.bf16 %v8118_v5, %v8119_v42  ;;  %v6951_v5 = vadd.f32 %v2983_v32, %v2895_v52  ;;  %v5188_v52 = vld [vmem:[#allocation2 + $0x130] sm:$0xf0] }
 0x23c   : > { %8211 = vst [vmem:[#allocation22_spill] sm:$0xff] %v6953_v10  ;;  %v8123_v26 = vmax.f32 %v6953_v10, 0.0  ;;  %v6971_v59 = vor.u32 %v5188_v52, %v5022_v9 }
 0x23d   : > { %v6927_v11 = vpop.f32.mrf.mxu3  ;;  %8210 = vst [vmem:[#allocation23_spill] sm:$0xff] %v6951_v5  ;;  %v8122_v23 = vmax.f32 %v6951_v5, 0.0 }
 0x23e   : > { %v6932_v30 = vpop.f32.mrf.mxu2 }
 0x240   : > { %v2986_v33 = vpop.f32.mrf.mxu0 }
 0x241   : > { %v2721_v47 = vpop.f32.mrf.mxu1 }
 0x242   : > { %5142 = vmatmul.msk.bf16.gmra.mxu3 %vm2532_vm2, %v3333_v46  ;;  %v2722_v32 = vadd.f32 %v2721_v47, %v2633_v51  ;;  %v2809_v47 = vadd.f32 %v6713_v20, %v2720_v37 }
 0x243   : > { %5110 = vmatmul.msk.bf16.gmra.mxu2 %vm2532_vm2, %v6938_v38 }
 0x244   : > { %v2811_v50 = vadd.f32 %v6737_v44, %v2722_v32  ;;  %v2898_v61 = vadd.f32 %v6710_v22, %v2809_v47  ;;  %v8216_v32 = vld [vmem:[#allocation13_spill] sm:$0xff] }
 0x245   : > { %v6945_v48 = vpop.f32.mrf.mxu3  ;;  %v2638_v20 = vadd.f32 %v6636_v14, %v8216_v32 }
 0x246   : > { %v6948_v40 = vpop.f32.mrf.mxu2  ;;  %v2900_v25 = vadd.f32 %v6732_v16, %v2811_v50  ;;  %v6986_v44 = vadd.f32 %v2986_v33, %v2898_v61  ;;  %v8217_v16 = vld [vmem:[#allocation11_spill] sm:$0xff] }
 0x247   : > { %v2636_v50 = vadd.f32 %v6636_v14, %v8217_v16  ;;  %v5026_v33 = vld [vmem:[#allocation2 + $0x148] sm:$0xf] }
 0x248   : > { %v2988_v21 = vpop.f32.mrf.mxu0  ;;  %8215 = vst [vmem:[#allocation7_spill] sm:$0xff] %v6986_v44  ;;  %v8127_v22 = vmax.f32 %v6986_v44, 0.0 }
 0x249   : > { %v2724_v6 = vpop.f32.mrf.mxu1 }
 0x24a   : > { %v2725_v61 = vadd.f32 %v2724_v6, %v2636_v50 }
 0x24b   : > { %5073 = vmatmul.msk.bf16.gmra.mxu1 %vm2532_vm2, %v6748_v8  ;;  %v3334_v8 = vpack.c.bf16 %v8122_v23, %v8123_v26  ;;  %v6984_v23 = vadd.f32 %v2988_v21, %v2900_v25  ;;  %v5189_v25 = vld [vmem:[#allocation2 + $0x158] sm:$0xf0] }
 0x24c   : > { %v7004_v5 = vor.u32 %v5189_v25, %v5026_v33 }
 0x24d   : > { %v6960_v46 = vpop.f32.mrf.mxu3  ;;  %8214 = vst [vmem:[#allocation9_spill] sm:$0xff] %v6984_v23  ;;  %v8126_v37 = vmax.f32 %v6984_v23, 0.0 }
 0x24e   : > { %v6965_v1 = vpop.f32.mrf.mxu2 }
 0x250   : > { %v2991_v42 = vpop.f32.mrf.mxu0 }
 0x251   : > { %v2726_v58 = vpop.f32.mrf.mxu1 }
 0x252   : > { %5143 = vmatmul.msk.bf16.gmra.mxu3 %vm2532_vm2, %v3334_v8  ;;  %v2727_v21 = vadd.f32 %v2726_v58, %v2638_v20  ;;  %v2814_v58 = vadd.f32 %v6759_v63, %v2725_v61  ;;  %v8220_v63 = vld [vmem:[#allocation17_spill] sm:$0xff] }
 0x253   : > { %5111 = vmatmul.msk.bf16.gmra.mxu2 %vm2532_vm2, %v6971_v59 }
 0x254   : > { %v2816_v10 = vadd.f32 %v6781_v17, %v2727_v21  ;;  %v2903_v50 = vadd.f32 %v6756_v15, %v2814_v58  ;;  %v7020_v21 = vld [vmem:[%s8099_s6] ss:$0 sm:$0xff] }
 0x255   : > { %v6978_v51 = vpop.f32.mrf.mxu3 }
 0x256   : > { %v6981_v24 = vpop.f32.mrf.mxu2  ;;  %v2905_v6 = vadd.f32 %v6776_v7, %v2816_v10  ;;  %v7015_v25 = vadd.f32 %v2991_v42, %v2903_v50  ;;  %v2643_v7 = vadd.f32 %v6636_v14, %v8220_v63 }
 0x258   : > { %v2993_v52 = vpop.f32.mrf.mxu0  ;;  %8219 = vst [vmem:[#allocation11_spill] sm:$0xff] %v7015_v25  ;;  %v8144_v42 = vmax.f32 %v7015_v25, 0.0 }
 0x259   : > { %v2729_v9 = vpop.f32.mrf.mxu1 }
 0x25b   : > { %5074 = vmatmul.msk.bf16.gmra.mxu1 %vm2532_vm2, %v6791_v39  ;;  %v3335_v39 = vpack.c.bf16 %v8126_v37, %v8127_v22  ;;  %v7013_v37 = vadd.f32 %v2993_v52, %v2905_v6  ;;  %v8221_v52 = vld [vmem:[#allocation15_spill] sm:$0xff]  ;;  %v5190_v6 = vld [vmem:[#allocation2 + $0x180] sm:$0xf0] }
 0x25c   : > { %v2641_v61 = vadd.f32 %v6636_v14, %v8221_v52 }
 0x25d   : > { %v6993_v8 = vpop.f32.mrf.mxu3  ;;  %8218 = vst [vmem:[#allocation13_spill] sm:$0xff] %v7013_v37  ;;  %v8143_v15 = vmax.f32 %v7013_v37, 0.0 }
 0x25e   : > { %v6998_v47 = vpop.f32.mrf.mxu2  ;;  %v2730_v23 = vadd.f32 %v2729_v9, %v2641_v61 }
 0x260   : > { %v2996_v26 = vpop.f32.mrf.mxu0  ;;  %v2819_v9 = vadd.f32 %v6803_v3, %v2730_v23  ;;  %v8224_v3 = vld [vmem:[#allocation21_spill] sm:$0xff] }
 0x261   : > { %v2731_v32 = vpop.f32.mrf.mxu1 }
 0x262   : > { %5144 = vmatmul.msk.bf16.gmra.mxu3 %vm2532_vm2, %v3335_v39  ;;  %v2732_v39 = vadd.f32 %v2731_v32, %v2643_v7 }
 0x263   : > { %5112 = vmatmul.msk.bf16.gmra.mxu2 %vm2532_vm2, %v7004_v5 }
 0x264   : > { %v2821_v32 = vadd.f32 %v6823_v31, %v2732_v39 }
 0x265   : > { %v3537_v20 = vpop.f32.mrf.mxu3 }
 0x266   : > { %v3376_v16 = vpop.f32.mrf.mxu2  ;;  %v2910_v61 = vadd.f32 %v6818_v0, %v2821_v32 }
 0x267   : > { %v3538_v17 = vadd.f32 %v3537_v20, %v3376_v16  ;;  %v5030_v20 = vld [vmem:[#allocation2 + $0x170] sm:$0xf] }
 0x268   : > { %v2998_v33 = vpop.f32.mrf.mxu0  ;;  %v7036_v52 = vor.u32 %v5190_v6, %v5030_v20  ;;  %v2908_v20 = vadd.f32 %v6800_v41, %v2819_v9 }
 0x269   : > { %v2734_v22 = vpop.f32.mrf.mxu1  ;;  %v3621_v16 = vadd.f32 %v7020_v21, %v3538_v17  ;;  %v7046_v31 = vadd.f32 %v2998_v33, %v2910_v61 }
 0x26b   : > { %5075 = vmatmul.msk.bf16.gmra.mxu1 %vm2532_vm2, %v6833_v55  ;;  %v3336_v55 = vpack.c.bf16 %v8143_v15, %v8144_v42  ;;  %v3653_v7 = vmax.f32 %v3621_v16, 0.0  ;;  %8222 = vst [vmem:[#allocation17_spill] sm:$0xff] %v7046_v31  ;;  %v8141_v0 = vmax.f32 %v7046_v31, 0.0 }
 0x26d   : > { %v3539_v10 = vpop.f32.mrf.mxu3 }
 0x26e   : > { %v3378_v58 = vpop.f32.mrf.mxu2 }
 0x26f   : > { %v3540_v50 = vadd.f32 %v3539_v10, %v3378_v58 }
 0x270   : > { %v3001_v44 = vpop.f32.mrf.mxu0 }
 0x271   : > { %v2736_v63 = vpop.f32.mrf.mxu1  ;;  %v3622_v28 = vadd.f32 %v7020_v21, %v3540_v50  ;;  %v8225_v50 = vld [vmem:[#allocation19_spill] sm:$0xff] }
 0x272   : > { %5145 = vmatmul.msk.bf16.gmra.mxu3 %vm2532_vm2, %v3336_v55  ;;  %v2646_v55 = vadd.f32 %v6636_v14, %v8225_v50 }
 0x273   : > { %v3654_v18 = vmax.f32 %v3622_v28, 0.0  ;;  %5113 = vmatmul.msk.bf16.gmra.mxu2 %vm2532_vm2, %v7036_v52  ;;  %v7048_v28 = vadd.f32 %v2996_v26, %v2908_v20  ;;  %v5191_v26 = vld [vmem:[#allocation2 + $0x1a8] sm:$0xf0] }
 0x275   : > { %v3685_v17 = vpack.c.bf16 %v3654_v18, %v3653_v7  ;;  %v3542_v10 = vpop.f32.mrf.mxu3  ;;  %8223 = vst [vmem:[#allocation15_spill] sm:$0xff] %v7048_v28  ;;  %v2648_v18 = vadd.f32 %v6636_v14, %v8224_v3  ;;  %v8142_v41 = vmax.f32 %v7048_v28, 0.0  ;;  %v5034_v7 = vld [vmem:[#allocation2 + $0x198] sm:$0xf] }
 0x276   : > { %v3381_v58 = vpop.f32.mrf.mxu2  ;;  %v7064_v3 = vor.u32 %v5191_v26, %v5034_v7 }
 0x277   : > { %5160 = vmatmul.msk.bf16.vlgmr.msra.gmra.mxu0 %vm3721_vm3, %v3685_v17  ;;  %v3543_v16 = vadd.f32 %v3542_v10, %v3381_v58  ;;  %v2737_v33 = vadd.f32 %v2736_v63, %v2648_v18  ;;  %v2735_v10 = vadd.f32 %v2734_v22, %v2646_v55 }
 0x278   : > { %v3003_v6 = vpop.f32.mrf.mxu0 }
 0x279   : > { %v2739_v39 = vpop.f32.mrf.mxu1  ;;  %v3623_v9 = vadd.f32 %v7020_v21, %v3543_v16  ;;  %v2826_v63 = vadd.f32 %v6866_v29, %v2737_v33  ;;  %v2824_v22 = vadd.f32 %v6847_v13, %v2735_v10  ;;  %v8228_v13 = vld [vmem:[#allocation8_spill] sm:$0xff] }
 0x27a   : > { %v2653_v10 = vadd.f32 %v6636_v14, %v8228_v13 }
 0x27b   : > { %5076 = vmatmul.msk.bf16.gmra.mxu1 %vm2532_vm2, %v6872_v36  ;;  %v3337_v36 = vpack.c.bf16 %v8141_v0, %v8142_v41  ;;  %v3655_v18 = vmax.f32 %v3623_v9, 0.0  ;;  %v2915_v55 = vadd.f32 %v6861_v60, %v2826_v63  ;;  %v2913_v7 = vadd.f32 %v6844_v12, %v2824_v22 }
 0x27d   : > { %v3544_v23 = vpop.f32.mrf.mxu3  ;;  %v7074_v26 = vadd.f32 %v3003_v6, %v2915_v55  ;;  %v7076_v9 = vadd.f32 %v3001_v44, %v2913_v7  ;;  %v5192_v44 = vld [vmem:[#allocation2 + $0x1d0] sm:$0xf0] }
 0x27e   : > { %v3383_v32 = vpop.f32.mrf.mxu2 }
 0x27f   : > { %v3545_v17 = vadd.f32 %v3544_v23, %v3383_v32  ;;  %8226 = vst [vmem:[#allocation21_spill] sm:$0xff] %v7074_v26  ;;  %v8139_v60 = vmax.f32 %v7074_v26, 0.0  ;;  %v8140_v12 = vmax.f32 %v7076_v9, 0.0 }
 0x280   : > { %v3006_v58 = vpop.f32.mrf.mxu0  ;;  %8227 = vst [vmem:[#allocation19_spill] sm:$0xff] %v7076_v9 }
 0x281   : > { %v2741_v61 = vpop.f32.mrf.mxu1  ;;  %v3624_v20 = vadd.f32 %v7020_v21, %v3545_v17 }
 0x282   : > { %5146 = vmatmul.msk.bf16.gmra.mxu3 %vm2532_vm2, %v3337_v36  ;;  %v2742_v6 = vadd.f32 %v2741_v61, %v2653_v10 }
 0x283   : > { %v3656_v50 = vmax.f32 %v3624_v20, 0.0  ;;  %5114 = vmatmul.msk.bf16.gmra.mxu2 %vm2532_vm2, %v7064_v3  ;;  %v8229_v20 = vld [vmem:[#allocation6_spill] sm:$0xff] }
 0x284   : > { %v2651_v63 = vadd.f32 %v6636_v14, %v8229_v20  ;;  %v2831_v7 = vadd.f32 %v6898_v34, %v2742_v6 }
 0x285   : > { %v3686_v16 = vpack.c.bf16 %v3656_v50, %v3655_v18  ;;  %v3547_v23 = vpop.f32.mrf.mxu3  ;;  %v5038_v50 = vld [vmem:[#allocation2 + $0x1c0] sm:$0xf] }
 0x286   : > { %v3386_v32 = vpop.f32.mrf.mxu2 }
 0x287   : > { %5161 = vmatmul.msk.bf16.gmra.mxu0 %vm3721_vm3, %v3686_v16  ;;  %v3548_v17 = vadd.f32 %v3547_v23, %v3386_v32  ;;  %v2740_v23 = vadd.f32 %v2739_v39, %v2651_v63  ;;  %v7092_v32 = vor.u32 %v5192_v44, %v5038_v50  ;;  %v2920_v63 = vadd.f32 %v6893_v54, %v2831_v7 }
 0x288   : > { %v3008_v33 = vpop.f32.mrf.mxu0 }
 0x289   : > { %v2744_v29 = vpop.f32.mrf.mxu1  ;;  %v3625_v22 = vadd.f32 %v7020_v21, %v3548_v17  ;;  %v2829_v39 = vadd.f32 %v6883_v45, %v2740_v23  ;;  %v7102_v6 = vadd.f32 %v3008_v33, %v2920_v63 }
 0x28b   : > { %5077 = vmatmul.msk.bf16.gmra.mxu1 %vm2532_vm2, %v6904_v62  ;;  %v3338_v62 = vpack.c.bf16 %v8139_v60, %v8140_v12  ;;  %v3657_v61 = vmax.f32 %v3625_v22, 0.0  ;;  %v2918_v34 = vadd.f32 %v6880_v27, %v2829_v39  ;;  %8230 = vst [vmem:[#allocation8_spill] sm:$0xff] %v7102_v6  ;;  %v8232_v22 = vld [vmem:[#allocation12_spill] sm:$0xff] }
 0x28c   : > { %v2658_v45 = vadd.f32 %v6636_v14, %v8232_v22 }
 0x28d   : > { %v3549_v36 = vpop.f32.mrf.mxu3  ;;  %v7104_v50 = vadd.f32 %v3006_v58, %v2918_v34 }
 0x28e   : > { %v3388_v18 = vpop.f32.mrf.mxu2 }
 0x28f   : > { %v3550_v16 = vadd.f32 %v3549_v36, %v3388_v18  ;;  %8231 = vst [vmem:[#allocation6_spill] sm:$0xff] %v7104_v50  ;;  %v8138_v27 = vmax.f32 %v7104_v50, 0.0 }
 0x290   : > { %v3011_v20 = vpop.f32.mrf.mxu0 }
 0x291   : > { %v3626_v55 = vadd.f32 %v7020_v21, %v3550_v16  ;;  %v2746_v13 = vpop.f32.mrf.mxu1  ;;  %v8137_v16 = vmax.f32 %v7102_v6, 0.0 }
 0x292   : > { %5147 = vmatmul.msk.bf16.gmra.mxu3 %vm2532_vm2, %v3338_v62  ;;  %v2747_v33 = vadd.f32 %v2746_v13, %v2658_v45 }
 0x293   : > { %v3658_v10 = vmax.f32 %v3626_v55, 0.0  ;;  %5115 = vmatmul.msk.bf16.gmra.mxu2 %vm2532_vm2, %v7092_v32  ;;  %v8233_v55 = vld [vmem:[#allocation10_spill] sm:$0xff] }
 0x294   : > { %v2656_v7 = vadd.f32 %v6636_v14, %v8233_v55  ;;  %v2836_v14 = vadd.f32 %v6932_v30, %v2747_v33 }
 0x295   : > { %v3687_v17 = vpack.c.bf16 %v3658_v10, %v3657_v61  ;;  %v3552_v36 = vpop.f32.mrf.mxu3  ;;  %v5042_v61 = vld [vmem:[#allocation2 + $0x1e8] sm:$0xf]  ;;  %v5193_v10 = vld [vmem:[#allocation2 + $0x1f8] sm:$0xf0] }
 0x296   : > { %v3391_v18 = vpop.f32.mrf.mxu2  ;;  %v2925_v45 = vadd.f32 %v6927_v11, %v2836_v14  ;;  %v8236_v11 = vld [vmem:[#allocation16_spill] sm:$0xff]  ;;  %v5194_v14 = vld [vmem:[#allocation2 + $0x220] sm:$0xf0] }
 0x297   : > { %5162 = vmatmul.msk.bf16.gmra.mxu0 %vm3721_vm3, %v3687_v17  ;;  %v3553_v44 = vadd.f32 %v3552_v36, %v3391_v18  ;;  %v2745_v17 = vadd.f32 %v2744_v29, %v2656_v7  ;;  %v3339_v36 = vpack.c.bf16 %v8137_v16, %v8138_v27  ;;  %v7120_v18 = vor.u32 %v5193_v10, %v5042_v61 }
 0x298   : > { %v3013_v54 = vpop.f32.mrf.mxu0 }
 0x299   : > { %v2749_v23 = vpop.f32.mrf.mxu1  ;;  %v3627_v39 = vadd.f32 %v7020_v21, %v3553_v44  ;;  %v2834_v29 = vadd.f32 %v6915_v53, %v2745_v17  ;;  %v7130_v33 = vadd.f32 %v3013_v54, %v2925_v45  ;;  %v5465_v53 = vld [vmem:[%s8095_s2] ss:$0 sm:$0xff] }
 0x29a   : > { %v2663_v10 = vadd.f32 %v5465_v53, %v8236_v11  ;;  %v8237_v17 = vld [vmem:[#allocation14_spill] sm:$0xff] }
 0x29b   : > { %5078 = vmatmul.msk.bf16.gmra.mxu1 %vm2532_vm2, %v6938_v38  ;;  %v3659_v13 = vmax.f32 %v3627_v39, 0.0  ;;  %v2923_v30 = vadd.f32 %v6912_v19, %v2834_v29  ;;  %8234 = vst [vmem:[#allocation12_spill] sm:$0xff] %v7130_v33  ;;  %v8135_v39 = vmax.f32 %v7130_v33, 0.0 }
 0x29d   : > { %v3554_v62 = vpop.f32.mrf.mxu3 }
 0x29e   : > { %v3393_v58 = vpop.f32.mrf.mxu2 }
 0x29f   : > { %v3555_v38 = vadd.f32 %v3554_v62, %v3393_v58  ;;  %v7132_v58 = vadd.f32 %v3011_v20, %v2923_v30 }
 0x2a0   : > { %v3016_v7 = vpop.f32.mrf.mxu0 }
 0x2a1   : > { %v3628_v63 = vadd.f32 %v7020_v21, %v3555_v38  ;;  %v2751_v55 = vpop.f32.mrf.mxu1  ;;  %8235 = vst [vmem:[#allocation10_spill] sm:$0xff] %v7132_v58  ;;  %v8136_v19 = vmax.f32 %v7132_v58, 0.0 }
 0x2a2   : > { %5148 = vmatmul.msk.bf16.gmra.mxu3 %vm2532_vm2, %v3339_v36  ;;  %v2661_v36 = vadd.f32 %v5465_v53, %v8237_v17  ;;  %v2752_v54 = vadd.f32 %v2751_v55, %v2663_v10 }
 0x2a3   : > { %v3660_v34 = vmax.f32 %v3628_v63, 0.0  ;;  %5116 = vmatmul.msk.bf16.gmra.mxu2 %vm2532_vm2, %v7120_v18  ;;  %v5046_v63 = vld [vmem:[#allocation2 + $0x210] sm:$0xf]  ;;  %v3340_v29 = vpack.c.bf16 %v8135_v39, %v8136_v19 }
 0x2a4   : > { %v2841_v55 = vadd.f32 %v6965_v1, %v2752_v54 }
 0x2a5   : > { %v3688_v44 = vpack.c.bf16 %v3660_v34, %v3659_v13  ;;  %v3557_v22 = vpop.f32.mrf.mxu3  ;;  %v2750_v34 = vadd.f32 %v2749_v23, %v2661_v36 }
 0x2a6   : > { %v3396_v62 = vpop.f32.mrf.mxu2 }
 0x2a7   : > { %5163 = vmatmul.msk.bf16.gmra.mxu0 %vm3721_vm3, %v3688_v44  ;;  %v3558_v61 = vadd.f32 %v3557_v22, %v3396_v62  ;;  %v7149_v62 = vor.u32 %v5194_v14, %v5046_v63  ;;  %v2839_v23 = vadd.f32 %v6948_v40, %v2750_v34  ;;  %v8240_v40 = vld [vmem:[#allocation20_spill] sm:$0xff]  ;;  %v8241_v34 = vld [vmem:[#allocation18_spill] sm:$0xff] }
 0x2a8   : > { %v3018_v22 = vpop.f32.mrf.mxu0 }
 0x2a9   : > { %v3629_v13 = vadd.f32 %v7020_v21, %v3558_v61  ;;  %v2754_v44 = vpop.f32.mrf.mxu1  ;;  %v2928_v36 = vadd.f32 %v6945_v48, %v2839_v23 }
 0x2ab   : > { %5079 = vmatmul.msk.bf16.gmra.mxu1 %vm2532_vm2, %v6971_v59  ;;  %v3661_v30 = vmax.f32 %v3629_v13, 0.0  ;;  %v7161_v1 = vadd.f32 %v3016_v7, %v2928_v36  ;;  %v2668_v13 = vadd.f32 %v5465_v53, %v8240_v40  ;;  %v5195_v7 = vld [vmem:[#allocation2 + $0x248] sm:$0xf0] }
 0x2ad   : > { %v3559_v38 = vpop.f32.mrf.mxu3  ;;  %8239 = vst [vmem:[#allocation14_spill] sm:$0xff] %v7161_v1 }
 0x2ae   : > { %v3398_v20 = vpop.f32.mrf.mxu2 }
 0x2af   : > { %v3560_v59 = vadd.f32 %v3559_v38, %v3398_v20  ;;  %v2930_v38 = vadd.f32 %v6960_v46, %v2841_v55  ;;  %v5050_v55 = vld [vmem:[#allocation2 + $0x238] sm:$0xf] }
 0x2b0   : > { %v3021_v63 = vpop.f32.mrf.mxu0 }
 0x2b1   : > { %v3630_v45 = vadd.f32 %v7020_v21, %v3560_v59  ;;  %v7159_v20 = vadd.f32 %v3018_v22, %v2930_v38  ;;  %v2756_v54 = vpop.f32.mrf.mxu1 }
 0x2b2   : > { %5149 = vmatmul.msk.bf16.gmra.mxu3 %vm2532_vm2, %v3340_v29  ;;  %v2666_v29 = vadd.f32 %v5465_v53, %v8241_v34  ;;  %v2757_v48 = vadd.f32 %v2756_v54, %v2668_v13 }
 0x2b3   : > { %v3662_v11 = vmax.f32 %v3630_v45, 0.0  ;;  %5117 = vmatmul.msk.bf16.gmra.mxu2 %vm2532_vm2, %v7149_v62  ;;  %8238 = vst [vmem:[#allocation16_spill] sm:$0xff] %v7159_v20  ;;  %v8133_v59 = vmax.f32 %v7159_v20, 0.0  ;;  %v8134_v45 = vmax.f32 %v7161_v1, 0.0 }
 0x2b4   : > { %v2755_v23 = vadd.f32 %v2754_v44, %v2666_v29  ;;  %v2846_v53 = vadd.f32 %v6998_v47, %v2757_v48 }
 0x2b5   : > { %v3689_v61 = vpack.c.bf16 %v3662_v11, %v3661_v30  ;;  %v3562_v10 = vpop.f32.mrf.mxu3 }
 0x2b6   : > { %v3401_v17 = vpop.f32.mrf.mxu2  ;;  %v2844_v44 = vadd.f32 %v6981_v24, %v2755_v23  ;;  %v2935_v40 = vadd.f32 %v6993_v8, %v2846_v53  ;;  %v5054_v8 = vld [vmem:[#allocation2 + $0x260] sm:$0xf] }
 0x2b7   : > { %5164 = vmatmul.msk.bf16.gmra.mxu0 %vm3721_vm3, %v3689_v61  ;;  %v3563_v14 = vadd.f32 %v3562_v10, %v3401_v17  ;;  %v7175_v10 = vor.u32 %v5195_v7, %v5050_v55  ;;  %v5196_v7 = vld [vmem:[#allocation2 + $0x270] sm:$0xf0] }
 0x2b8   : > { %v3023_v36 = vpop.f32.mrf.mxu0  ;;  %v7199_v23 = vor.u32 %v5196_v7, %v5054_v8 }
 0x2b9   : > { %v3631_v30 = vadd.f32 %v7020_v21, %v3563_v14  ;;  %v7185_v47 = vadd.f32 %v3023_v36, %v2935_v40 }
 0x2bb   : > { %5080 = vmatmul.msk.bf16.gmra.mxu1 %vm2532_vm2, %v7004_v5  ;;  %v3341_v5 = vpack.c.bf16 %v8133_v59, %v8134_v45  ;;  %v3663_v38 = vmax.f32 %v3631_v30, 0.0  ;;  %8242 = vst [vmem:[#allocation20_spill] sm:$0xff] %v7185_v47  ;;  %v8145_v24 = vmax.f32 %v7185_v47, 0.0 }
 0x2bd   : > { %v3564_v46 = vpop.f32.mrf.mxu3 }
 0x2be   : > { %v3403_v22 = vpop.f32.mrf.mxu2 }
 0x2bf   : > { %v3565_v11 = vadd.f32 %v3564_v46, %v3403_v22  ;;  %v2933_v46 = vadd.f32 %v6978_v51, %v2844_v44 }
 0x2c1   : > { %v3632_v61 = vadd.f32 %v7020_v21, %v3565_v11  ;;  %v7187_v34 = vadd.f32 %v3021_v63, %v2933_v46 }
 0x2c2   : > { %5150 = vmatmul.msk.bf16.gmra.mxu3 %vm2532_vm2, %v3341_v5 }
 0x2c3   : > { %v3664_v17 = vmax.f32 %v3632_v61, 0.0  ;;  %5118 = vmatmul.msk.bf16.gmra.mxu2 %vm2532_vm2, %v7175_v10  ;;  %8243 = vst [vmem:[#allocation18_spill] sm:$0xff] %v7187_v34  ;;  %v8132_v22 = vmax.f32 %v7187_v34, 0.0 }
 0x2c5   : > { %v3690_v54 = vpack.c.bf16 %v3664_v17, %v3663_v38  ;;  %v3567_v14 = vpop.f32.mrf.mxu3  ;;  %v3342_v51 = vpack.c.bf16 %v8145_v24, %v8132_v22 }
 0x2c6   : > { %v3406_v13 = vpop.f32.mrf.mxu2 }
 0x2c7   : > { %5165 = vmatmul.msk.bf16.gmra.mxu0 %vm3721_vm3, %v3690_v54  ;;  %v3568_v29 = vadd.f32 %v3567_v14, %v3406_v13 }
 0x2c9   : > { %v3633_v30 = vadd.f32 %v7020_v21, %v3568_v29  ;;  %v7209_v29 = vpop.f32.mrf.mxu1 }
 0x2cb   : > { %5081 = vmatmul.msk.bf16.gmra.mxu1 %vm2532_vm2, %v7036_v52  ;;  %v3665_v52 = vmax.f32 %v3633_v30, 0.0 }
 0x2cd   : > { %v3569_v48 = vpop.f32.mrf.mxu3 }
 0x2ce   : > { %v3408_v55 = vpop.f32.mrf.mxu2 }
 0x2cf   : > { %v3570_v11 = vadd.f32 %v3569_v48, %v3408_v55 }
 0x2d1   : > { %v3634_v63 = vadd.f32 %v7020_v21, %v3570_v11  ;;  %v7214_v11 = vpop.f32.mrf.mxu1 }
 0x2d2   : > { %5151 = vmatmul.msk.bf16.gmra.mxu3 %vm2532_vm2, %v3342_v51 }
 0x2d3   : > { %v3666_v5 = vmax.f32 %v3634_v63, 0.0  ;;  %5119 = vmatmul.msk.bf16.gmra.mxu2 %vm2532_vm2, %v7199_v23 }
 0x2d5   : > { %v3691_v61 = vpack.c.bf16 %v3666_v5, %v3665_v52  ;;  %v3572_v53 = vpop.f32.mrf.mxu3 }
 0x2d6   : > { %v3411_v38 = vpop.f32.mrf.mxu2 }
 0x2d7   : > { %5166 = vmatmul.msk.bf16.gmra.mxu0 %vm3721_vm3, %v3691_v61  ;;  %v3573_v17 = vadd.f32 %v3572_v53, %v3411_v38 }
 0x2d9   : > { %v3635_v54 = vadd.f32 %v7020_v21, %v3573_v17 }
 0x2db   : > { %5082 = vmatmul.msk.bf16.gmra.mxu1 %vm2532_vm2, %v7064_v3  ;;  %v3667_v13 = vmax.f32 %v3635_v54, 0.0 }
 0x2dd   : > { %v3574_v44 = vpop.f32.mrf.mxu3 }
 0x2de   : > { %v3413_v36 = vpop.f32.mrf.mxu2 }
 0x2df   : > { %v3575_v14 = vadd.f32 %v3574_v44, %v3413_v36  ;;  %v7219_v36 = vpop.f32.mrf.mxu1 }
 0x2e1   : > { %v3636_v40 = vadd.f32 %v7020_v21, %v3575_v14 }
 0x2e3   : > { %v3668_v46 = vmax.f32 %v3636_v40, 0.0 }
 0x2e5   : > { %v3692_v48 = vpack.c.bf16 %v3668_v46, %v3667_v13  ;;  %v3577_v55 = vpop.f32.mrf.mxu3 }
 0x2e6   : > { %v3416_v8 = vpop.f32.mrf.mxu2 }
 0x2e7   : > { %5167 = vmatmul.msk.bf16.gmra.mxu0 %vm3721_vm3, %v3692_v48  ;;  %v3578_v7 = vadd.f32 %v3577_v55, %v3416_v8  ;;  %v7225_v55 = vpop.f32.mrf.mxu1 }
 0x2e9   : > { %v3637_v51 = vadd.f32 %v7020_v21, %v3578_v7 }
 0x2eb   : > { %5083 = vmatmul.msk.bf16.gmra.mxu1 %vm2532_vm2, %v7092_v32  ;;  %v3669_v5 = vmax.f32 %v3637_v51, 0.0 }
 0x2ed   : > { %v3579_v3 = vpop.f32.mrf.mxu3 }
 0x2ee   : > { %v3418_v30 = vpop.f32.mrf.mxu2 }
 0x2ef   : > { %v3580_v63 = vadd.f32 %v3579_v3, %v3418_v30 }
 0x2f1   : > { %v3638_v52 = vadd.f32 %v7020_v21, %v3580_v63 }
 0x2f3   : > { %v3670_v61 = vmax.f32 %v3638_v52, 0.0 }
 0x2f4   : > { %v3779_v53 = vpop.f32.mrf.mxu0 }
 0x2f5   : > { %v3693_v38 = vpack.c.bf16 %v3670_v61, %v3669_v5  ;;  %v3582_v17 = vpop.f32.mrf.mxu3  ;;  %v7230_v5 = vpop.f32.mrf.mxu1 }
 0x2f6   : > { %v3421_v44 = vpop.f32.mrf.mxu2 }
 0x2f7   : > { %5168 = vmatmul.msk.bf16.gmra.mxu0 %vm3721_vm3, %v3693_v38  ;;  %v3583_v32 = vadd.f32 %v3582_v17, %v3421_v44  ;;  %v7235_v17 = vld [vmem:[%s8101_s8] ss:$0 sm:$0xff] }
 0x2f9   : > { %v3639_v13 = vadd.f32 %v7020_v21, %v3583_v32 }
 0x2fb   : > { %5084 = vmatmul.msk.bf16.gmra.mxu1 %vm2532_vm2, %v7120_v18  ;;  %v3671_v8 = vmax.f32 %v3639_v13, 0.0 }
 0x2fc   : > { %v3781_v54 = vpop.f32.mrf.mxu0 }
 0x2fd   : > { %v3584_v14 = vpop.f32.mrf.mxu3 }
 0x2fe   : > { %v3423_v40 = vpop.f32.mrf.mxu2 }
 0x2ff   : > { %v3585_v46 = vadd.f32 %v3584_v14, %v3423_v40  ;;  %v7240_v40 = vadd.f32 %v7235_v17, %v3779_v53 }
 0x301   : > { %v3640_v48 = vadd.f32 %v7020_v21, %v3585_v46 }
 0x303   : > { %v3672_v7 = vmax.f32 %v3640_v48, 0.0 }
 0x304   : > { %v3784_v3 = vpop.f32.mrf.mxu0 }
 0x305   : > { %v3694_v30 = vpack.c.bf16 %v3672_v7, %v3671_v8  ;;  %v3587_v51 = vpop.f32.mrf.mxu3 }
 0x306   : > { %v3426_v63 = vpop.f32.mrf.mxu2 }
 0x307   : > { %5169 = vmatmul.msk.bf16.gmra.mxu0 %vm3721_vm3, %v3694_v30  ;;  %v3588_v52 = vadd.f32 %v3587_v51, %v3426_v63  ;;  %v7245_v51 = vpop.f32.mrf.mxu1  ;;  %v3859_v63 = vsel %vm2532_vm2, %v7240_v40, -inf }
 0x309   : > { %v3641_v44 = vadd.f32 %v7020_v21, %v3588_v52 }
 0x30b   : > { %5085 = vmatmul.msk.bf16.gmra.mxu1 %vm2532_vm2, %v7149_v62  ;;  %v3673_v13 = vmax.f32 %v3641_v44, 0.0 }
 0x30c   : > { %v3786_v18 = vpop.f32.mrf.mxu0 }
 0x30d   : > { %v3589_v61 = vpop.f32.mrf.mxu3 }
 0x30e   : > { %v3428_v38 = vpop.f32.mrf.mxu2 }
 0x30f   : > { %v3590_v32 = vadd.f32 %v3589_v61, %v3428_v38  ;;  %v7253_v61 = vadd.f32 %v7235_v17, %v3781_v54 }
 0x311   : > { %v3642_v14 = vadd.f32 %v7020_v21, %v3590_v32 }
 0x313   : > { %v3674_v62 = vmax.f32 %v3642_v14, 0.0 }
 0x314   : > { %v3789_v46 = vpop.f32.mrf.mxu0 }
 0x315   : > { %v3695_v48 = vpack.c.bf16 %v3674_v62, %v3673_v13  ;;  %v7243_v8 = vadd.f32 %v7235_v17, %v3789_v46  ;;  %v3592_v7 = vpop.f32.mrf.mxu3  ;;  %v3860_v62 = vsel %vm2532_vm2, %v7253_v61, -inf }
 0x316   : > { %v3431_v30 = vpop.f32.mrf.mxu2 }
 0x317   : > { %v3863_v52 = vsel %vm2532_vm2, %v7243_v8, -inf  ;;  %5170 = vmatmul.msk.bf16.gmra.mxu0 %vm3721_vm3, %v3695_v48  ;;  %v3593_v38 = vadd.f32 %v3592_v7, %v3431_v30  ;;  %v7265_v7 = vpop.f32.mrf.mxu1  ;;  %v7269_v30 = vadd.f32 %v7235_v17, %v3784_v3 }
 0x318   : > { %v3864_v53 = vmax.f32 %v3859_v63, %v3863_v52 }
 0x319   : > { %v3643_v46 = vadd.f32 %v7020_v21, %v3593_v38 }
 0x31b   : > { %5086 = vmatmul.msk.bf16.gmra.mxu1 %vm2532_vm2, %v7175_v10  ;;  %v3675_v52 = vmax.f32 %v3643_v46, 0.0  ;;  %v7282_v46 = vadd.f32 %v7235_v17, %v3786_v18 }
 0x31c   : > { %v3791_v44 = vpop.f32.mrf.mxu0 }
 0x31d   : > { %v7258_v32 = vadd.f32 %v7235_v17, %v3791_v44  ;;  %v3594_v14 = vpop.f32.mrf.mxu3 }
 0x31e   : > { %v3433_v13 = vpop.f32.mrf.mxu2 }
 0x31f   : > { %v3865_v48 = vsel %vm2532_vm2, %v7258_v32, -inf  ;;  %v3595_v54 = vadd.f32 %v3594_v14, %v3433_v13  ;;  %v3861_v14 = vsel %vm2532_vm2, %v7269_v30, -inf  ;;  %v7279_v3 = vpop.f32.mrf.mxu1 }
 0x320   : > { %v3866_v63 = vmax.f32 %v3860_v62, %v3865_v48 }
 0x321   : > { %v3644_v10 = vadd.f32 %v7020_v21, %v3595_v54 }
 0x323   : > { %v3676_v44 = vmax.f32 %v3644_v10, 0.0 }
 0x324   : > { %v3794_v22 = vpop.f32.mrf.mxu0 }
 0x325   : > { %v3696_v59 = vpack.c.bf16 %v3676_v44, %v3675_v52  ;;  %v7272_v45 = vadd.f32 %v7235_v17, %v3794_v22  ;;  %v3597_v38 = vpop.f32.mrf.mxu3  ;;  %v3862_v44 = vsel %vm2532_vm2, %v7282_v46, -inf }
 0x326   : > { %v3436_v39 = vpop.f32.mrf.mxu2 }
 0x327   : > { %v3867_v13 = vsel %vm2532_vm2, %v7272_v45, -inf  ;;  %5171 = vmatmul.msk.bf16.gmra.mxu0 %vm3721_vm3, %v3696_v59  ;;  %v3598_v48 = vadd.f32 %v3597_v38, %v3436_v39 }
 0x328   : > { %v3868_v62 = vmax.f32 %v3861_v14, %v3867_v13 }
 0x329   : > { %v3645_v59 = vadd.f32 %v7020_v21, %v3598_v48 }
 0x32b   : > { %5087 = vmatmul.msk.bf16.gmra.mxu1 %vm2532_vm2, %v7199_v23  ;;  %v3677_v38 = vmax.f32 %v3645_v59, 0.0 }
 0x32c   : > { %v3796_v22 = vpop.f32.mrf.mxu0 }
 0x32d   : > { %v7287_v54 = vadd.f32 %v7235_v17, %v3796_v22  ;;  %v3599_v10 = vpop.f32.mrf.mxu3 }
 0x32e   : > { %v3438_v52 = vpop.f32.mrf.mxu2 }
 0x32f   : > { %v3869_v14 = vsel %vm2532_vm2, %v7287_v54, -inf  ;;  %v3600_v18 = vadd.f32 %v3599_v10, %v3438_v52 }
 0x330   : > { %v3870_v13 = vmax.f32 %v3862_v44, %v3869_v14 }
 0x331   : > { %v3646_v39 = vadd.f32 %v7020_v21, %v3600_v18 }
 0x333   : > { %v3678_v23 = vmax.f32 %v3646_v39, 0.0 }
 0x334   : > { %v3799_v19 = vpop.f32.mrf.mxu0 }
 0x335   : > { %v3697_v16 = vpack.c.bf16 %v3678_v23, %v3677_v38  ;;  %v7296_v22 = vadd.f32 %v7235_v17, %v3799_v19  ;;  %v3602_v27 = vpop.f32.mrf.mxu3 }
 0x336   : > { %v3441_v60 = vpop.f32.mrf.mxu2 }
 0x337   : > { %v3871_v12 = vsel %vm2532_vm2, %v7296_v22, -inf  ;;  %5172 = vmatmul.msk.bf16.gmra.mxu0 %vm3721_vm3, %v3697_v16  ;;  %v3603_v10 = vadd.f32 %v3602_v27, %v3441_v60 }
 0x338   : > { %v7301_v48 = vmax.f32 %v3864_v53, %v3871_v12 }
 0x339   : > { %v3647_v18 = vadd.f32 %v7020_v21, %v3603_v10 }
 0x33b   : > { %v3679_v0 = vmax.f32 %v3647_v18, 0.0 }
 0x33c   : > { %v3801_v52 = vpop.f32.mrf.mxu0 }
 0x33d   : > { %v7304_v44 = vadd.f32 %v7235_v17, %v3801_v52  ;;  %v3604_v59 = vpop.f32.mrf.mxu3 }
 0x33e   : > { %v3443_v14 = vpop.f32.mrf.mxu2 }
 0x33f   : > { %v3873_v19 = vsel %vm2532_vm2, %v7304_v44, -inf  ;;  %v3605_v39 = vadd.f32 %v3604_v59, %v3443_v14 }
 0x340   : > { %v3874_v38 = vmax.f32 %v3866_v63, %v3873_v19 }
 0x341   : > { %v3648_v23 = vadd.f32 %v7020_v21, %v3605_v39 }
 0x343   : > { %v3680_v16 = vmax.f32 %v3648_v23, 0.0 }
 0x344   : > { %v3804_v12 = vpop.f32.mrf.mxu0 }
 0x345   : > { %v3698_v53 = vpack.c.bf16 %v3680_v16, %v3679_v0  ;;  %v7311_v60 = vadd.f32 %v7235_v17, %v3804_v12  ;;  %v3607_v27 = vpop.f32.mrf.mxu3 }
 0x346   : > { %v3446_v52 = vpop.f32.mrf.mxu2 }
 0x347   : > { %v3875_v41 = vsel %vm2532_vm2, %v7311_v60, -inf  ;;  %5173 = vmatmul.msk.bf16.gmra.mxu0 %vm3721_vm3, %v3698_v53  ;;  %v3608_v15 = vadd.f32 %v3607_v27, %v3446_v52 }
 0x348   : > { %v3876_v10 = vmax.f32 %v3868_v62, %v3875_v41 }
 0x349   : > { %v3649_v0 = vadd.f32 %v7020_v21, %v3608_v15 }
 0x34b   : > { %v3681_v12 = vmax.f32 %v3649_v0, 0.0 }
 0x34c   : > { %v3806_v59 = vpop.f32.mrf.mxu0 }
 0x34d   : > { %v7317_v63 = vadd.f32 %v7235_v17, %v3806_v59  ;;  %v3609_v14 = vpop.f32.mrf.mxu3 }
 0x34e   : > { %v3448_v18 = vpop.f32.mrf.mxu2 }
 0x34f   : > { %v3877_v19 = vsel %vm2532_vm2, %v7317_v63, -inf  ;;  %v3610_v39 = vadd.f32 %v3609_v14, %v3448_v18 }
 0x350   : > { %v3878_v23 = vmax.f32 %v3870_v13, %v3877_v19 }
 0x351   : > { %v3650_v16 = vadd.f32 %v7020_v21, %v3610_v39 }
 0x353   : > { %v3682_v42 = vmax.f32 %v3650_v16, 0.0 }
 0x354   : > { %v3809_v53 = vpop.f32.mrf.mxu0 }
 0x355   : > { %v3699_v41 = vpack.c.bf16 %v3682_v42, %v3681_v12  ;;  %v7324_v62 = vadd.f32 %v7235_v17, %v3809_v53  ;;  %v3612_v27 = vpop.f32.mrf.mxu3 }
 0x356   : > { %v3451_v52 = vpop.f32.mrf.mxu2 }
 0x357   : > { %v3879_v59 = vsel %vm2532_vm2, %v7324_v62, -inf  ;;  %5174 = vmatmul.msk.bf16.gmra.mxu0 %vm3721_vm3, %v3699_v41  ;;  %v3613_v14 = vadd.f32 %v3612_v27, %v3451_v52 }
 0x358   : > { %v3880_v15 = vmax.f32 %v7301_v48, %v3879_v59 }
 0x359   : > { %v3651_v42 = vadd.f32 %v7020_v21, %v3613_v14 }
 0x35b   : > { %v3683_v24 = vmax.f32 %v3651_v42, 0.0 }
 0x35c   : > { %v3811_v13 = vpop.f32.mrf.mxu0 }
 0x35d   : > { %v7331_v18 = vadd.f32 %v7235_v17, %v3811_v13  ;;  %v3614_v0 = vpop.f32.mrf.mxu3 }
 0x35e   : > { %v3453_v19 = vpop.f32.mrf.mxu2 }
 0x35f   : > { %v3881_v39 = vsel %vm2532_vm2, %v7331_v18, -inf  ;;  %v3615_v16 = vadd.f32 %v3614_v0, %v3453_v19 }
 0x360   : > { %v3882_v12 = vmax.f32 %v3874_v38, %v3881_v39 }
 0x361   : > { %v3652_v53 = vadd.f32 %v7020_v21, %v3615_v16 }
 0x363   : > { %v3684_v41 = vmax.f32 %v3652_v53, 0.0 }
 0x364   : > { %v3814_v34 = vpop.f32.mrf.mxu0 }
 0x365   : > { %v3700_v48 = vpack.c.bf16 %v3684_v41, %v3683_v24  ;;  %v7338_v27 = vadd.f32 %v7235_v17, %v3814_v34 }
 0x367   : > { %v3883_v52 = vsel %vm2532_vm2, %v7338_v27, -inf  ;;  %5175 = vmatmul.msk.bf16.gmra.mxu0 %vm3721_vm3, %v3700_v48  ;;  %v7363_v48 = vpop.f32.mrf.mxu1 }
 0x368   : > { %v3884_v59 = vmax.f32 %v3876_v10, %v3883_v52 }
 0x36c   : > { %v3816_v14 = vpop.f32.mrf.mxu0 }
 0x36d   : > { %v7344_v13 = vadd.f32 %v7235_v17, %v3816_v14 }
 0x36f   : > { %v3885_v21 = vsel %vm2532_vm2, %v7344_v13, -inf }
 0x370   : > { %v3886_v38 = vmax.f32 %v3878_v23, %v3885_v21 }
 0x374   : > { %v3819_v0 = vpop.f32.mrf.mxu0 }
 0x375   : > { %v7349_v24 = vadd.f32 %v7235_v17, %v3819_v0 }
 0x377   : > { %v3887_v34 = vsel %vm2532_vm2, %v7349_v24, -inf }
 0x378   : > { %v3888_v19 = vmax.f32 %v3880_v15, %v3887_v34  ;;  %v7370_v34 = vpop.f32.mrf.mxu1 }
 0x37c   : > { %v3821_v42 = vpop.f32.mrf.mxu0 }
 0x37d   : > { %v7354_v39 = vadd.f32 %v7235_v17, %v3821_v42 }
 0x37f   : > { %v3889_v10 = vsel %vm2532_vm2, %v7354_v39, -inf }
 0x380   : > { %v3890_v16 = vmax.f32 %v3882_v12, %v3889_v10  ;;  %v7377_v20 = vpop.f32.mrf.mxu1 }
 0x381   : > { %8244 = vst [vmem:[#allocation38_spill] sm:$0xff] %v7377_v20 }
 0x384   : > { %v3824_v53 = vpop.f32.mrf.mxu0 }
 0x385   : > { %v7359_v41 = vadd.f32 %v7235_v17, %v3824_v53 }
 0x387   : > { %v3891_v23 = vsel %vm2532_vm2, %v7359_v41, -inf }
 0x388   : > { %v3892_v52 = vmax.f32 %v3884_v59, %v3891_v23  ;;  %v7384_v1 = vpop.f32.mrf.mxu1 }
 0x389   : > { %8245 = vst [vmem:[#allocation39_spill] sm:$0xff] %v7384_v1 }
 0x38c   : > { %v3826_v14 = vpop.f32.mrf.mxu0 }
 0x38d   : > { %v7366_v15 = vadd.f32 %v7235_v17, %v3826_v14 }
 0x38f   : > { %v3893_v21 = vsel %vm2532_vm2, %v7366_v15, -inf }
 0x390   : > { %v3894_v0 = vmax.f32 %v3886_v38, %v3893_v21 }
 0x394   : > { %v3829_v12 = vpop.f32.mrf.mxu0 }
 0x395   : > { %v7373_v42 = vadd.f32 %v7235_v17, %v3829_v12  ;;  %v7386_v12 = vpop.f32.mrf.mxu1 }
 0x396   : > { %8246 = vst [vmem:[#allocation40_spill] sm:$0xff] %v7386_v12 }
 0x397   : > { %v3895_v10 = vsel %vm2532_vm2, %v7373_v42, -inf }
 0x398   : > { %v3896_v53 = vmax.f32 %v3888_v19, %v3895_v10 }
 0x39c   : > { %v3831_v59 = vpop.f32.mrf.mxu0 }
 0x39d   : > { %v7380_v23 = vadd.f32 %v7235_v17, %v3831_v59  ;;  %v7388_v6 = vpop.f32.mrf.mxu1 }
 0x39e   : > { %8247 = vst [vmem:[#allocation41_spill] sm:$0xff] %v7388_v6 }
 0x39f   : > { %v3897_v14 = vsel %vm2532_vm2, %v7380_v23, -inf }
 0x3a0   : > { %v3898_v38 = vmax.f32 %v3890_v16, %v3897_v14 }
 0x3a4   : > { %v3834_v21 = vpop.f32.mrf.mxu0 }
 0x3a5   : > { %v7390_v10 = vpop.f32.mrf.mxu1 }
 0x3a6   : > { %8248 = vst [vmem:[#allocation42_spill] sm:$0xff] %v7390_v10 }
 0x3ac   : > { %v3836_v33 = vpop.f32.mrf.mxu0 }
 0x3ad   : > { %v7392_v59 = vpop.f32.mrf.mxu1 }
 0x3ae   : > { %8249 = vst [vmem:[#allocation43_spill] sm:$0xff] %v7392_v59  ;;  %v7422_v59 = vadd.f32 %v7235_v17, %v3836_v33 }
 0x3b4   : > { %v3839_v58 = vpop.f32.mrf.mxu0 }
 0x3b5   : > { %v7395_v31 = vadd.f32 %v7235_v17, %v3839_v58  ;;  %v7400_v14 = vpop.f32.mrf.mxu1 }
 0x3b6   : > { %8250 = vst [vmem:[#allocation44_spill] sm:$0xff] %v7400_v14  ;;  %v7419_v14 = vadd.f32 %v7235_v17, %v3834_v21 }
 0x3b7   : > { %v3903_v37 = vsel %vm2532_vm2, %v7395_v31, -inf }
 0x3bc   : > { %v3841_v19 = vpop.f32.mrf.mxu0 }
 0x3bd   : > { %v7398_v16 = vadd.f32 %v7235_v17, %v3841_v19  ;;  %v3904_v19 = vmax.f32 %v3896_v53, %v3903_v37  ;;  %v7416_v49 = vpop.f32.mrf.mxu1 }
 0x3be   : > { %8251 = vst [vmem:[#allocation45_spill] sm:$0xff] %v7416_v49 }
 0x3bf   : > { %v3905_v25 = vsel %vm2532_vm2, %v7398_v16, -inf }
 0x3c0   : > { %v3906_v56 = vmax.f32 %v3898_v38, %v3905_v25 }
 0x3c4   : > { %v3844_v50 = vpop.f32.mrf.mxu0 }
 0x3cc   : > { %v3846_v26 = vpop.f32.mrf.mxu0 }
 0x3cd   : > { %v7428_v37 = vadd.f32 %v7235_v17, %v3846_v26 }
 0x3cf   : > { %v3909_v25 = vsel %vm2532_vm2, %v7428_v37, -inf }
 0x3d4   : > { %v3849_v9 = vpop.f32.mrf.mxu0 }
 0x3d5   : > { %v7403_v28 = vadd.f32 %v7235_v17, %v3849_v9 }
 0x3d7   : > { %v3911_v2 = vsel %vm2532_vm2, %v7403_v28, -inf }
 0x3d8   : > { %v3912_v9 = vmax.f32 %v3904_v19, %v3911_v2  ;;  %v3899_v2 = vsel %vm2532_vm2, %v7419_v14, -inf }
 0x3d9   : > { %v3900_v33 = vmax.f32 %v3892_v52, %v3899_v2 }
 0x3dc   : > { %v3851_v43 = vpop.f32.mrf.mxu0 }
 0x3dd   : > { %v7412_v58 = vadd.f32 %v7235_v17, %v3851_v43  ;;  %v7425_v43 = vadd.f32 %v7235_v17, %v3844_v50  ;;  %v7441_v50 = vpop.f32.mrf.mxu1 }
 0x3de   : > { %8252 = vst [vmem:[#allocation46_spill] sm:$0xff] %v7441_v50 }
 0x3df   : > { %v3913_v35 = vsel %vm2532_vm2, %v7412_v58, -inf }
 0x3e0   : > { %v3914_v4 = vmax.f32 %v3906_v56, %v3913_v35  ;;  %v3901_v35 = vsel %vm2532_vm2, %v7422_v59, -inf  ;;  %v3907_v56 = vsel %vm2532_vm2, %v7425_v43, -inf }
 0x3e1   : > { %v3902_v26 = vmax.f32 %v3894_v0, %v3901_v35  ;;  %v3908_v19 = vmax.f32 %v3900_v33, %v3907_v56 }
 0x3e2   : > { %v3919_v57 = vmax.f32 %v3912_v9, %v3914_v4 }
 0x3e4   : > { %v3854_v47 = vpop.f32.mrf.mxu0 }
 0x3e5   : > { %v7435_v4 = vadd.f32 %v7235_v17, %v3854_v47  ;;  %v3910_v47 = vmax.f32 %v3902_v26, %v3909_v25  ;;  %v7450_v1 = vpop.f32.mrf.mxu1 }
 0x3e7   : > { %v3915_v38 = vsel %vm2532_vm2, %v7435_v4, -inf }
 0x3e8   : > { %v3916_v49 = vmax.f32 %v3908_v19, %v3915_v38 }
 0x3ec   : > { %v3856_v53 = vpop.f32.mrf.mxu0 }
 0x3ed   : > { %v7446_v21 = vadd.f32 %v7235_v17, %v3856_v53  ;;  %v7452_v20 = vpop.f32.mrf.mxu1 }
 0x3ef   : > { %v3917_v9 = vsel %vm2532_vm2, %v7446_v21, -inf }
 0x3f0   : > { %v3918_v10 = vmax.f32 %v3910_v47, %v3917_v9 }
 0x3f2   : > { %v3920_v6 = vmax.f32 %v3916_v49, %v3918_v10 }
 0x3f4   : > { %v3921_v12 = vmax.f32 %v3919_v57, %v3920_v6 }
 0x3f5   : > { %v7510_v47 = vpop.f32.mrf.mxu1 }
 0x3f6   : > { %v3922_v52 = vrot.slane %v3921_v12, 4 }
 0x3f8   : > { %v3923_v0 = vmax.f32 %v3921_v12, %v3922_v52 }
 0x3fa   : > { %v3924_v2 = vrot.slane %v3923_v0, 2 }
 0x3fc   : > { %v3925_v35 = vmax.f32 %v3923_v0, %v3924_v2 }
 0x3fd   : > { %v7518_v19 = vpop.f32.mrf.mxu1 }
 0x3fe   : > { %v3926_v50 = vrot.slane %v3925_v35, 1 }
 0x400   : > { %v7454_v17 = vmax.f32 %v3925_v35, %v3926_v50 }
 0x402   : > { %v3928_v56 = vsub.f32 %v7240_v40, %v7454_v17  ;;  %v3929_v25 = vsub.f32 %v7253_v61, %v7454_v17  ;;  %v3930_v49 = vsub.f32 %v7269_v30, %v7454_v17  ;;  %v3931_v57 = vsub.f32 %v7282_v46, %v7454_v17 }
 0x403   : > { %v3932_v6 = vsub.f32 %v7243_v8, %v7454_v17  ;;  %v3933_v12 = vsub.f32 %v7258_v32, %v7454_v17  ;;  %v3934_v10 = vsub.f32 %v7272_v45, %v7454_v17  ;;  %v3935_v40 = vsub.f32 %v7287_v54, %v7454_v17 }
 0x404   : > { %v3936_v61 = vsub.f32 %v7296_v22, %v7454_v17  ;;  %v3937_v30 = vsub.f32 %v7304_v44, %v7454_v17  ;;  %v3938_v46 = vsub.f32 %v7311_v60, %v7454_v17  ;;  %v3939_v8 = vsub.f32 %v7317_v63, %v7454_v17 }
 0x405   : > { %v3940_v32 = vsub.f32 %v7324_v62, %v7454_v17  ;;  %v3941_v45 = vsub.f32 %v7331_v18, %v7454_v17  ;;  %v3942_v54 = vsub.f32 %v7338_v27, %v7454_v17  ;;  %v3943_v22 = vsub.f32 %v7344_v13, %v7454_v17 }
 0x406   : > { %v3944_v44 = vsub.f32 %v7349_v24, %v7454_v17  ;;  %v3945_v60 = vsub.f32 %v7354_v39, %v7454_v17  ;;  %v3946_v63 = vsub.f32 %v7359_v41, %v7454_v17  ;;  %v3947_v62 = vsub.f32 %v7366_v15, %v7454_v17 }
 0x407   : > { %v3948_v18 = vsub.f32 %v7373_v42, %v7454_v17  ;;  %v3960_v9 = vmul.f32 1.442695, %v3928_v56  ;;  %v3962_v52 = vmul.f32 1.442695, %v3929_v25  ;;  %v3964_v0 = vmul.f32 1.442695, %v3930_v49 }
 0x408   : > { %v3966_v2 = vmul.f32 1.442695, %v3931_v57  ;;  %v3968_v35 = vmul.f32 1.442695, %v3932_v6  ;;  %v3970_v26 = vmul.f32 1.442695, %v3933_v12  ;;  %v3950_v41 = vsub.f32 %v7419_v14, %v7454_v17 }
 0x409   : > { %5399 = vpow2.f32 %v3960_v9  ;;  %v3972_v53 = vmul.f32 1.442695, %v3934_v10  ;;  %v3974_v56 = vmul.f32 1.442695, %v3935_v40  ;;  %v3976_v6 = vmul.f32 1.442695, %v3936_v61 }
 0x40a   : > { %5401 = vpow2.f32 %v3962_v52  ;;  %v3978_v52 = vmul.f32 1.442695, %v3937_v30  ;;  %v3992_v27 = vmul.f32 1.442695, %v3944_v44  ;;  %v3994_v13 = vmul.f32 1.442695, %v3945_v60 }
 0x40b   : > { %5403 = vpow2.f32 %v3964_v0  ;;  %v3996_v24 = vmul.f32 1.442695, %v3946_v63  ;;  %v3998_v39 = vmul.f32 1.442695, %v3947_v62  ;;  %v4000_v63 = vmul.f32 1.442695, %v3948_v18 }
 0x40c   : > { %5405 = vpow2.f32 %v3966_v2  ;;  %v3980_v2 = vmul.f32 1.442695, %v3938_v46  ;;  %v3951_v62 = vsub.f32 %v7422_v59, %v7454_v17 }
 0x40d   : > { %5407 = vpow2.f32 %v3968_v35 }
 0x40e   : > { %5409 = vpow2.f32 %v3970_v26 }
 0x40f   : > { %v7512_v33 = vpop.eup %5399  ;;  %5411 = vpow2.f32 %v3972_v53 }
 0x410   : > { %v7514_v38 = vpop.eup %5401  ;;  %v4024_v25 = vsel %vm2532_vm2, %v7512_v33, 0.0  ;;  %5413 = vpow2.f32 %v3974_v56 }
 0x411   : > { %v7516_v50 = vpop.eup %5403  ;;  %v4025_v49 = vsel %vm2532_vm2, %v7514_v38, 0.0  ;;  %5415 = vpow2.f32 %v3976_v6 }
 0x412   : > { %v7524_v57 = vpop.eup %5405  ;;  %v4026_v12 = vadd.f32 %v4025_v49, %v4024_v25  ;;  %v4027_v10 = vsel %vm2532_vm2, %v7516_v50, 0.0  ;;  %5417 = vpow2.f32 %v3978_v52  ;;  %v3982_v25 = vmul.f32 1.442695, %v3939_v8 }
 0x413   : > { %v7528_v9 = vpop.eup %5407  ;;  %v4029_v40 = vsel %vm2532_vm2, %v7524_v57, 0.0  ;;  %5419 = vpow2.f32 %v3980_v2  ;;  %v3988_v2 = vmul.f32 1.442695, %v3942_v54 }
 0x414   : > { %v4028_v26 = vadd.f32 %v4027_v10, %v4026_v12  ;;  %v7532_v0 = vpop.eup %5409  ;;  %v4031_v61 = vsel %vm2532_vm2, %v7528_v9, 0.0  ;;  %v7542_v12 = vpop.f32.mrf.mxu1  ;;  %v3984_v10 = vmul.f32 1.442695, %v3940_v32  ;;  %5421 = vpow2.f32 %v3982_v25 }
 0x415   : > { %v7536_v53 = vpop.eup %5411  ;;  %v4033_v30 = vsel %vm2532_vm2, %v7532_v0, 0.0 }
 0x416   : > { %v4030_v35 = vadd.f32 %v4029_v40, %v4028_v26  ;;  %v7540_v56 = vpop.eup %5413  ;;  %v4035_v46 = vsel %vm2532_vm2, %v7536_v53, 0.0  ;;  %v3986_v40 = vmul.f32 1.442695, %v3941_v45  ;;  %5423 = vpow2.f32 %v3984_v10 }
 0x417   : > { %v7546_v26 = vpop.eup %5415  ;;  %v4037_v8 = vsel %vm2532_vm2, %v7540_v56, 0.0  ;;  %v3990_v45 = vmul.f32 1.442695, %v3943_v22 }
 0x418   : > { %v4032_v49 = vadd.f32 %v4031_v61, %v4030_v35  ;;  %v7550_v35 = vpop.eup %5417  ;;  %v4039_v61 = vsel %vm2532_vm2, %v7546_v26, 0.0  ;;  %5425 = vpow2.f32 %v3986_v40 }
 0x419   : > { %5427 = vpow2.f32 %v3988_v2 }
 0x41a   : > { %v4034_v6 = vadd.f32 %v4033_v30, %v4032_v49  ;;  %v7557_v49 = vpop.eup %5419  ;;  %v4041_v30 = vsel %vm2532_vm2, %v7550_v35, 0.0  ;;  %5429 = vpow2.f32 %v3990_v45 }
 0x41b   : > { %v7564_v10 = vpop.eup %5421  ;;  %5431 = vpow2.f32 %v3992_v27  ;;  %v8253_v27 = vsub.f32 %v7380_v23, %v7454_v17  ;;  %v3953_v23 = vsub.f32 %v7398_v16, %v7454_v17 }
 0x41c   : > { %v4036_v52 = vadd.f32 %v4035_v46, %v4034_v6  ;;  %v4043_v6 = vsel %vm2532_vm2, %v7557_v49, 0.0  ;;  %v7571_v46 = vpop.eup %5423  ;;  %v7573_v40 = vpop.f32.mrf.mxu1  ;;  %5433 = vpow2.f32 %v3994_v13  ;;  %v3952_v13 = vsub.f32 %v7395_v31, %v7454_v17 }
 0x41d   : > { %v4047_v2 = vsel %vm2532_vm2, %v7571_v46, 0.0  ;;  %5435 = vpow2.f32 %v3996_v24  ;;  %v3954_v31 = vsub.f32 %v7425_v43, %v7454_v17  ;;  %v4010_v16 = vmul.f32 1.442695, %v3953_v23 }
 0x41e   : > { %v4038_v32 = vadd.f32 %v4037_v8, %v4036_v52  ;;  %v4045_v52 = vsel %vm2532_vm2, %v7564_v10, 0.0  ;;  %v7580_v8 = vpop.eup %5425  ;;  %5437 = vpow2.f32 %v3998_v39 }
 0x41f   : > { %5439 = vpow2.f32 %v4000_v63 }
 0x420   : > { %v4040_v25 = vadd.f32 %v4039_v61, %v4038_v32  ;;  %v7587_v32 = vpop.eup %5427  ;;  %v4049_v61 = vsel %vm2532_vm2, %v7580_v8, 0.0 }
 0x421   : > { %v7594_v45 = vpop.eup %5429 }
 0x422   : > { %v4042_v54 = vadd.f32 %v4041_v30, %v4040_v25  ;;  %v4051_v30 = vsel %vm2532_vm2, %v7587_v32, 0.0  ;;  %v7603_v15 = vpop.eup %5431 }
 0x423   : > { %v7612_v42 = vpop.eup %5433  ;;  %v4055_v59 = vsel %vm2532_vm2, %v7603_v15, 0.0 }
 0x424   : > { %v4044_v22 = vadd.f32 %v4043_v6, %v4042_v54  ;;  %v4002_v54 = vmul.f32 1.442695, %v8253_v27  ;;  %v4053_v6 = vsel %vm2532_vm2, %v7594_v45, 0.0  ;;  %v7614_v18 = vpop.f32.mrf.mxu1  ;;  %v7620_v24 = vpop.eup %5435  ;;  %v4057_v39 = vsel %vm2532_vm2, %v7612_v42, 0.0 }
 0x425   : > { %v4059_v63 = vsel %vm2532_vm2, %v7620_v24, 0.0 }
 0x426   : > { %v4046_v44 = vadd.f32 %v4045_v52, %v4044_v22  ;;  %v4004_v22 = vmul.f32 1.442695, %v3950_v41  ;;  %5441 = vpow2.f32 %v4002_v54  ;;  %v4012_v54 = vmul.f32 1.442695, %v3954_v31 }
 0x428   : > { %v4048_v60 = vadd.f32 %v4047_v2, %v4046_v44  ;;  %v4006_v44 = vmul.f32 1.442695, %v3951_v62  ;;  %5443 = vpow2.f32 %v4004_v22  ;;  %v8254_v22 = vsub.f32 %v7428_v37, %v7454_v17 }
 0x429   : > { %v8256_v37 = vsub.f32 %v7412_v58, %v7454_v17  ;;  %v8258_v58 = vsub.f32 %v7446_v21, %v7454_v17 }
 0x42a   : > { %v4050_v25 = vadd.f32 %v4049_v61, %v4048_v60  ;;  %v7626_v60 = vpop.eup %5437  ;;  %v4008_v61 = vmul.f32 1.442695, %v3952_v13  ;;  %5445 = vpow2.f32 %v4006_v44 }
 0x42b   : > { %v4061_v62 = vsel %vm2532_vm2, %v7626_v60, 0.0 }
 0x42c   : > { %v4052_v14 = vadd.f32 %v4051_v30, %v4050_v25  ;;  %v7632_v25 = vpop.eup %5439  ;;  %5447 = vpow2.f32 %v4008_v61  ;;  %v7642_v13 = vpop.f32.mrf.mxu1 }
 0x42d   : > { %v7636_v27 = vpop.eup %5441  ;;  %v4063_v43 = vsel %vm2532_vm2, %v7632_v25, 0.0  ;;  %5449 = vpow2.f32 %v4010_v16 }
 0x42e   : > { %v4054_v52 = vadd.f32 %v4053_v6, %v4052_v14  ;;  %v7640_v6 = vpop.eup %5443  ;;  %v4065_v23 = vsel %vm2532_vm2, %v7636_v27, 0.0  ;;  %5451 = vpow2.f32 %v4012_v54 }
 0x42f   : > { %v4067_v61 = vsel %vm2532_vm2, %v7640_v6, 0.0 }
 0x430   : > { %v4056_v2 = vadd.f32 %v4055_v59, %v4054_v52  ;;  %v4014_v52 = vmul.f32 1.442695, %v8254_v22  ;;  %v7649_v44 = vpop.eup %5445 }
 0x432   : > { %v4058_v41 = vadd.f32 %v4057_v39, %v4056_v2  ;;  %v8255_v2 = vsub.f32 %v7403_v28, %v7454_v17  ;;  %5453 = vpow2.f32 %v4014_v52  ;;  %v8257_v28 = vsub.f32 %v7435_v4, %v7454_v17 }
 0x433   : > { %v4022_v52 = vmul.f32 1.442695, %v8258_v58 }
 0x434   : > { %v4060_v30 = vadd.f32 %v4059_v63, %v4058_v41  ;;  %v4016_v39 = vmul.f32 1.442695, %v8255_v2  ;;  %v7656_v41 = vpop.eup %5447  ;;  %v4018_v63 = vmul.f32 1.442695, %v8256_v37  ;;  %v4020_v54 = vmul.f32 1.442695, %v8257_v28 }
 0x436   : > { %v4062_v14 = vadd.f32 %v4061_v62, %v4060_v30  ;;  %v4069_v30 = vsel %vm2532_vm2, %v7649_v44, 0.0  ;;  %v7663_v62 = vpop.eup %5449  ;;  %5455 = vpow2.f32 %v4016_v39  ;;  %v7679_v39 = vpop.f32.mrf.mxu1 }
 0x437   : > { %v7670_v22 = vpop.eup %5451  ;;  %5457 = vpow2.f32 %v4018_v63 }
 0x438   : > { %v4064_v59 = vadd.f32 %v4063_v43, %v4062_v14  ;;  %v4071_v43 = vsel %vm2532_vm2, %v7656_v41, 0.0  ;;  %v7677_v2 = vpop.eup %5453  ;;  %5459 = vpow2.f32 %v4020_v54 }
 0x439   : > { %5461 = vpow2.f32 %v4022_v52  ;;  %v4077_v21 = vsel %vm2532_vm2, %v7677_v2, 0.0 }
 0x43a   : > { %v4066_v31 = vadd.f32 %v4065_v23, %v4064_v59  ;;  %v4073_v23 = vsel %vm2532_vm2, %v7663_v62, 0.0 }
 0x43c   : > { %v4068_v16 = vadd.f32 %v4067_v61, %v4066_v31  ;;  %v4075_v31 = vsel %vm2532_vm2, %v7670_v22, 0.0  ;;  %v7683_v61 = vpop.eup %5455 }
 0x43d   : > { %8259 = vst [vmem:[#allocation47_spill] sm:$0xff] %v7683_v61  ;;  %v7687_v17 = vpop.eup %5457 }
 0x43e   : > { %v4070_v14 = vadd.f32 %v4069_v30, %v4068_v16  ;;  %8260 = vst [vmem:[#allocation48_spill] sm:$0xff] %v7687_v17  ;;  %v4079_v16 = vsel %vm2532_vm2, %v7683_v61, 0.0  ;;  %v7691_v30 = vpop.eup %5459  ;;  %v4081_v54 = vsel %vm2532_vm2, %v7687_v17, 0.0  ;;  %v3301_v52 = vpop.f32.mrf.mxu1 }
 0x43f   : > { %8261 = vst [vmem:[#allocation49_spill] sm:$0xff] %v7691_v30  ;;  %v4083_v58 = vsel %vm2532_vm2, %v7691_v30, 0.0 }
 0x440   : > { %v4072_v59 = vadd.f32 %v4071_v43, %v4070_v14  ;;  %v7695_v14 = vpop.eup %5461 }
 0x442   : > { %v4074_v4 = vadd.f32 %v4073_v23, %v4072_v59  ;;  %v4085_v23 = vsel %vm2532_vm2, %v7695_v14, 0.0 }
 0x444   : > { %v4076_v37 = vadd.f32 %v4075_v31, %v4074_v4 }
 0x446   : > { %v4078_v63 = vadd.f32 %v4077_v21, %v4076_v37  ;;  %v7701_v61 = vpop.f32.mrf.mxu1 }
 0x447   : > { %8262 = vst [vmem:[#allocation50_spill] sm:$0xff] %v7701_v61  ;;  %v8273_v61 = vld [vmem:[#allocation41_spill] sm:$0xff] }
 0x448   : > { %v4080_v28 = vadd.f32 %v4079_v16, %v4078_v63 }
 0x44a   : > { %v4082_v43 = vadd.f32 %v4081_v54, %v4080_v28  ;;  %v7706_v28 = vld [vmem:[%s8097_s4] ss:$0 sm:$0xff] }
 0x44b   : > { %8263 = vst [vmem:[#allocation51_spill] sm:$0xff] %v7706_v28  ;;  %v7764_v30 = vadd.f32 %v7706_v28, %v8273_v61  ;;  %v8279_v61 = vld [vmem:[#allocation46_spill] sm:$0xff] }
 0x44c   : > { %v4084_v59 = vadd.f32 %v4083_v58, %v4082_v43  ;;  %v7712_v58 = vadd.f32 %v7706_v28, %v7209_v29  ;;  %v7732_v29 = vadd.f32 %v7706_v28, %v7245_v51 }
 0x44e   : > { %v4086_v4 = vadd.f32 %v4085_v23, %v4084_v59  ;;  %v7708_v54 = vpop.f32.mrf.mxu1  ;;  %v7716_v59 = vadd.f32 %v7706_v28, %v7214_v11  ;;  %v7720_v23 = vadd.f32 %v7706_v28, %v7219_v36  ;;  %v7736_v11 = vadd.f32 %v7706_v28, %v7265_v7 }
 0x44f   : > { %8264 = vst [vmem:[#allocation52_spill] sm:$0xff] %v7708_v54  ;;  %v7740_v36 = vadd.f32 %v7706_v28, %v7279_v3  ;;  %v8271_v3 = vld [vmem:[#allocation40_spill] sm:$0xff] }
 0x450   : > { %v4087_v31 = vrot.slane %v4086_v4, 4  ;;  %v7760_v54 = vadd.f32 %v7706_v28, %v8271_v3 }
 0x452   : > { %v4088_v37 = vadd.f32 %v4087_v31, %v4086_v4  ;;  %v7724_v31 = vadd.f32 %v7706_v28, %v7225_v55  ;;  %v7744_v55 = vadd.f32 %v7706_v28, %v7363_v48  ;;  %8272 = vst [vmem:[#allocation40_spill] sm:$0xff] %v7760_v54  ;;  %v8278_v54 = vld [vmem:[#allocation45_spill] sm:$0xff] }
 0x454   : > { %v4089_v21 = vrot.slane %v4088_v37, 2  ;;  %8265 = vst [vmem:[#allocation53_spill] sm:$0xff] %v7744_v55  ;;  %v7780_v55 = vadd.f32 %v7706_v28, %v8278_v54  ;;  %v7797_v54 = vadd.f32 %v7706_v28, %v7510_v47  ;;  %v7814_v47 = vadd.f32 %v7706_v28, %v7614_v18 }
 0x456   : > { %v4090_v63 = vadd.f32 %v4089_v21, %v4088_v37  ;;  %v7728_v37 = vadd.f32 %v7706_v28, %v7230_v5  ;;  %v7748_v5 = vadd.f32 %v7706_v28, %v7370_v34 }
 0x458   : > { %v4091_v16 = vrot.slane %v4090_v63, 1  ;;  %8266 = vst [vmem:[#allocation54_spill] sm:$0xff] %v7748_v5  ;;  %v8274_v5 = vld [vmem:[#allocation42_spill] sm:$0xff] }
 0x45a   : > { %v4092_v17 = vadd.f32 %v4091_v16, %v4090_v63  ;;  %v8267_v63 = vld [vmem:[#allocation38_spill] sm:$0xff]  ;;  %v8269_v16 = vld [vmem:[#allocation39_spill] sm:$0xff] }
 0x45b   : > { %v7752_v51 = vadd.f32 %v7706_v28, %v8267_v63  ;;  %v7756_v7 = vadd.f32 %v7706_v28, %v8269_v16  ;;  %v7768_v63 = vadd.f32 %v7706_v28, %v8274_v5  ;;  %v7788_v5 = vadd.f32 %v7706_v28, %v7450_v1 }
 0x45c   : > { %5463 = vrcp.f32 %v4092_v17  ;;  %v4104_v48 = vand.u32 2147483648, %v4092_v17  ;;  %vm4098_vm5 = vweird.f32 %v4092_v17 }
 0x45d   : > { %8268 = vst [vmem:[#allocation38_spill] sm:$0xff] %v7752_v51  ;;  %v8276_v51 = vld [vmem:[#allocation43_spill] sm:$0xff] }
 0x45e   : > { %8270 = vst [vmem:[#allocation39_spill] sm:$0xff] %v7756_v7  ;;  %v7772_v16 = vadd.f32 %v7706_v28, %v8276_v51  ;;  %v8277_v7 = vld [vmem:[#allocation44_spill] sm:$0xff]  ;;  %v7793_v51 = vadd.f32 %v7706_v28, %v7452_v20  ;;  %v4105_v1 = vor.u32 1.1754944e-38, %v4104_v48  ;;  %v7810_v20 = vadd.f32 %v7706_v28, %v7573_v40 }
 0x45f   : > { %8275 = vst [vmem:[#allocation41_spill] sm:$0xff] %v7768_v63  ;;  %v7776_v3 = vadd.f32 %v7706_v28, %v8277_v7  ;;  %v7801_v7 = vadd.f32 %v7706_v28, %v7518_v19  ;;  %v7818_v19 = vadd.f32 %v7706_v28, %v7642_v13  ;;  %v7822_v48 = vadd.f32 %v7706_v28, %v7679_v39 }
 0x460   : > { %v7829_v40 = vadd.f32 %v7706_v28, %v3301_v52 }
 0x462   : > { %v5464_v43 = vpop.eup %5463  ;;  %8281 = vst [vmem:[#allocation43_spill] sm:$0xff] %v7829_v40  ;;  %v8286_v40 = vld [vmem:[#allocation54_spill] sm:$0xff] }
 0x463   : > { %v4094_v4 = vmul.f32 %v5464_v43, %v4092_v17  ;;  %vm4099_vm4 = vweird.f32 %v5464_v43 }
 0x464   : > { %vm4100_vm6 = vmor %vm4098_vm5, %vm4099_vm4 }
 0x465   : > { %v4095_v21 = vsub.f32 1.0, %v4094_v4  ;;  %v4102_v4 = vand.u32 2147483647, %v4092_v17  ;;  %v7806_v17 = vadd.f32 %v7706_v28, %v7542_v12 }
 0x467   : > { %v4096_v34 = vmul.f32 %v5464_v43, %v4095_v21  ;;  %v7784_v21 = vadd.f32 %v7706_v28, %v8279_v61  ;;  %v3308_v61 = vpop.f32.mrf.mxu1  ;;  %vm4103_vm7 = vcmp.eq.f32.partialorder %v4102_v4, 8.507059e+37 }
 0x469   : > { %v4097_v63 = vadd.f32 %v5464_v43, %v4096_v34 }
 0x46b   : > { %v4101_v34 = vsel %vm4100_vm6, %v5464_v43, %v4097_v63  ;;  %v3309_v43 = vadd.f32 %v7706_v28, %v3308_v61 }
 0x46c   : > { %v7824_v12 = vsel %vm4103_vm7, %v4105_v1, %v4101_v34  ;;  %v8282_v34 = vld [vmem:[#allocation20_spill] sm:$0xff] }
 0x46d   : > { %8280 = vst [vmem:[#allocation42_spill] sm:$0xff] %v7824_v12  ;;  %v4139_v18 = vmul.f32 %v7695_v14, %v7824_v12  ;;  %v4108_v13 = vmul.f32 %v7512_v33, %v7824_v12  ;;  %v4109_v4 = vmul.f32 %v7514_v38, %v7824_v12  ;;  %v4110_v39 = vmul.f32 %v7516_v50, %v7824_v12 }
 0x46e   : > { %v4111_v63 = vmul.f32 %v7524_v57, %v7824_v12  ;;  %v4112_v52 = vmul.f32 %v7528_v9, %v7824_v12  ;;  %v4113_v61 = vmul.f32 %v7532_v0, %v7824_v12  ;;  %v4114_v14 = vmul.f32 %v7536_v53, %v7824_v12 }
 0x46f   : > { %v4171_v1 = vmul.f32 %v4139_v18, %v3309_v43  ;;  %v4115_v33 = vmul.f32 %v7540_v56, %v7824_v12  ;;  %v4116_v38 = vmul.f32 %v7546_v26, %v7824_v12  ;;  %v4117_v50 = vmul.f32 %v7550_v35, %v7824_v12 }
 0x470   : > { %v4118_v57 = vmul.f32 %v7557_v49, %v7824_v12  ;;  %v4119_v9 = vmul.f32 %v7564_v10, %v7824_v12  ;;  %v8283_v0 = vmax.f32 %v8282_v34, 0.0  ;;  %v4120_v53 = vmul.f32 %v7571_v46, %v7824_v12 }
 0x471   : > { %v4121_v56 = vmul.f32 %v7580_v8, %v7824_v12  ;;  %v4122_v26 = vmul.f32 %v7587_v32, %v7824_v12  ;;  %v4123_v35 = vmul.f32 %v7594_v45, %v7824_v12  ;;  %v4124_v49 = vmul.f32 %v7603_v15, %v7824_v12 }
 0x472   : > { %v4203_v43 = vadd.f32 %v4171_v1, %v8283_v0  ;;  %v4125_v10 = vmul.f32 %v7612_v42, %v7824_v12  ;;  %v4126_v18 = vmul.f32 %v7620_v24, %v7824_v12  ;;  %v4127_v46 = vmul.f32 %v7626_v60, %v7824_v12 }
 0x473   : > { %v4128_v8 = vmul.f32 %v7632_v25, %v7824_v12  ;;  %v4129_v32 = vmul.f32 %v7636_v27, %v7824_v12  ;;  %v4130_v45 = vmul.f32 %v7640_v6, %v7824_v12  ;;  %v4131_v15 = vmul.f32 %v7649_v44, %v7824_v12  ;;  %v8284_v27 = vld [vmem:[#allocation47_spill] sm:$0xff] }
 0x474   : > { %4235 = vst.msk [vmem:[%s7874_s23 + $0xf8] sm:$0xff] %vm2532_vm2, %v4203_v43  ;;  %v4132_v42 = vmul.f32 %v7656_v41, %v7824_v12  ;;  %v4133_v24 = vmul.f32 %v7663_v62, %v7824_v12  ;;  %v4134_v60 = vmul.f32 %v7670_v22, %v7824_v12  ;;  %v4135_v25 = vmul.f32 %v7677_v2, %v7824_v12  ;;  %v8285_v2 = vld [vmem:[#allocation53_spill] sm:$0xff] }
 0x475   : > { %v4136_v1 = vmul.f32 %v8284_v27, %v7824_v12  ;;  %v4140_v6 = vmul.f32 %v4108_v13, %v7712_v58  ;;  %v4141_v34 = vmul.f32 %v4109_v4, %v7716_v59  ;;  %v4142_v44 = vmul.f32 %v4110_v39, %v7720_v23  ;;  %v8287_v12 = vld [vmem:[#allocation38_spill] sm:$0xff]  ;;  %v8288_v13 = vld [vmem:[#allocation39_spill] sm:$0xff]  ;;  %v8289_v4 = vld [vmem:[#allocation40_spill] sm:$0xff] }
 0x476   : > { %v4143_v41 = vmul.f32 %v4111_v63, %v7724_v31  ;;  %v4144_v0 = vmul.f32 %v4112_v52, %v7728_v37  ;;  %v4145_v62 = vmul.f32 %v4113_v61, %v7732_v29  ;;  %v4146_v22 = vmul.f32 %v4114_v14, %v7736_v11  ;;  %v8290_v39 = vld [vmem:[#allocation41_spill] sm:$0xff] }
 0x477   : > { %v4147_v43 = vmul.f32 %v4115_v33, %v7740_v36  ;;  %v4148_v28 = vmul.f32 %v4116_v38, %v8285_v2  ;;  %v4149_v27 = vmul.f32 %v4117_v50, %v8286_v40  ;;  %v4150_v58 = vmul.f32 %v4118_v57, %v8287_v12  ;;  %v8292_v14 = vld [vmem:[#allocation25_spill] sm:$0xff]  ;;  %v8318_v2 = vld [vmem:[#allocation36_spill] sm:$0xff] }
 0x478   : > { %v4151_v59 = vmul.f32 %v4119_v9, %v8288_v13  ;;  %v4152_v23 = vmul.f32 %v4120_v53, %v8289_v4  ;;  %v4153_v31 = vmul.f32 %v4121_v56, %v7764_v30  ;;  %v4154_v37 = vmul.f32 %v4122_v26, %v8290_v39  ;;  %v8298_v9 = vld [vmem:[#allocation26_spill] sm:$0xff]  ;;  %v8302_v26 = vld [vmem:[#allocation28_spill] sm:$0xff] }
 0x479   : > { %v4155_v29 = vmul.f32 %v4123_v35, %v7772_v16  ;;  %v4156_v11 = vmul.f32 %v4124_v49, %v7776_v3  ;;  %v4157_v36 = vmul.f32 %v4125_v10, %v7780_v55  ;;  %v4158_v63 = vmul.f32 %v4126_v18, %v7784_v21  ;;  %v8304_v10 = vld [vmem:[#allocation31_spill] sm:$0xff] }
 0x47a   : > { %v4159_v40 = vmul.f32 %v4127_v46, %v7788_v5  ;;  %v4160_v12 = vmul.f32 %v4128_v8, %v7793_v51  ;;  %v4161_v52 = vmul.f32 %v4129_v32, %v7797_v54  ;;  %v4162_v30 = vmul.f32 %v4130_v45, %v7801_v7  ;;  %v8291_v5 = vld [vmem:[#allocation43_spill] sm:$0xff]  ;;  %v8294_v7 = vld [vmem:[#allocation24_spill] sm:$0xff]  ;;  %v8306_v8 = vld [vmem:[#allocation30_spill] sm:$0xff] }
 0x47b   : > { %v4163_v61 = vmul.f32 %v4131_v15, %v7806_v17  ;;  %v4164_v16 = vmul.f32 %v4132_v42, %v7810_v20  ;;  %v4165_v55 = vmul.f32 %v4133_v24, %v7814_v47  ;;  %v4166_v3 = vmul.f32 %v4134_v60, %v7818_v19  ;;  %v8296_v17 = vld [vmem:[#allocation27_spill] sm:$0xff]  ;;  %v8300_v19 = vld [vmem:[#allocation29_spill] sm:$0xff]  ;;  %v8310_v60 = vld [vmem:[#allocation32_spill] sm:$0xff] }
 0x47c   : > { %v4167_v21 = vmul.f32 %v4135_v25, %v7822_v48  ;;  %v4168_v51 = vmul.f32 %v4136_v1, %v8291_v5  ;;  %v8293_v33 = vmax.f32 %v8292_v14, 0.0  ;;  %v8295_v38 = vmax.f32 %v8294_v7, 0.0  ;;  %v8308_v15 = vld [vmem:[#allocation33_spill] sm:$0xff] }
 0x47d   : > { %v8297_v57 = vmax.f32 %v8296_v17, 0.0  ;;  %v8299_v47 = vmax.f32 %v8298_v9, 0.0  ;;  %v8301_v56 = vmax.f32 %v8300_v19, 0.0  ;;  %v8303_v35 = vmax.f32 %v8302_v26, 0.0  ;;  %v8338_v26 = vld [vmem:[#allocation49_spill] sm:$0xff] }
 0x47e   : > { %v4172_v54 = vadd.f32 %v4140_v6, %v8293_v33  ;;  %v4173_v50 = vadd.f32 %v4141_v34, %v8295_v38  ;;  %v8305_v18 = vmax.f32 %v8304_v10, 0.0  ;;  %v8307_v32 = vmax.f32 %v8306_v8, 0.0  ;;  %v8312_v6 = vld [vmem:[#allocation35_spill] sm:$0xff]  ;;  %v8343_v8 = vld [vmem:[#allocation21_spill] sm:$0xff] }
 0x47f   : > { %v4174_v20 = vadd.f32 %v4142_v44, %v8297_v57  ;;  %v4175_v53 = vadd.f32 %v4143_v41, %v8299_v47  ;;  %v4176_v48 = vadd.f32 %v4144_v0, %v8301_v56  ;;  %v4177_v49 = vadd.f32 %v4145_v62, %v8303_v35  ;;  %v8314_v41 = vld [vmem:[#allocation34_spill] sm:$0xff]  ;;  %v8336_v56 = vld [vmem:[#allocation17_spill] sm:$0xff]  ;;  %v8339_v35 = vld [vmem:[#allocation19_spill] sm:$0xff] }
 0x480   : > { %4204 = vst.msk [vmem:[%s7874_s23] sm:$0xff] %vm2532_vm2, %v4172_v54  ;;  %v4178_v46 = vadd.f32 %v4146_v22, %v8305_v18  ;;  %v4179_v45 = vadd.f32 %v4147_v43, %v8307_v32  ;;  %v8309_v42 = vmax.f32 %v8308_v15, 0.0  ;;  %v8311_v25 = vmax.f32 %v8310_v60, 0.0  ;;  %v8342_v18 = vld [vmem:[#allocation51_spill] sm:$0xff] }
 0x481   : > { %4205 = vst.msk [vmem:[%s7874_s23 + $0x8] sm:$0xff] %vm2532_vm2, %v4173_v50  ;;  %v8313_v34 = vmax.f32 %v8312_v6, 0.0  ;;  %v8315_v0 = vmax.f32 %v8314_v41, 0.0  ;;  %v8344_v32 = vmax.f32 %v8343_v8, 0.0  ;;  %v8352_v41 = vld [vmem:[#allocation12_spill] sm:$0xff] }
 0x482   : > { %4206 = vst.msk [vmem:[%s7874_s23 + $0x10] sm:$0xff] %vm2532_vm2, %v4174_v20  ;;  %v4180_v24 = vadd.f32 %v4148_v28, %v8309_v42  ;;  %v4181_v1 = vadd.f32 %v4149_v27, %v8311_v25  ;;  %v8316_v28 = vld [vmem:[#allocation37_spill] sm:$0xff]  ;;  %v8319_v27 = vmax.f32 %v8318_v2, 0.0  ;;  %v8346_v42 = vld [vmem:[#allocation6_spill] sm:$0xff]  ;;  %v8348_v25 = vld [vmem:[#allocation8_spill] sm:$0xff] }
 0x483   : > { %4207 = vst.msk [vmem:[%s7874_s23 + $0x18] sm:$0xff] %vm2532_vm2, %v4175_v53  ;;  %v4182_v44 = vadd.f32 %v4150_v58, %v8313_v34  ;;  %v4183_v62 = vadd.f32 %v4151_v59, %v8315_v0  ;;  %v8317_v22 = vmax.f32 %v8316_v28, 0.0  ;;  %v8320_v58 = vld [vmem:[#allocation22_spill] sm:$0xff]  ;;  %v8322_v59 = vld [vmem:[#allocation23_spill] sm:$0xff]  ;;  %v8335_v53 = vld [vmem:[#allocation48_spill] sm:$0xff]  ;;  %v8353_v0 = vmax.f32 %v8352_v41, 0.0 }
 0x484   : > { %4208 = vst.msk [vmem:[%s7874_s23 + $0x20] sm:$0xff] %vm2532_vm2, %v4176_v48  ;;  %v4185_v13 = vadd.f32 %v4153_v31, %v8319_v27  ;;  %v8321_v4 = vmax.f32 %v8320_v58, 0.0  ;;  %v8323_v5 = vmax.f32 %v8322_v59, 0.0  ;;  %v8326_v31 = vld [vmem:[#allocation9_spill] sm:$0xff]  ;;  %v8337_v48 = vmax.f32 %v8336_v56, 0.0  ;;  %v8350_v34 = vld [vmem:[#allocation10_spill] sm:$0xff] }
 0x485   : > { %4209 = vst.msk [vmem:[%s7874_s23 + $0x28] sm:$0xff] %vm2532_vm2, %v4177_v49  ;;  %v4184_v43 = vadd.f32 %v4152_v23, %v8317_v22  ;;  %v8324_v23 = vld [vmem:[#allocation7_spill] sm:$0xff]  ;;  %v8327_v7 = vmax.f32 %v8326_v31, 0.0  ;;  %v8340_v49 = vmax.f32 %v8339_v35, 0.0  ;;  %v8358_v27 = vld [vmem:[#allocation18_spill] sm:$0xff] }
 0x486   : > { %4210 = vst.msk [vmem:[%s7874_s23 + $0x30] sm:$0xff] %vm2532_vm2, %v4178_v46  ;;  %v4186_v39 = vadd.f32 %v4154_v37, %v8321_v4  ;;  %v4187_v14 = vadd.f32 %v4155_v29, %v8323_v5  ;;  %v8325_v33 = vmax.f32 %v8324_v23, 0.0  ;;  %v8328_v37 = vld [vmem:[#allocation11_spill] sm:$0xff]  ;;  %v8330_v29 = vld [vmem:[#allocation13_spill] sm:$0xff] }
 0x487   : > { %4211 = vst.msk [vmem:[%s7874_s23 + $0x38] sm:$0xff] %vm2532_vm2, %v4179_v45  ;;  %v4189_v38 = vadd.f32 %v4157_v36, %v8327_v7  ;;  %v8329_v50 = vmax.f32 %v8328_v37, 0.0  ;;  %v8331_v57 = vmax.f32 %v8330_v29, 0.0  ;;  %v8334_v36 = vld [vmem:[#allocation42_spill] sm:$0xff]  ;;  %v4194_v10 = vadd.f32 %v4162_v30, %v8340_v49  ;;  %v8345_v45 = vld [vmem:[#allocation52_spill] sm:$0xff] }
 0x488   : > { %4212 = vst.msk [vmem:[%s7874_s23 + $0x40] sm:$0xff] %vm2532_vm2, %v4180_v24  ;;  %v4188_v54 = vadd.f32 %v4156_v11, %v8325_v33  ;;  %v8332_v11 = vld [vmem:[#allocation15_spill] sm:$0xff]  ;;  %v4137_v19 = vmul.f32 %v8335_v53, %v8334_v36  ;;  %v3307_v15 = vadd.f32 %v8342_v18, %v8345_v45  ;;  %v8347_v24 = vmax.f32 %v8346_v42, 0.0 }
 0x489   : > { %4213 = vst.msk [vmem:[%s7874_s23 + $0x48] sm:$0xff] %vm2532_vm2, %v4181_v1  ;;  %v4190_v17 = vadd.f32 %v4158_v63, %v8329_v50  ;;  %v4191_v20 = vadd.f32 %v4159_v40, %v8331_v57  ;;  %v8333_v9 = vmax.f32 %v8332_v11, 0.0  ;;  %v4193_v63 = vadd.f32 %v4161_v52, %v8337_v48 }
 0x48a   : > { %4214 = vst.msk [vmem:[%s7874_s23 + $0x50] sm:$0xff] %vm2532_vm2, %v4182_v44  ;;  %v4138_v40 = vmul.f32 %v8338_v26, %v8334_v36  ;;  %v4195_v52 = vadd.f32 %v4163_v61, %v8344_v32  ;;  %v4196_v30 = vadd.f32 %v4164_v16, %v8347_v24  ;;  %v8349_v1 = vmax.f32 %v8348_v25, 0.0 }
 0x48b   : > { %4215 = vst.msk [vmem:[%s7874_s23 + $0x58] sm:$0xff] %vm2532_vm2, %v4183_v62  ;;  %v4192_v47 = vadd.f32 %v4160_v12, %v8333_v9  ;;  %v8341_v12 = vld [vmem:[#allocation50_spill] sm:$0xff]  ;;  %v8351_v44 = vmax.f32 %v8350_v34, 0.0  ;;  %v4199_v62 = vadd.f32 %v4167_v21, %v8353_v0 }
 0x48c   : > { %4216 = vst.msk [vmem:[%s7874_s23 + $0x60] sm:$0xff] %vm2532_vm2, %v4184_v43  ;;  %v3304_v46 = vadd.f32 %v8342_v18, %v8341_v12  ;;  %v4197_v6 = vadd.f32 %v4165_v55, %v8349_v1  ;;  %v4170_v61 = vmul.f32 %v4138_v40, %v3307_v15  ;;  %v8354_v55 = vld [vmem:[#allocation14_spill] sm:$0xff]  ;;  %v8356_v43 = vld [vmem:[#allocation16_spill] sm:$0xff] }
 0x48d   : > { %4217 = vst.msk [vmem:[%s7874_s23 + $0x68] sm:$0xff] %vm2532_vm2, %v4185_v13  ;;  %v4198_v16 = vadd.f32 %v4166_v3, %v8351_v44  ;;  %v8355_v28 = vmax.f32 %v8354_v55, 0.0  ;;  %v8357_v2 = vmax.f32 %v8356_v43, 0.0  ;;  %v8359_v13 = vmax.f32 %v8358_v27, 0.0 }
 0x48e   : > { %4218 = vst.msk [vmem:[%s7874_s23 + $0x70] sm:$0xff] %vm2532_vm2, %v4186_v39  ;;  %v4169_v60 = vmul.f32 %v4137_v19, %v3304_v46 }
 0x48f   : > { %4219 = vst.msk [vmem:[%s7874_s23 + $0x78] sm:$0xff] %vm2532_vm2, %v4187_v14  ;;  %v4200_v22 = vadd.f32 %v4168_v51, %v8355_v28  ;;  %v4202_v58 = vadd.f32 %v4170_v61, %v8359_v13 }
 0x490   : > { %4220 = vst.msk [vmem:[%s7874_s23 + $0x80] sm:$0xff] %vm2532_vm2, %v4188_v54  ;;  %v4201_v3 = vadd.f32 %v4169_v60, %v8357_v2 }
 0x491   : > { %4221 = vst.msk [vmem:[%s7874_s23 + $0x88] sm:$0xff] %vm2532_vm2, %v4189_v38 }
 0x492   : > { %4222 = vst.msk [vmem:[%s7874_s23 + $0x90] sm:$0xff] %vm2532_vm2, %v4190_v17 }
 0x493   : > { %4223 = vst.msk [vmem:[%s7874_s23 + $0x98] sm:$0xff] %vm2532_vm2, %v4191_v20 }
 0x494   : > { %4224 = vst.msk [vmem:[%s7874_s23 + $0xa0] sm:$0xff] %vm2532_vm2, %v4192_v47 }
 0x495   : > { %4225 = vst.msk [vmem:[%s7874_s23 + $0xa8] sm:$0xff] %vm2532_vm2, %v4193_v63 }
 0x496   : > { %4226 = vst.msk [vmem:[%s7874_s23 + $0xb0] sm:$0xff] %vm2532_vm2, %v4194_v10 }
 0x497   : > { %4227 = vst.msk [vmem:[%s7874_s23 + $0xb8] sm:$0xff] %vm2532_vm2, %v4195_v52 }
 0x498   : > { %4228 = vst.msk [vmem:[%s7874_s23 + $0xc0] sm:$0xff] %vm2532_vm2, %v4196_v30 }
 0x499   : > { %4229 = vst.msk [vmem:[%s7874_s23 + $0xc8] sm:$0xff] %vm2532_vm2, %v4197_v6 }
 0x49a   : > { %4230 = vst.msk [vmem:[%s7874_s23 + $0xd0] sm:$0xff] %vm2532_vm2, %v4198_v16 }
 0x49b   : > { %4231 = vst.msk [vmem:[%s7874_s23 + $0xd8] sm:$0xff] %vm2532_vm2, %v4199_v62 }
 0x49c   : > { %4232 = vst.msk [vmem:[%s7874_s23 + $0xe0] sm:$0xff] %vm2532_vm2, %v4200_v22 }
 0x49d   : > { %4233 = vst.msk [vmem:[%s7874_s23 + $0xe8] sm:$0xff] %vm2532_vm2, %v4201_v3 }
 0x49e   : > { %4234 = vst.msk [vmem:[%s7874_s23 + $0xf0] sm:$0xff] %vm2532_vm2, %v4202_v58 }
 0x49f   : > { %5493 = shalt.err (!%p5490_p3)
}
 0x4a0   : > { %s5531_s21 = smov 128   ;;  %s5532_s23 = smov 8  }
 0x4a1   : > { %5353 = dma.vmem_to_hbm [thread:$0]  (%p5621_p5), %s4250_s28, 4096, %s4252_s29, %s4237_s14, %s5531_s21, %s5531_s21, %s5532_s23  }
 0x4a2 PF: > { %p5359_p4 = scmp.ge.s32.totalorder %s5528_s12, 2  ;;  %s4266_s27 = sand.u32 1, %s5516_s30  }
 0x4a3   : > { %s4267_s17 = scalar_lea.sflag [#allocation4], %s4266_s27 }
 0x4a4   : > { %p5356_p7 = pnand %p5359_p4, %p5625_p6 }
 0x4a6   : > { %p5357_p8 = pneg %p5356_p7 }
 0x4a8   : > { %5511 = dma.done.wait (%p5357_p8), %s4267_s17, 4096  }
 0x4a9   : > { %5513 = vsyncadd (%p5357_p8), %s4267_s17, 4294963200  ;;  %p19_p9 = scmp.ge.s32.totalorder %s5608_s15, 4   ;;  %s8360_s30 = smov %s5520_s10 }
 0x4aa   : > { %s8361_s10 = smov %s5524_s11  ;;  %s8362_s11 = smov %s5619_s18 }
 0x4ab   : > { %s8363_s12 = smov %s5608_s15  ;;  %21 = sbr.rel (!%p19_p9) target bundleno = 3 (0x3), region = 93 }
 0x4b0   :  { %4273 = vsyncpa [#allocation4], 1 }
 0x4b1   :  { %4275 = vsyncpa [#allocation4 + $0x1], 1 }

</bundles_post_ra>
